<compile_context>
chip_gen: v7x
topology: tpu7x:2x2x1
jax: 0.10.0
libtpu: 0.0.40
codegen_flags: <defaults>
</compile_context>

<pallas_src>
import jax
import jax.numpy as jnp
from jax.experimental import pallas as pl
from jax.experimental.pallas import tpu as pltpu

N_ITERS = 21
_MAX_UNROLL_ELEMS = 64 * 128      # keep the unrolled recurrence vreg-resident


def _round_up(x, m):
    return ((x + m - 1) // m) * m


def _cdiv(a, b):
    return (a + b - 1) // b


def _make_kernel(n_iters, unrolled):
    """Kernel over one packed 2-D block of images.

    The block is an (R, wp) tile holding a grid of images, each separated by
    >= 1 all-zero row/column.  The zero separators provide conv2d's zero
    padding for the roll-based stencil; the mask (lo/hi clip bounds) keeps
    them zero across the recurrence.
    """

    def kernel(x_ref, m_ref, p_ref, out_ref):
        rr, wp = x_ref.shape

        # ---- loop-invariant scalars, read once from SMEM --------------------
        a = [[p_ref[3 * i + j] for j in range(3)] for i in range(3)]      # convAx
        b = [[p_ref[9 + 3 * i + j] for j in range(3)] for i in range(3)]  # convBx
        bias = p_ref[18]
        xmin = p_ref[19]
        scale = p_ref[20]          # 2 / (xmax - xmin), computed in the wrapper

        # ---- mask fused into clip bounds: lo = hi = 0 in separators/pad -----
        hi = m_ref[...]
        lo = -hi

        # ---- in-register 3x3 'same' cross-correlation ------------------------
        # Correct because the operand is zero in every separator/pad position,
        # so the wrapped-around rows/columns brought in by the rolls are zero:
        # the separator ring is exactly conv2d's zero padding.
        def conv3x3(v, w):
            up = pltpu.roll(v, shift=1, axis=0)        # up[i, :] == v[i-1, :]
            dn = pltpu.roll(v, shift=rr - 1, axis=0)   # dn[i, :] == v[i+1, :]
            c0 = w[0][0] * up + w[1][0] * v + w[2][0] * dn
            c1 = w[0][1] * up + w[1][1] * v + w[2][1] * dn
            c2 = w[0][2] * up + w[1][2] * v + w[2][2] * dn
            lt = pltpu.roll(c0, shift=1, axis=1)       # lt[:, j] == c0[:, j-1]
            rt = pltpu.roll(c2, shift=wp - 1, axis=1)  # rt[:, j] == c2[:, j+1]
            return lt + c1 + rt

        # ---- normalize to [-1, 1]; keep separators/pad at exactly zero ------
        xn = ((x_ref[...] - xmin) * scale - 1.0) * hi

        # ---- BU = conv2d(xn, convBx); fold the per-pixel bias in once -------
        bu_b = conv3x3(xn, b) + bias

        # ---- peeled first iteration: state == 0 -> clamp(bu_b) --------------
        state = jnp.minimum(jnp.maximum(bu_b, lo), hi)

        def step(s):
            return jnp.minimum(jnp.maximum(conv3x3(s, a) + bu_b, lo), hi)

        if unrolled:
            for _ in range(n_iters - 1):
                state = step(state)
        else:
            # Large blocks: bound live ranges instead of spilling the unroll.
            state = jax.lax.fori_loop(0, n_iters - 1, lambda _, s: step(s), state)

        out_ref[...] = (state + 1.0) * 0.5

    return kernel


@jax.jit
def cellnn_forward(x_nchw, convA, convB, bias):
    """x_nchw: (N, 1, H, W) float32. Returns (N, 1, H, W) float32."""
    N, C, H, W = x_nchw.shape
    assert C == 1, "cellnn convs are single-channel"
    x = x_nchw[:, 0, :, :].astype(jnp.float32)

    # Global (whole-batch) min/max, hoisted out of the kernel so the batch can
    # be packed/gridded without changing semantics.
    xmin = jnp.min(x)
    xmax = jnp.max(x)
    # NOTE: like the PyTorch module, a constant input (xmax == xmin) divides by 0.
    scale = 2.0 / (xmax - xmin)

    # ---- packing geometry (all static Python ints under jit) ----------------
    hp = H + 1                       # one zero separator row per image
    g = W + 1                        # one zero separator column per image
    if g <= 128:
        wp = 128
        lw = 128 // g                # images packed side-by-side along lanes
    else:
        wp = _round_up(g, 128)
        lw = 1
    img_rows = _cdiv(N, lw)          # lane-rows of images needed for the batch

    # Images stacked vertically per block: keep the unrolled recurrence inside
    # the vector register file.
    row_budget = max(8, _MAX_UNROLL_ELEMS // wp)
    bh = max(1, min(row_budget // hp, img_rows))
    if bh == img_rows and img_rows >= 2:
        bh = _cdiv(img_rows, 2)      # keep >= 2 grid steps (v7x has 2 TensorCores)
    G = _cdiv(img_rows, bh)          # grid steps
    R = _round_up(bh * hp, 8)        # block sublane extent
    n_slots = G * bh * lw            # total image slots (>= N; extras are zero)

    # ---- pack (N, H, W) -> (G, R, wp) with zero separators -------------------
    xpad = jnp.pad(x, ((0, n_slots - N), (0, hp - H), (0, g - W)))
    xp = jnp.transpose(xpad.reshape(G, bh, lw, hp, g), (0, 1, 3, 2, 4))
    xp = xp.reshape(G, bh * hp, lw * g)
    xp = jnp.pad(xp, ((0, 0), (0, R - bh * hp), (0, wp - lw * g)))

    # Mask of the real-image interior (1) vs separators / alignment pad (0).
    row = jnp.arange(R, dtype=jnp.int32)[:, None]
    col = jnp.arange(wp, dtype=jnp.int32)[None, :]
    mask = (((row % hp) < H) & (row < bh * hp) &
            ((col % g) < W) & (col < lw * g)).astype(jnp.float32)

    # All scalar parameters packed into one small SMEM vector:
    # [convA(9), convB(9), bias, xmin, scale]
    params = jnp.concatenate([
        convA.reshape(-1).astype(jnp.float32),
        convB.reshape(-1).astype(jnp.float32),
        bias.reshape(-1).astype(jnp.float32),
        jnp.reshape(xmin, (1,)).astype(jnp.float32),
        jnp.reshape(scale, (1,)).astype(jnp.float32),
    ])

    unrolled = (R * wp) <= _MAX_UNROLL_ELEMS

    # Only raise the scoped-VMEM cap when the default (16 MiB on v5e) could be
    # exceeded; stay below v7x's 64 MiB physical VMEM.
    blk_bytes = R * wp * 4
    extra = {}
    est = 12 * blk_bytes             # 2x(in)+2x(out)+2x(mask) buffers + temporaries
    if est > 16 * 2**20:
        extra = dict(vmem_limit_bytes=int(min(est, 60 * 2**20)))

    out_packed = pl.pallas_call(
        _make_kernel(N_ITERS, unrolled),
        out_shape=jax.ShapeDtypeStruct((G, R, wp), jnp.float32),
        grid=(G,),
        in_specs=[
            pl.BlockSpec((None, R, wp), lambda i: (i, 0, 0)),            # packed images
            pl.BlockSpec((R, wp), lambda i: (0, 0)),                     # interior mask
            pl.BlockSpec((params.shape[0],), lambda i: (0,),
                         memory_space=pltpu.MemorySpace.SMEM),           # scalar params
        ],
        out_specs=pl.BlockSpec((None, R, wp), lambda i: (i, 0, 0)),
        input_output_aliases={0: 0},   # packed input is dead after BU; reuse its HBM
        compiler_params=pltpu.CompilerParams(
            dimension_semantics=("parallel",), **extra),
    )(xp, mask, params)

    # ---- unpack (G, R, wp) -> (N, 1, H, W) -----------------------------------
    out = out_packed[:, :bh * hp, :lw * g]
    out = jnp.transpose(out.reshape(G, bh, hp, lw, g), (0, 1, 3, 2, 4))
    out = out.reshape(n_slots, hp, g)[:N, :H, :W]
    return out[:, None, :, :]


# ----------------------------- pure-JAX reference ----------------------------
def _conv_ref(v, w4):
    return jax.lax.conv_general_dilated(
        v, w4, window_strides=(1, 1), padding=((1, 1), (1, 1)),
        dimension_numbers=("NCHW", "OIHW", "NCHW"),
        precision=jax.lax.Precision.HIGHEST)


def cellnn_reference(x_nchw, convA, convB, bias):
    A4 = convA.reshape(1, 1, 3, 3)
    B4 = convB.reshape(1, 1, 3, 3)
    xmin = jnp.min(x_nchw)
    xmax = jnp.max(x_nchw)
    xn = (x_nchw - xmin) * (2.0 / (xmax - xmin)) - 1.0
    bu = _conv_ref(xn, B4)
    s = jnp.zeros_like(xn)
    for _ in range(N_ITERS):
        s = _conv_ref(s, A4) + bias[0]
        s = s + bu
        s = jnp.clip(s, -1.0, 1.0)
    return (s + 1.0) * 0.5


if __name__ == "__main__":
    # Deterministic parameters (values from the module's __init__).
    convA = jnp.array([[0.2538, 0.5022, 0.07344],
                       [0.17864, 1.0622, 0.24616],
                       [0.2454, 0.90548, 0.52616]], dtype=jnp.float32)
    convB = jnp.array([[-0.083, -3.15852, 3.24172],
                       [-2.0894, -9.34624, -2.0018],
                       [6.889, -1.53384, 7.71856]], dtype=jnp.float32)
    bias = jnp.array([-0.07002], dtype=jnp.float32)

    # Small deterministic input: batch=2, channels=1, spatial=16x16 (NCHW).
    key = jax.random.PRNGKey(0)
    x = jax.random.normal(key, (2, 1, 16, 16), dtype=jnp.float32)

    out = cellnn_forward(x, convA, convB, bias)
    out = jax.block_until_ready(out)

    ref = cellnn_reference(x, convA, convB, bias)
    assert out.shape == ref.shape == (2, 1, 16, 16)
    err = float(jnp.max(jnp.abs(out - ref)))
    assert err < 5e-4, err

    print("KERNEL_OK")
</pallas_src>

<mosaic_0001>
module attributes {stable_mosaic.version = 11 : i64} {
  func.func @kernel(%arg0: i32, %arg1: memref<1x24x128xf32, #tpu.memory_space<vmem>>, %arg2: memref<24x128xf32, #tpu.memory_space<vmem>>, %arg3: memref<21xf32, #tpu.memory_space<smem>>, %arg4: memref<1x24x128xf32, #tpu.memory_space<vmem>>) attributes {dimension_semantics = [#tpu.dimension_semantics<parallel>], iteration_bounds = array<i64: 1>, scalar_prefetch = 0 : i64, scratch_operands = 0 : i64, tpu.core_type = #tpu.core_type<tc>, window_params = [{transform_indices = @transform_0, window_bounds = array<i64: 1, 24, 128>}, {pipeline_mode = #tpu.pipeline_mode<synchronous>, transform_indices = @transform_1, window_bounds = array<i64: 24, 128>}, {transform_indices = @transform_2, window_bounds = array<i64: 21>}, {transform_indices = @transform_3, window_bounds = array<i64: 1, 24, 128>}]} {
    %c0 = arith.constant 0 : index
    %0 = memref.load %arg3[%c0] : memref<21xf32, #tpu.memory_space<smem>>
    %c1 = arith.constant 1 : index
    %1 = memref.load %arg3[%c1] : memref<21xf32, #tpu.memory_space<smem>>
    %c2 = arith.constant 2 : index
    %2 = memref.load %arg3[%c2] : memref<21xf32, #tpu.memory_space<smem>>
    %c3 = arith.constant 3 : index
    %3 = memref.load %arg3[%c3] : memref<21xf32, #tpu.memory_space<smem>>
    %c4 = arith.constant 4 : index
    %4 = memref.load %arg3[%c4] : memref<21xf32, #tpu.memory_space<smem>>
    %c5 = arith.constant 5 : index
    %5 = memref.load %arg3[%c5] : memref<21xf32, #tpu.memory_space<smem>>
    %c6 = arith.constant 6 : index
    %6 = memref.load %arg3[%c6] : memref<21xf32, #tpu.memory_space<smem>>
    %c7 = arith.constant 7 : index
    %7 = memref.load %arg3[%c7] : memref<21xf32, #tpu.memory_space<smem>>
    %c8 = arith.constant 8 : index
    %8 = memref.load %arg3[%c8] : memref<21xf32, #tpu.memory_space<smem>>
    %c9 = arith.constant 9 : index
    %9 = memref.load %arg3[%c9] : memref<21xf32, #tpu.memory_space<smem>>
    %c10 = arith.constant 10 : index
    %10 = memref.load %arg3[%c10] : memref<21xf32, #tpu.memory_space<smem>>
    %c11 = arith.constant 11 : index
    %11 = memref.load %arg3[%c11] : memref<21xf32, #tpu.memory_space<smem>>
    %c12 = arith.constant 12 : index
    %12 = memref.load %arg3[%c12] : memref<21xf32, #tpu.memory_space<smem>>
    %c13 = arith.constant 13 : index
    %13 = memref.load %arg3[%c13] : memref<21xf32, #tpu.memory_space<smem>>
    %c14 = arith.constant 14 : index
    %14 = memref.load %arg3[%c14] : memref<21xf32, #tpu.memory_space<smem>>
    %c15 = arith.constant 15 : index
    %15 = memref.load %arg3[%c15] : memref<21xf32, #tpu.memory_space<smem>>
    %c16 = arith.constant 16 : index
    %16 = memref.load %arg3[%c16] : memref<21xf32, #tpu.memory_space<smem>>
    %c17 = arith.constant 17 : index
    %17 = memref.load %arg3[%c17] : memref<21xf32, #tpu.memory_space<smem>>
    %c18 = arith.constant 18 : index
    %18 = memref.load %arg3[%c18] : memref<21xf32, #tpu.memory_space<smem>>
    %c19 = arith.constant 19 : index
    %19 = memref.load %arg3[%c19] : memref<21xf32, #tpu.memory_space<smem>>
    %c20 = arith.constant 20 : index
    %20 = memref.load %arg3[%c20] : memref<21xf32, #tpu.memory_space<smem>>
    %c0_0 = arith.constant 0 : index
    %c0_1 = arith.constant 0 : index
    %21 = vector.load %arg2[%c0_0, %c0_1] : memref<24x128xf32, #tpu.memory_space<vmem>>, vector<24x128xf32>
    %cst = arith.constant 0.000000e+00 : f32
    %22 = vector.broadcast %cst : f32 to vector<24x128xf32>
    %23 = arith.subf %22, %21 : vector<24x128xf32>
    %c0_2 = arith.constant 0 : index
    %c0_3 = arith.constant 0 : index
    %c0_4 = arith.constant 0 : index
    %24 = vector.load %arg1[%c0_2, %c0_3, %c0_4] : memref<1x24x128xf32, #tpu.memory_space<vmem>>, vector<1x24x128xf32>
    %25 = vector.shape_cast %24 : vector<1x24x128xf32> to vector<24x128xf32>
    %26 = vector.broadcast %19 : f32 to vector<24x128xf32>
    %27 = arith.subf %25, %26 : vector<24x128xf32>
    %28 = vector.broadcast %20 : f32 to vector<24x128xf32>
    %29 = arith.mulf %27, %28 : vector<24x128xf32>
    %cst_5 = arith.constant 1.000000e+00 : f32
    %30 = vector.broadcast %cst_5 : f32 to vector<24x128xf32>
    %31 = arith.subf %29, %30 : vector<24x128xf32>
    %32 = arith.mulf %31, %21 : vector<24x128xf32>
    %c1_i32 = arith.constant 1 : i32
    %33 = tpu.dynamic_rotate %32 by %c1_i32 dim 0 : vector<24x128xf32>, i32 -> vector<24x128xf32>
    %c23_i32 = arith.constant 23 : i32
    %34 = tpu.dynamic_rotate %32 by %c23_i32 dim 0 : vector<24x128xf32>, i32 -> vector<24x128xf32>
    %35 = vector.broadcast %9 : f32 to vector<24x128xf32>
    %36 = arith.mulf %35, %33 : vector<24x128xf32>
    %37 = vector.broadcast %12 : f32 to vector<24x128xf32>
    %38 = arith.mulf %37, %32 : vector<24x128xf32>
    %39 = arith.addf %36, %38 : vector<24x128xf32>
    %40 = vector.broadcast %15 : f32 to vector<24x128xf32>
    %41 = arith.mulf %40, %34 : vector<24x128xf32>
    %42 = arith.addf %39, %41 : vector<24x128xf32>
    %43 = vector.broadcast %10 : f32 to vector<24x128xf32>
    %44 = arith.mulf %43, %33 : vector<24x128xf32>
    %45 = vector.broadcast %13 : f32 to vector<24x128xf32>
    %46 = arith.mulf %45, %32 : vector<24x128xf32>
    %47 = arith.addf %44, %46 : vector<24x128xf32>
    %48 = vector.broadcast %16 : f32 to vector<24x128xf32>
    %49 = arith.mulf %48, %34 : vector<24x128xf32>
    %50 = arith.addf %47, %49 : vector<24x128xf32>
    %51 = vector.broadcast %11 : f32 to vector<24x128xf32>
    %52 = arith.mulf %51, %33 : vector<24x128xf32>
    %53 = vector.broadcast %14 : f32 to vector<24x128xf32>
    %54 = arith.mulf %53, %32 : vector<24x128xf32>
    %55 = arith.addf %52, %54 : vector<24x128xf32>
    %56 = vector.broadcast %17 : f32 to vector<24x128xf32>
    %57 = arith.mulf %56, %34 : vector<24x128xf32>
    %58 = arith.addf %55, %57 : vector<24x128xf32>
    %c1_i32_6 = arith.constant 1 : i32
    %59 = tpu.dynamic_rotate %42 by %c1_i32_6 dim 1 : vector<24x128xf32>, i32 -> vector<24x128xf32>
    %c127_i32 = arith.constant 127 : i32
    %60 = tpu.dynamic_rotate %58 by %c127_i32 dim 1 : vector<24x128xf32>, i32 -> vector<24x128xf32>
    %61 = arith.addf %59, %50 : vector<24x128xf32>
    %62 = arith.addf %61, %60 : vector<24x128xf32>
    %63 = vector.broadcast %18 : f32 to vector<24x128xf32>
    %64 = arith.addf %62, %63 : vector<24x128xf32>
    %65 = arith.maximumf %64, %23 : vector<24x128xf32>
    %66 = arith.minimumf %65, %21 : vector<24x128xf32>
    %c1_i32_7 = arith.constant 1 : i32
    %67 = tpu.dynamic_rotate %66 by %c1_i32_7 dim 0 : vector<24x128xf32>, i32 -> vector<24x128xf32>
    %c23_i32_8 = arith.constant 23 : i32
    %68 = tpu.dynamic_rotate %66 by %c23_i32_8 dim 0 : vector<24x128xf32>, i32 -> vector<24x128xf32>
    %69 = vector.broadcast %0 : f32 to vector<24x128xf32>
    %70 = arith.mulf %69, %67 : vector<24x128xf32>
    %71 = vector.broadcast %3 : f32 to vector<24x128xf32>
    %72 = arith.mulf %71, %66 : vector<24x128xf32>
    %73 = arith.addf %70, %72 : vector<24x128xf32>
    %74 = vector.broadcast %6 : f32 to vector<24x128xf32>
    %75 = arith.mulf %74, %68 : vector<24x128xf32>
    %76 = arith.addf %73, %75 : vector<24x128xf32>
    %77 = vector.broadcast %1 : f32 to vector<24x128xf32>
    %78 = arith.mulf %77, %67 : vector<24x128xf32>
    %79 = vector.broadcast %4 : f32 to vector<24x128xf32>
    %80 = arith.mulf %79, %66 : vector<24x128xf32>
    %81 = arith.addf %78, %80 : vector<24x128xf32>
    %82 = vector.broadcast %7 : f32 to vector<24x128xf32>
    %83 = arith.mulf %82, %68 : vector<24x128xf32>
    %84 = arith.addf %81, %83 : vector<24x128xf32>
    %85 = vector.broadcast %2 : f32 to vector<24x128xf32>
    %86 = arith.mulf %85, %67 : vector<24x128xf32>
    %87 = vector.broadcast %5 : f32 to vector<24x128xf32>
    %88 = arith.mulf %87, %66 : vector<24x128xf32>
    %89 = arith.addf %86, %88 : vector<24x128xf32>
    %90 = vector.broadcast %8 : f32 to vector<24x128xf32>
    %91 = arith.mulf %90, %68 : vector<24x128xf32>
    %92 = arith.addf %89, %91 : vector<24x128xf32>
    %c1_i32_9 = arith.constant 1 : i32
    %93 = tpu.dynamic_rotate %76 by %c1_i32_9 dim 1 : vector<24x128xf32>, i32 -> vector<24x128xf32>
    %c127_i32_10 = arith.constant 127 : i32
    %94 = tpu.dynamic_rotate %92 by %c127_i32_10 dim 1 : vector<24x128xf32>, i32 -> vector<24x128xf32>
    %95 = arith.addf %93, %84 : vector<24x128xf32>
    %96 = arith.addf %95, %94 : vector<24x128xf32>
    %97 = arith.addf %96, %64 : vector<24x128xf32>
    %98 = arith.maximumf %97, %23 : vector<24x128xf32>
    %99 = arith.minimumf %98, %21 : vector<24x128xf32>
    %c1_i32_11 = arith.constant 1 : i32
    %100 = tpu.dynamic_rotate %99 by %c1_i32_11 dim 0 : vector<24x128xf32>, i32 -> vector<24x128xf32>
    %c23_i32_12 = arith.constant 23 : i32
    %101 = tpu.dynamic_rotate %99 by %c23_i32_12 dim 0 : vector<24x128xf32>, i32 -> vector<24x128xf32>
    %102 = vector.broadcast %0 : f32 to vector<24x128xf32>
    %103 = arith.mulf %102, %100 : vector<24x128xf32>
    %104 = vector.broadcast %3 : f32 to vector<24x128xf32>
    %105 = arith.mulf %104, %99 : vector<24x128xf32>
    %106 = arith.addf %103, %105 : vector<24x128xf32>
    %107 = vector.broadcast %6 : f32 to vector<24x128xf32>
    %108 = arith.mulf %107, %101 : vector<24x128xf32>
    %109 = arith.addf %106, %108 : vector<24x128xf32>
    %110 = vector.broadcast %1 : f32 to vector<24x128xf32>
    %111 = arith.mulf %110, %100 : vector<24x128xf32>
    %112 = vector.broadcast %4 : f32 to vector<24x128xf32>
    %113 = arith.mulf %112, %99 : vector<24x128xf32>
    %114 = arith.addf %111, %113 : vector<24x128xf32>
    %115 = vector.broadcast %7 : f32 to vector<24x128xf32>
    %116 = arith.mulf %115, %101 : vector<24x128xf32>
    %117 = arith.addf %114, %116 : vector<24x128xf32>
    %118 = vector.broadcast %2 : f32 to vector<24x128xf32>
    %119 = arith.mulf %118, %100 : vector<24x128xf32>
    %120 = vector.broadcast %5 : f32 to vector<24x128xf32>
    %121 = arith.mulf %120, %99 : vector<24x128xf32>
    %122 = arith.addf %119, %121 : vector<24x128xf32>
    %123 = vector.broadcast %8 : f32 to vector<24x128xf32>
    %124 = arith.mulf %123, %101 : vector<24x128xf32>
    %125 = arith.addf %122, %124 : vector<24x128xf32>
    %c1_i32_13 = arith.constant 1 : i32
    %126 = tpu.dynamic_rotate %109 by %c1_i32_13 dim 1 : vector<24x128xf32>, i32 -> vector<24x128xf32>
    %c127_i32_14 = arith.constant 127 : i32
    %127 = tpu.dynamic_rotate %125 by %c127_i32_14 dim 1 : vector<24x128xf32>, i32 -> vector<24x128xf32>
    %128 = arith.addf %126, %117 : vector<24x128xf32>
    %129 = arith.addf %128, %127 : vector<24x128xf32>
    %130 = arith.addf %129, %64 : vector<24x128xf32>
    %131 = arith.maximumf %130, %23 : vector<24x128xf32>
    %132 = arith.minimumf %131, %21 : vector<24x128xf32>
    %c1_i32_15 = arith.constant 1 : i32
    %133 = tpu.dynamic_rotate %132 by %c1_i32_15 dim 0 : vector<24x128xf32>, i32 -> vector<24x128xf32>
    %c23_i32_16 = arith.constant 23 : i32
    %134 = tpu.dynamic_rotate %132 by %c23_i32_16 dim 0 : vector<24x128xf32>, i32 -> vector<24x128xf32>
    %135 = vector.broadcast %0 : f32 to vector<24x128xf32>
    %136 = arith.mulf %135, %133 : vector<24x128xf32>
    %137 = vector.broadcast %3 : f32 to vector<24x128xf32>
    %138 = arith.mulf %137, %132 : vector<24x128xf32>
    %139 = arith.addf %136, %138 : vector<24x128xf32>
    %140 = vector.broadcast %6 : f32 to vector<24x128xf32>
    %141 = arith.mulf %140, %134 : vector<24x128xf32>
    %142 = arith.addf %139, %141 : vector<24x128xf32>
    %143 = vector.broadcast %1 : f32 to vector<24x128xf32>
    %144 = arith.mulf %143, %133 : vector<24x128xf32>
    %145 = vector.broadcast %4 : f32 to vector<24x128xf32>
    %146 = arith.mulf %145, %132 : vector<24x128xf32>
    %147 = arith.addf %144, %146 : vector<24x128xf32>
    %148 = vector.broadcast %7 : f32 to vector<24x128xf32>
    %149 = arith.mulf %148, %134 : vector<24x128xf32>
    %150 = arith.addf %147, %149 : vector<24x128xf32>
    %151 = vector.broadcast %2 : f32 to vector<24x128xf32>
    %152 = arith.mulf %151, %133 : vector<24x128xf32>
    %153 = vector.broadcast %5 : f32 to vector<24x128xf32>
    %154 = arith.mulf %153, %132 : vector<24x128xf32>
    %155 = arith.addf %152, %154 : vector<24x128xf32>
    %156 = vector.broadcast %8 : f32 to vector<24x128xf32>
    %157 = arith.mulf %156, %134 : vector<24x128xf32>
    %158 = arith.addf %155, %157 : vector<24x128xf32>
    %c1_i32_17 = arith.constant 1 : i32
    %159 = tpu.dynamic_rotate %142 by %c1_i32_17 dim 1 : vector<24x128xf32>, i32 -> vector<24x128xf32>
    %c127_i32_18 = arith.constant 127 : i32
    %160 = tpu.dynamic_rotate %158 by %c127_i32_18 dim 1 : vector<24x128xf32>, i32 -> vector<24x128xf32>
    %161 = arith.addf %159, %150 : vector<24x128xf32>
    %162 = arith.addf %161, %160 : vector<24x128xf32>
    %163 = arith.addf %162, %64 : vector<24x128xf32>
    %164 = arith.maximumf %163, %23 : vector<24x128xf32>
    %165 = arith.minimumf %164, %21 : vector<24x128xf32>
    %c1_i32_19 = arith.constant 1 : i32
    %166 = tpu.dynamic_rotate %165 by %c1_i32_19 dim 0 : vector<24x128xf32>, i32 -> vector<24x128xf32>
    %c23_i32_20 = arith.constant 23 : i32
    %167 = tpu.dynamic_rotate %165 by %c23_i32_20 dim 0 : vector<24x128xf32>, i32 -> vector<24x128xf32>
    %168 = vector.broadcast %0 : f32 to vector<24x128xf32>
    %169 = arith.mulf %168, %166 : vector<24x128xf32>
    %170 = vector.broadcast %3 : f32 to vector<24x128xf32>
    %171 = arith.mulf %170, %165 : vector<24x128xf32>
    %172 = arith.addf %169, %171 : vector<24x128xf32>
    %173 = vector.broadcast %6 : f32 to vector<24x128xf32>
    %174 = arith.mulf %173, %167 : vector<24x128xf32>
    %175 = arith.addf %172, %174 : vector<24x128xf32>
    %176 = vector.broadcast %1 : f32 to vector<24x128xf32>
    %177 = arith.mulf %176, %166 : vector<24x128xf32>
    %178 = vector.broadcast %4 : f32 to vector<24x128xf32>
    %179 = arith.mulf %178, %165 : vector<24x128xf32>
    %180 = arith.addf %177, %179 : vector<24x128xf32>
    %181 = vector.broadcast %7 : f32 to vector<24x128xf32>
    %182 = arith.mulf %181, %167 : vector<24x128xf32>
    %183 = arith.addf %180, %182 : vector<24x128xf32>
    %184 = vector.broadcast %2 : f32 to vector<24x128xf32>
    %185 = arith.mulf %184, %166 : vector<24x128xf32>
    %186 = vector.broadcast %5 : f32 to vector<24x128xf32>
    %187 = arith.mulf %186, %165 : vector<24x128xf32>
    %188 = arith.addf %185, %187 : vector<24x128xf32>
    %189 = vector.broadcast %8 : f32 to vector<24x128xf32>
    %190 = arith.mulf %189, %167 : vector<24x128xf32>
    %191 = arith.addf %188, %190 : vector<24x128xf32>
    %c1_i32_21 = arith.constant 1 : i32
    %192 = tpu.dynamic_rotate %175 by %c1_i32_21 dim 1 : vector<24x128xf32>, i32 -> vector<24x128xf32>
    %c127_i32_22 = arith.constant 127 : i32
    %193 = tpu.dynamic_rotate %191 by %c127_i32_22 dim 1 : vector<24x128xf32>, i32 -> vector<24x128xf32>
    %194 = arith.addf %192, %183 : vector<24x128xf32>
    %195 = arith.addf %194, %193 : vector<24x128xf32>
    %196 = arith.addf %195, %64 : vector<24x128xf32>
    %197 = arith.maximumf %196, %23 : vector<24x128xf32>
    %198 = arith.minimumf %197, %21 : vector<24x128xf32>
    %c1_i32_23 = arith.constant 1 : i32
    %199 = tpu.dynamic_rotate %198 by %c1_i32_23 dim 0 : vector<24x128xf32>, i32 -> vector<24x128xf32>
    %c23_i32_24 = arith.constant 23 : i32
    %200 = tpu.dynamic_rotate %198 by %c23_i32_24 dim 0 : vector<24x128xf32>, i32 -> vector<24x128xf32>
    %201 = vector.broadcast %0 : f32 to vector<24x128xf32>
    %202 = arith.mulf %201, %199 : vector<24x128xf32>
    %203 = vector.broadcast %3 : f32 to vector<24x128xf32>
    %204 = arith.mulf %203, %198 : vector<24x128xf32>
    %205 = arith.addf %202, %204 : vector<24x128xf32>
    %206 = vector.broadcast %6 : f32 to vector<24x128xf32>
    %207 = arith.mulf %206, %200 : vector<24x128xf32>
    %208 = arith.addf %205, %207 : vector<24x128xf32>
    %209 = vector.broadcast %1 : f32 to vector<24x128xf32>
    %210 = arith.mulf %209, %199 : vector<24x128xf32>
    %211 = vector.broadcast %4 : f32 to vector<24x128xf32>
    %212 = arith.mulf %211, %198 : vector<24x128xf32>
    %213 = arith.addf %210, %212 : vector<24x128xf32>
    %214 = vector.broadcast %7 : f32 to vector<24x128xf32>
    %215 = arith.mulf %214, %200 : vector<24x128xf32>
    %216 = arith.addf %213, %215 : vector<24x128xf32>
    %217 = vector.broadcast %2 : f32 to vector<24x128xf32>
    %218 = arith.mulf %217, %199 : vector<24x128xf32>
    %219 = vector.broadcast %5 : f32 to vector<24x128xf32>
    %220 = arith.mulf %219, %198 : vector<24x128xf32>
    %221 = arith.addf %218, %220 : vector<24x128xf32>
    %222 = vector.broadcast %8 : f32 to vector<24x128xf32>
    %223 = arith.mulf %222, %200 : vector<24x128xf32>
    %224 = arith.addf %221, %223 : vector<24x128xf32>
    %c1_i32_25 = arith.constant 1 : i32
    %225 = tpu.dynamic_rotate %208 by %c1_i32_25 dim 1 : vector<24x128xf32>, i32 -> vector<24x128xf32>
    %c127_i32_26 = arith.constant 127 : i32
    %226 = tpu.dynamic_rotate %224 by %c127_i32_26 dim 1 : vector<24x128xf32>, i32 -> vector<24x128xf32>
    %227 = arith.addf %225, %216 : vector<24x128xf32>
    %228 = arith.addf %227, %226 : vector<24x128xf32>
    %229 = arith.addf %228, %64 : vector<24x128xf32>
    %230 = arith.maximumf %229, %23 : vector<24x128xf32>
    %231 = arith.minimumf %230, %21 : vector<24x128xf32>
    %c1_i32_27 = arith.constant 1 : i32
    %232 = tpu.dynamic_rotate %231 by %c1_i32_27 dim 0 : vector<24x128xf32>, i32 -> vector<24x128xf32>
    %c23_i32_28 = arith.constant 23 : i32
    %233 = tpu.dynamic_rotate %231 by %c23_i32_28 dim 0 : vector<24x128xf32>, i32 -> vector<24x128xf32>
    %234 = vector.broadcast %0 : f32 to vector<24x128xf32>
    %235 = arith.mulf %234, %232 : vector<24x128xf32>
    %236 = vector.broadcast %3 : f32 to vector<24x128xf32>
    %237 = arith.mulf %236, %231 : vector<24x128xf32>
    %238 = arith.addf %235, %237 : vector<24x128xf32>
    %239 = vector.broadcast %6 : f32 to vector<24x128xf32>
    %240 = arith.mulf %239, %233 : vector<24x128xf32>
    %241 = arith.addf %238, %240 : vector<24x128xf32>
    %242 = vector.broadcast %1 : f32 to vector<24x128xf32>
    %243 = arith.mulf %242, %232 : vector<24x128xf32>
    %244 = vector.broadcast %4 : f32 to vector<24x128xf32>
    %245 = arith.mulf %244, %231 : vector<24x128xf32>
    %246 = arith.addf %243, %245 : vector<24x128xf32>
    %247 = vector.broadcast %7 : f32 to vector<24x128xf32>
    %248 = arith.mulf %247, %233 : vector<24x128xf32>
    %249 = arith.addf %246, %248 : vector<24x128xf32>
    %250 = vector.broadcast %2 : f32 to vector<24x128xf32>
    %251 = arith.mulf %250, %232 : vector<24x128xf32>
    %252 = vector.broadcast %5 : f32 to vector<24x128xf32>
    %253 = arith.mulf %252, %231 : vector<24x128xf32>
    %254 = arith.addf %251, %253 : vector<24x128xf32>
    %255 = vector.broadcast %8 : f32 to vector<24x128xf32>
    %256 = arith.mulf %255, %233 : vector<24x128xf32>
    %257 = arith.addf %254, %256 : vector<24x128xf32>
    %c1_i32_29 = arith.constant 1 : i32
    %258 = tpu.dynamic_rotate %241 by %c1_i32_29 dim 1 : vector<24x128xf32>, i32 -> vector<24x128xf32>
    %c127_i32_30 = arith.constant 127 : i32
    %259 = tpu.dynamic_rotate %257 by %c127_i32_30 dim 1 : vector<24x128xf32>, i32 -> vector<24x128xf32>
    %260 = arith.addf %258, %249 : vector<24x128xf32>
    %261 = arith.addf %260, %259 : vector<24x128xf32>
    %262 = arith.addf %261, %64 : vector<24x128xf32>
    %263 = arith.maximumf %262, %23 : vector<24x128xf32>
    %264 = arith.minimumf %263, %21 : vector<24x128xf32>
    %c1_i32_31 = arith.constant 1 : i32
    %265 = tpu.dynamic_rotate %264 by %c1_i32_31 dim 0 : vector<24x128xf32>, i32 -> vector<24x128xf32>
    %c23_i32_32 = arith.constant 23 : i32
    %266 = tpu.dynamic_rotate %264 by %c23_i32_32 dim 0 : vector<24x128xf32>, i32 -> vector<24x128xf32>
    %267 = vector.broadcast %0 : f32 to vector<24x128xf32>
    %268 = arith.mulf %267, %265 : vector<24x128xf32>
    %269 = vector.broadcast %3 : f32 to vector<24x128xf32>
    %270 = arith.mulf %269, %264 : vector<24x128xf32>
    %271 = arith.addf %268, %270 : vector<24x128xf32>
    %272 = vector.broadcast %6 : f32 to vector<24x128xf32>
    %273 = arith.mulf %272, %266 : vector<24x128xf32>
    %274 = arith.addf %271, %273 : vector<24x128xf32>
    %275 = vector.broadcast %1 : f32 to vector<24x128xf32>
    %276 = arith.mulf %275, %265 : vector<24x128xf32>
    %277 = vector.broadcast %4 : f32 to vector<24x128xf32>
    %278 = arith.mulf %277, %264 : vector<24x128xf32>
    %279 = arith.addf %276, %278 : vector<24x128xf32>
    %280 = vector.broadcast %7 : f32 to vector<24x128xf32>
    %281 = arith.mulf %280, %266 : vector<24x128xf32>
    %282 = arith.addf %279, %281 : vector<24x128xf32>
    %283 = vector.broadcast %2 : f32 to vector<24x128xf32>
    %284 = arith.mulf %283, %265 : vector<24x128xf32>
    %285 = vector.broadcast %5 : f32 to vector<24x128xf32>
    %286 = arith.mulf %285, %264 : vector<24x128xf32>
    %287 = arith.addf %284, %286 : vector<24x128xf32>
    %288 = vector.broadcast %8 : f32 to vector<24x128xf32>
    %289 = arith.mulf %288, %266 : vector<24x128xf32>
    %290 = arith.addf %287, %289 : vector<24x128xf32>
    %c1_i32_33 = arith.constant 1 : i32
    %291 = tpu.dynamic_rotate %274 by %c1_i32_33 dim 1 : vector<24x128xf32>, i32 -> vector<24x128xf32>
    %c127_i32_34 = arith.constant 127 : i32
    %292 = tpu.dynamic_rotate %290 by %c127_i32_34 dim 1 : vector<24x128xf32>, i32 -> vector<24x128xf32>
    %293 = arith.addf %291, %282 : vector<24x128xf32>
    %294 = arith.addf %293, %292 : vector<24x128xf32>
    %295 = arith.addf %294, %64 : vector<24x128xf32>
    %296 = arith.maximumf %295, %23 : vector<24x128xf32>
    %297 = arith.minimumf %296, %21 : vector<24x128xf32>
    %c1_i32_35 = arith.constant 1 : i32
    %298 = tpu.dynamic_rotate %297 by %c1_i32_35 dim 0 : vector<24x128xf32>, i32 -> vector<24x128xf32>
    %c23_i32_36 = arith.constant 23 : i32
    %299 = tpu.dynamic_rotate %297 by %c23_i32_36 dim 0 : vector<24x128xf32>, i32 -> vector<24x128xf32>
    %300 = vector.broadcast %0 : f32 to vector<24x128xf32>
    %301 = arith.mulf %300, %298 : vector<24x128xf32>
    %302 = vector.broadcast %3 : f32 to vector<24x128xf32>
    %303 = arith.mulf %302, %297 : vector<24x128xf32>
    %304 = arith.addf %301, %303 : vector<24x128xf32>
    %305 = vector.broadcast %6 : f32 to vector<24x128xf32>
    %306 = arith.mulf %305, %299 : vector<24x128xf32>
    %307 = arith.addf %304, %306 : vector<24x128xf32>
    %308 = vector.broadcast %1 : f32 to vector<24x128xf32>
    %309 = arith.mulf %308, %298 : vector<24x128xf32>
    %310 = vector.broadcast %4 : f32 to vector<24x128xf32>
    %311 = arith.mulf %310, %297 : vector<24x128xf32>
    %312 = arith.addf %309, %311 : vector<24x128xf32>
    %313 = vector.broadcast %7 : f32 to vector<24x128xf32>
    %314 = arith.mulf %313, %299 : vector<24x128xf32>
    %315 = arith.addf %312, %314 : vector<24x128xf32>
    %316 = vector.broadcast %2 : f32 to vector<24x128xf32>
    %317 = arith.mulf %316, %298 : vector<24x128xf32>
    %318 = vector.broadcast %5 : f32 to vector<24x128xf32>
    %319 = arith.mulf %318, %297 : vector<24x128xf32>
    %320 = arith.addf %317, %319 : vector<24x128xf32>
    %321 = vector.broadcast %8 : f32 to vector<24x128xf32>
    %322 = arith.mulf %321, %299 : vector<24x128xf32>
    %323 = arith.addf %320, %322 : vector<24x128xf32>
    %c1_i32_37 = arith.constant 1 : i32
    %324 = tpu.dynamic_rotate %307 by %c1_i32_37 dim 1 : vector<24x128xf32>, i32 -> vector<24x128xf32>
    %c127_i32_38 = arith.constant 127 : i32
    %325 = tpu.dynamic_rotate %323 by %c127_i32_38 dim 1 : vector<24x128xf32>, i32 -> vector<24x128xf32>
    %326 = arith.addf %324, %315 : vector<24x128xf32>
    %327 = arith.addf %326, %325 : vector<24x128xf32>
    %328 = arith.addf %327, %64 : vector<24x128xf32>
    %329 = arith.maximumf %328, %23 : vector<24x128xf32>
    %330 = arith.minimumf %329, %21 : vector<24x128xf32>
    %c1_i32_39 = arith.constant 1 : i32
    %331 = tpu.dynamic_rotate %330 by %c1_i32_39 dim 0 : vector<24x128xf32>, i32 -> vector<24x128xf32>
    %c23_i32_40 = arith.constant 23 : i32
    %332 = tpu.dynamic_rotate %330 by %c23_i32_40 dim 0 : vector<24x128xf32>, i32 -> vector<24x128xf32>
    %333 = vector.broadcast %0 : f32 to vector<24x128xf32>
    %334 = arith.mulf %333, %331 : vector<24x128xf32>
    %335 = vector.broadcast %3 : f32 to vector<24x128xf32>
    %336 = arith.mulf %335, %330 : vector<24x128xf32>
    %337 = arith.addf %334, %336 : vector<24x128xf32>
    %338 = vector.broadcast %6 : f32 to vector<24x128xf32>
    %339 = arith.mulf %338, %332 : vector<24x128xf32>
    %340 = arith.addf %337, %339 : vector<24x128xf32>
    %341 = vector.broadcast %1 : f32 to vector<24x128xf32>
    %342 = arith.mulf %341, %331 : vector<24x128xf32>
    %343 = vector.broadcast %4 : f32 to vector<24x128xf32>
    %344 = arith.mulf %343, %330 : vector<24x128xf32>
    %345 = arith.addf %342, %344 : vector<24x128xf32>
    %346 = vector.broadcast %7 : f32 to vector<24x128xf32>
    %347 = arith.mulf %346, %332 : vector<24x128xf32>
    %348 = arith.addf %345, %347 : vector<24x128xf32>
    %349 = vector.broadcast %2 : f32 to vector<24x128xf32>
    %350 = arith.mulf %349, %331 : vector<24x128xf32>
    %351 = vector.broadcast %5 : f32 to vector<24x128xf32>
    %352 = arith.mulf %351, %330 : vector<24x128xf32>
    %353 = arith.addf %350, %352 : vector<24x128xf32>
    %354 = vector.broadcast %8 : f32 to vector<24x128xf32>
    %355 = arith.mulf %354, %332 : vector<24x128xf32>
    %356 = arith.addf %353, %355 : vector<24x128xf32>
    %c1_i32_41 = arith.constant 1 : i32
    %357 = tpu.dynamic_rotate %340 by %c1_i32_41 dim 1 : vector<24x128xf32>, i32 -> vector<24x128xf32>
    %c127_i32_42 = arith.constant 127 : i32
    %358 = tpu.dynamic_rotate %356 by %c127_i32_42 dim 1 : vector<24x128xf32>, i32 -> vector<24x128xf32>
    %359 = arith.addf %357, %348 : vector<24x128xf32>
    %360 = arith.addf %359, %358 : vector<24x128xf32>
    %361 = arith.addf %360, %64 : vector<24x128xf32>
    %362 = arith.maximumf %361, %23 : vector<24x128xf32>
    %363 = arith.minimumf %362, %21 : vector<24x128xf32>
    %c1_i32_43 = arith.constant 1 : i32
    %364 = tpu.dynamic_rotate %363 by %c1_i32_43 dim 0 : vector<24x128xf32>, i32 -> vector<24x128xf32>
    %c23_i32_44 = arith.constant 23 : i32
    %365 = tpu.dynamic_rotate %363 by %c23_i32_44 dim 0 : vector<24x128xf32>, i32 -> vector<24x128xf32>
    %366 = vector.broadcast %0 : f32 to vector<24x128xf32>
    %367 = arith.mulf %366, %364 : vector<24x128xf32>
    %368 = vector.broadcast %3 : f32 to vector<24x128xf32>
    %369 = arith.mulf %368, %363 : vector<24x128xf32>
    %370 = arith.addf %367, %369 : vector<24x128xf32>
    %371 = vector.broadcast %6 : f32 to vector<24x128xf32>
    %372 = arith.mulf %371, %365 : vector<24x128xf32>
    %373 = arith.addf %370, %372 : vector<24x128xf32>
    %374 = vector.broadcast %1 : f32 to vector<24x128xf32>
    %375 = arith.mulf %374, %364 : vector<24x128xf32>
    %376 = vector.broadcast %4 : f32 to vector<24x128xf32>
    %377 = arith.mulf %376, %363 : vector<24x128xf32>
    %378 = arith.addf %375, %377 : vector<24x128xf32>
    %379 = vector.broadcast %7 : f32 to vector<24x128xf32>
    %380 = arith.mulf %379, %365 : vector<24x128xf32>
    %381 = arith.addf %378, %380 : vector<24x128xf32>
    %382 = vector.broadcast %2 : f32 to vector<24x128xf32>
    %383 = arith.mulf %382, %364 : vector<24x128xf32>
    %384 = vector.broadcast %5 : f32 to vector<24x128xf32>
    %385 = arith.mulf %384, %363 : vector<24x128xf32>
    %386 = arith.addf %383, %385 : vector<24x128xf32>
    %387 = vector.broadcast %8 : f32 to vector<24x128xf32>
    %388 = arith.mulf %387, %365 : vector<24x128xf32>
    %389 = arith.addf %386, %388 : vector<24x128xf32>
    %c1_i32_45 = arith.constant 1 : i32
    %390 = tpu.dynamic_rotate %373 by %c1_i32_45 dim 1 : vector<24x128xf32>, i32 -> vector<24x128xf32>
    %c127_i32_46 = arith.constant 127 : i32
    %391 = tpu.dynamic_rotate %389 by %c127_i32_46 dim 1 : vector<24x128xf32>, i32 -> vector<24x128xf32>
    %392 = arith.addf %390, %381 : vector<24x128xf32>
    %393 = arith.addf %392, %391 : vector<24x128xf32>
    %394 = arith.addf %393, %64 : vector<24x128xf32>
    %395 = arith.maximumf %394, %23 : vector<24x128xf32>
    %396 = arith.minimumf %395, %21 : vector<24x128xf32>
    %c1_i32_47 = arith.constant 1 : i32
    %397 = tpu.dynamic_rotate %396 by %c1_i32_47 dim 0 : vector<24x128xf32>, i32 -> vector<24x128xf32>
    %c23_i32_48 = arith.constant 23 : i32
    %398 = tpu.dynamic_rotate %396 by %c23_i32_48 dim 0 : vector<24x128xf32>, i32 -> vector<24x128xf32>
    %399 = vector.broadcast %0 : f32 to vector<24x128xf32>
    %400 = arith.mulf %399, %397 : vector<24x128xf32>
    %401 = vector.broadcast %3 : f32 to vector<24x128xf32>
    %402 = arith.mulf %401, %396 : vector<24x128xf32>
    %403 = arith.addf %400, %402 : vector<24x128xf32>
    %404 = vector.broadcast %6 : f32 to vector<24x128xf32>
    %405 = arith.mulf %404, %398 : vector<24x128xf32>
    %406 = arith.addf %403, %405 : vector<24x128xf32>
    %407 = vector.broadcast %1 : f32 to vector<24x128xf32>
    %408 = arith.mulf %407, %397 : vector<24x128xf32>
    %409 = vector.broadcast %4 : f32 to vector<24x128xf32>
    %410 = arith.mulf %409, %396 : vector<24x128xf32>
    %411 = arith.addf %408, %410 : vector<24x128xf32>
    %412 = vector.broadcast %7 : f32 to vector<24x128xf32>
    %413 = arith.mulf %412, %398 : vector<24x128xf32>
    %414 = arith.addf %411, %413 : vector<24x128xf32>
    %415 = vector.broadcast %2 : f32 to vector<24x128xf32>
    %416 = arith.mulf %415, %397 : vector<24x128xf32>
    %417 = vector.broadcast %5 : f32 to vector<24x128xf32>
    %418 = arith.mulf %417, %396 : vector<24x128xf32>
    %419 = arith.addf %416, %418 : vector<24x128xf32>
    %420 = vector.broadcast %8 : f32 to vector<24x128xf32>
    %421 = arith.mulf %420, %398 : vector<24x128xf32>
    %422 = arith.addf %419, %421 : vector<24x128xf32>
    %c1_i32_49 = arith.constant 1 : i32
    %423 = tpu.dynamic_rotate %406 by %c1_i32_49 dim 1 : vector<24x128xf32>, i32 -> vector<24x128xf32>
    %c127_i32_50 = arith.constant 127 : i32
    %424 = tpu.dynamic_rotate %422 by %c127_i32_50 dim 1 : vector<24x128xf32>, i32 -> vector<24x128xf32>
    %425 = arith.addf %423, %414 : vector<24x128xf32>
    %426 = arith.addf %425, %424 : vector<24x128xf32>
    %427 = arith.addf %426, %64 : vector<24x128xf32>
    %428 = arith.maximumf %427, %23 : vector<24x128xf32>
    %429 = arith.minimumf %428, %21 : vector<24x128xf32>
    %c1_i32_51 = arith.constant 1 : i32
    %430 = tpu.dynamic_rotate %429 by %c1_i32_51 dim 0 : vector<24x128xf32>, i32 -> vector<24x128xf32>
    %c23_i32_52 = arith.constant 23 : i32
    %431 = tpu.dynamic_rotate %429 by %c23_i32_52 dim 0 : vector<24x128xf32>, i32 -> vector<24x128xf32>
    %432 = vector.broadcast %0 : f32 to vector<24x128xf32>
    %433 = arith.mulf %432, %430 : vector<24x128xf32>
    %434 = vector.broadcast %3 : f32 to vector<24x128xf32>
    %435 = arith.mulf %434, %429 : vector<24x128xf32>
    %436 = arith.addf %433, %435 : vector<24x128xf32>
    %437 = vector.broadcast %6 : f32 to vector<24x128xf32>
    %438 = arith.mulf %437, %431 : vector<24x128xf32>
    %439 = arith.addf %436, %438 : vector<24x128xf32>
    %440 = vector.broadcast %1 : f32 to vector<24x128xf32>
    %441 = arith.mulf %440, %430 : vector<24x128xf32>
    %442 = vector.broadcast %4 : f32 to vector<24x128xf32>
    %443 = arith.mulf %442, %429 : vector<24x128xf32>
    %444 = arith.addf %441, %443 : vector<24x128xf32>
    %445 = vector.broadcast %7 : f32 to vector<24x128xf32>
    %446 = arith.mulf %445, %431 : vector<24x128xf32>
    %447 = arith.addf %444, %446 : vector<24x128xf32>
    %448 = vector.broadcast %2 : f32 to vector<24x128xf32>
    %449 = arith.mulf %448, %430 : vector<24x128xf32>
    %450 = vector.broadcast %5 : f32 to vector<24x128xf32>
    %451 = arith.mulf %450, %429 : vector<24x128xf32>
    %452 = arith.addf %449, %451 : vector<24x128xf32>
    %453 = vector.broadcast %8 : f32 to vector<24x128xf32>
    %454 = arith.mulf %453, %431 : vector<24x128xf32>
    %455 = arith.addf %452, %454 : vector<24x128xf32>
    %c1_i32_53 = arith.constant 1 : i32
    %456 = tpu.dynamic_rotate %439 by %c1_i32_53 dim 1 : vector<24x128xf32>, i32 -> vector<24x128xf32>
    %c127_i32_54 = arith.constant 127 : i32
    %457 = tpu.dynamic_rotate %455 by %c127_i32_54 dim 1 : vector<24x128xf32>, i32 -> vector<24x128xf32>
    %458 = arith.addf %456, %447 : vector<24x128xf32>
    %459 = arith.addf %458, %457 : vector<24x128xf32>
    %460 = arith.addf %459, %64 : vector<24x128xf32>
    %461 = arith.maximumf %460, %23 : vector<24x128xf32>
    %462 = arith.minimumf %461, %21 : vector<24x128xf32>
    %c1_i32_55 = arith.constant 1 : i32
    %463 = tpu.dynamic_rotate %462 by %c1_i32_55 dim 0 : vector<24x128xf32>, i32 -> vector<24x128xf32>
    %c23_i32_56 = arith.constant 23 : i32
    %464 = tpu.dynamic_rotate %462 by %c23_i32_56 dim 0 : vector<24x128xf32>, i32 -> vector<24x128xf32>
    %465 = vector.broadcast %0 : f32 to vector<24x128xf32>
    %466 = arith.mulf %465, %463 : vector<24x128xf32>
    %467 = vector.broadcast %3 : f32 to vector<24x128xf32>
    %468 = arith.mulf %467, %462 : vector<24x128xf32>
    %469 = arith.addf %466, %468 : vector<24x128xf32>
    %470 = vector.broadcast %6 : f32 to vector<24x128xf32>
    %471 = arith.mulf %470, %464 : vector<24x128xf32>
    %472 = arith.addf %469, %471 : vector<24x128xf32>
    %473 = vector.broadcast %1 : f32 to vector<24x128xf32>
    %474 = arith.mulf %473, %463 : vector<24x128xf32>
    %475 = vector.broadcast %4 : f32 to vector<24x128xf32>
    %476 = arith.mulf %475, %462 : vector<24x128xf32>
    %477 = arith.addf %474, %476 : vector<24x128xf32>
    %478 = vector.broadcast %7 : f32 to vector<24x128xf32>
    %479 = arith.mulf %478, %464 : vector<24x128xf32>
    %480 = arith.addf %477, %479 : vector<24x128xf32>
    %481 = vector.broadcast %2 : f32 to vector<24x128xf32>
    %482 = arith.mulf %481, %463 : vector<24x128xf32>
    %483 = vector.broadcast %5 : f32 to vector<24x128xf32>
    %484 = arith.mulf %483, %462 : vector<24x128xf32>
    %485 = arith.addf %482, %484 : vector<24x128xf32>
    %486 = vector.broadcast %8 : f32 to vector<24x128xf32>
    %487 = arith.mulf %486, %464 : vector<24x128xf32>
    %488 = arith.addf %485, %487 : vector<24x128xf32>
    %c1_i32_57 = arith.constant 1 : i32
    %489 = tpu.dynamic_rotate %472 by %c1_i32_57 dim 1 : vector<24x128xf32>, i32 -> vector<24x128xf32>
    %c127_i32_58 = arith.constant 127 : i32
    %490 = tpu.dynamic_rotate %488 by %c127_i32_58 dim 1 : vector<24x128xf32>, i32 -> vector<24x128xf32>
    %491 = arith.addf %489, %480 : vector<24x128xf32>
    %492 = arith.addf %491, %490 : vector<24x128xf32>
    %493 = arith.addf %492, %64 : vector<24x128xf32>
    %494 = arith.maximumf %493, %23 : vector<24x128xf32>
    %495 = arith.minimumf %494, %21 : vector<24x128xf32>
    %c1_i32_59 = arith.constant 1 : i32
    %496 = tpu.dynamic_rotate %495 by %c1_i32_59 dim 0 : vector<24x128xf32>, i32 -> vector<24x128xf32>
    %c23_i32_60 = arith.constant 23 : i32
    %497 = tpu.dynamic_rotate %495 by %c23_i32_60 dim 0 : vector<24x128xf32>, i32 -> vector<24x128xf32>
    %498 = vector.broadcast %0 : f32 to vector<24x128xf32>
    %499 = arith.mulf %498, %496 : vector<24x128xf32>
    %500 = vector.broadcast %3 : f32 to vector<24x128xf32>
    %501 = arith.mulf %500, %495 : vector<24x128xf32>
    %502 = arith.addf %499, %501 : vector<24x128xf32>
    %503 = vector.broadcast %6 : f32 to vector<24x128xf32>
    %504 = arith.mulf %503, %497 : vector<24x128xf32>
    %505 = arith.addf %502, %504 : vector<24x128xf32>
    %506 = vector.broadcast %1 : f32 to vector<24x128xf32>
    %507 = arith.mulf %506, %496 : vector<24x128xf32>
    %508 = vector.broadcast %4 : f32 to vector<24x128xf32>
    %509 = arith.mulf %508, %495 : vector<24x128xf32>
    %510 = arith.addf %507, %509 : vector<24x128xf32>
    %511 = vector.broadcast %7 : f32 to vector<24x128xf32>
    %512 = arith.mulf %511, %497 : vector<24x128xf32>
    %513 = arith.addf %510, %512 : vector<24x128xf32>
    %514 = vector.broadcast %2 : f32 to vector<24x128xf32>
    %515 = arith.mulf %514, %496 : vector<24x128xf32>
    %516 = vector.broadcast %5 : f32 to vector<24x128xf32>
    %517 = arith.mulf %516, %495 : vector<24x128xf32>
    %518 = arith.addf %515, %517 : vector<24x128xf32>
    %519 = vector.broadcast %8 : f32 to vector<24x128xf32>
    %520 = arith.mulf %519, %497 : vector<24x128xf32>
    %521 = arith.addf %518, %520 : vector<24x128xf32>
    %c1_i32_61 = arith.constant 1 : i32
    %522 = tpu.dynamic_rotate %505 by %c1_i32_61 dim 1 : vector<24x128xf32>, i32 -> vector<24x128xf32>
    %c127_i32_62 = arith.constant 127 : i32
    %523 = tpu.dynamic_rotate %521 by %c127_i32_62 dim 1 : vector<24x128xf32>, i32 -> vector<24x128xf32>
    %524 = arith.addf %522, %513 : vector<24x128xf32>
    %525 = arith.addf %524, %523 : vector<24x128xf32>
    %526 = arith.addf %525, %64 : vector<24x128xf32>
    %527 = arith.maximumf %526, %23 : vector<24x128xf32>
    %528 = arith.minimumf %527, %21 : vector<24x128xf32>
    %c1_i32_63 = arith.constant 1 : i32
    %529 = tpu.dynamic_rotate %528 by %c1_i32_63 dim 0 : vector<24x128xf32>, i32 -> vector<24x128xf32>
    %c23_i32_64 = arith.constant 23 : i32
    %530 = tpu.dynamic_rotate %528 by %c23_i32_64 dim 0 : vector<24x128xf32>, i32 -> vector<24x128xf32>
    %531 = vector.broadcast %0 : f32 to vector<24x128xf32>
    %532 = arith.mulf %531, %529 : vector<24x128xf32>
    %533 = vector.broadcast %3 : f32 to vector<24x128xf32>
    %534 = arith.mulf %533, %528 : vector<24x128xf32>
    %535 = arith.addf %532, %534 : vector<24x128xf32>
    %536 = vector.broadcast %6 : f32 to vector<24x128xf32>
    %537 = arith.mulf %536, %530 : vector<24x128xf32>
    %538 = arith.addf %535, %537 : vector<24x128xf32>
    %539 = vector.broadcast %1 : f32 to vector<24x128xf32>
    %540 = arith.mulf %539, %529 : vector<24x128xf32>
    %541 = vector.broadcast %4 : f32 to vector<24x128xf32>
    %542 = arith.mulf %541, %528 : vector<24x128xf32>
    %543 = arith.addf %540, %542 : vector<24x128xf32>
    %544 = vector.broadcast %7 : f32 to vector<24x128xf32>
    %545 = arith.mulf %544, %530 : vector<24x128xf32>
    %546 = arith.addf %543, %545 : vector<24x128xf32>
    %547 = vector.broadcast %2 : f32 to vector<24x128xf32>
    %548 = arith.mulf %547, %529 : vector<24x128xf32>
    %549 = vector.broadcast %5 : f32 to vector<24x128xf32>
    %550 = arith.mulf %549, %528 : vector<24x128xf32>
    %551 = arith.addf %548, %550 : vector<24x128xf32>
    %552 = vector.broadcast %8 : f32 to vector<24x128xf32>
    %553 = arith.mulf %552, %530 : vector<24x128xf32>
    %554 = arith.addf %551, %553 : vector<24x128xf32>
    %c1_i32_65 = arith.constant 1 : i32
    %555 = tpu.dynamic_rotate %538 by %c1_i32_65 dim 1 : vector<24x128xf32>, i32 -> vector<24x128xf32>
    %c127_i32_66 = arith.constant 127 : i32
    %556 = tpu.dynamic_rotate %554 by %c127_i32_66 dim 1 : vector<24x128xf32>, i32 -> vector<24x128xf32>
    %557 = arith.addf %555, %546 : vector<24x128xf32>
    %558 = arith.addf %557, %556 : vector<24x128xf32>
    %559 = arith.addf %558, %64 : vector<24x128xf32>
    %560 = arith.maximumf %559, %23 : vector<24x128xf32>
    %561 = arith.minimumf %560, %21 : vector<24x128xf32>
    %c1_i32_67 = arith.constant 1 : i32
    %562 = tpu.dynamic_rotate %561 by %c1_i32_67 dim 0 : vector<24x128xf32>, i32 -> vector<24x128xf32>
    %c23_i32_68 = arith.constant 23 : i32
    %563 = tpu.dynamic_rotate %561 by %c23_i32_68 dim 0 : vector<24x128xf32>, i32 -> vector<24x128xf32>
    %564 = vector.broadcast %0 : f32 to vector<24x128xf32>
    %565 = arith.mulf %564, %562 : vector<24x128xf32>
    %566 = vector.broadcast %3 : f32 to vector<24x128xf32>
    %567 = arith.mulf %566, %561 : vector<24x128xf32>
    %568 = arith.addf %565, %567 : vector<24x128xf32>
    %569 = vector.broadcast %6 : f32 to vector<24x128xf32>
    %570 = arith.mulf %569, %563 : vector<24x128xf32>
    %571 = arith.addf %568, %570 : vector<24x128xf32>
    %572 = vector.broadcast %1 : f32 to vector<24x128xf32>
    %573 = arith.mulf %572, %562 : vector<24x128xf32>
    %574 = vector.broadcast %4 : f32 to vector<24x128xf32>
    %575 = arith.mulf %574, %561 : vector<24x128xf32>
    %576 = arith.addf %573, %575 : vector<24x128xf32>
    %577 = vector.broadcast %7 : f32 to vector<24x128xf32>
    %578 = arith.mulf %577, %563 : vector<24x128xf32>
    %579 = arith.addf %576, %578 : vector<24x128xf32>
    %580 = vector.broadcast %2 : f32 to vector<24x128xf32>
    %581 = arith.mulf %580, %562 : vector<24x128xf32>
    %582 = vector.broadcast %5 : f32 to vector<24x128xf32>
    %583 = arith.mulf %582, %561 : vector<24x128xf32>
    %584 = arith.addf %581, %583 : vector<24x128xf32>
    %585 = vector.broadcast %8 : f32 to vector<24x128xf32>
    %586 = arith.mulf %585, %563 : vector<24x128xf32>
    %587 = arith.addf %584, %586 : vector<24x128xf32>
    %c1_i32_69 = arith.constant 1 : i32
    %588 = tpu.dynamic_rotate %571 by %c1_i32_69 dim 1 : vector<24x128xf32>, i32 -> vector<24x128xf32>
    %c127_i32_70 = arith.constant 127 : i32
    %589 = tpu.dynamic_rotate %587 by %c127_i32_70 dim 1 : vector<24x128xf32>, i32 -> vector<24x128xf32>
    %590 = arith.addf %588, %579 : vector<24x128xf32>
    %591 = arith.addf %590, %589 : vector<24x128xf32>
    %592 = arith.addf %591, %64 : vector<24x128xf32>
    %593 = arith.maximumf %592, %23 : vector<24x128xf32>
    %594 = arith.minimumf %593, %21 : vector<24x128xf32>
    %c1_i32_71 = arith.constant 1 : i32
    %595 = tpu.dynamic_rotate %594 by %c1_i32_71 dim 0 : vector<24x128xf32>, i32 -> vector<24x128xf32>
    %c23_i32_72 = arith.constant 23 : i32
    %596 = tpu.dynamic_rotate %594 by %c23_i32_72 dim 0 : vector<24x128xf32>, i32 -> vector<24x128xf32>
    %597 = vector.broadcast %0 : f32 to vector<24x128xf32>
    %598 = arith.mulf %597, %595 : vector<24x128xf32>
    %599 = vector.broadcast %3 : f32 to vector<24x128xf32>
    %600 = arith.mulf %599, %594 : vector<24x128xf32>
    %601 = arith.addf %598, %600 : vector<24x128xf32>
    %602 = vector.broadcast %6 : f32 to vector<24x128xf32>
    %603 = arith.mulf %602, %596 : vector<24x128xf32>
    %604 = arith.addf %601, %603 : vector<24x128xf32>
    %605 = vector.broadcast %1 : f32 to vector<24x128xf32>
    %606 = arith.mulf %605, %595 : vector<24x128xf32>
    %607 = vector.broadcast %4 : f32 to vector<24x128xf32>
    %608 = arith.mulf %607, %594 : vector<24x128xf32>
    %609 = arith.addf %606, %608 : vector<24x128xf32>
    %610 = vector.broadcast %7 : f32 to vector<24x128xf32>
    %611 = arith.mulf %610, %596 : vector<24x128xf32>
    %612 = arith.addf %609, %611 : vector<24x128xf32>
    %613 = vector.broadcast %2 : f32 to vector<24x128xf32>
    %614 = arith.mulf %613, %595 : vector<24x128xf32>
    %615 = vector.broadcast %5 : f32 to vector<24x128xf32>
    %616 = arith.mulf %615, %594 : vector<24x128xf32>
    %617 = arith.addf %614, %616 : vector<24x128xf32>
    %618 = vector.broadcast %8 : f32 to vector<24x128xf32>
    %619 = arith.mulf %618, %596 : vector<24x128xf32>
    %620 = arith.addf %617, %619 : vector<24x128xf32>
    %c1_i32_73 = arith.constant 1 : i32
    %621 = tpu.dynamic_rotate %604 by %c1_i32_73 dim 1 : vector<24x128xf32>, i32 -> vector<24x128xf32>
    %c127_i32_74 = arith.constant 127 : i32
    %622 = tpu.dynamic_rotate %620 by %c127_i32_74 dim 1 : vector<24x128xf32>, i32 -> vector<24x128xf32>
    %623 = arith.addf %621, %612 : vector<24x128xf32>
    %624 = arith.addf %623, %622 : vector<24x128xf32>
    %625 = arith.addf %624, %64 : vector<24x128xf32>
    %626 = arith.maximumf %625, %23 : vector<24x128xf32>
    %627 = arith.minimumf %626, %21 : vector<24x128xf32>
    %c1_i32_75 = arith.constant 1 : i32
    %628 = tpu.dynamic_rotate %627 by %c1_i32_75 dim 0 : vector<24x128xf32>, i32 -> vector<24x128xf32>
    %c23_i32_76 = arith.constant 23 : i32
    %629 = tpu.dynamic_rotate %627 by %c23_i32_76 dim 0 : vector<24x128xf32>, i32 -> vector<24x128xf32>
    %630 = vector.broadcast %0 : f32 to vector<24x128xf32>
    %631 = arith.mulf %630, %628 : vector<24x128xf32>
    %632 = vector.broadcast %3 : f32 to vector<24x128xf32>
    %633 = arith.mulf %632, %627 : vector<24x128xf32>
    %634 = arith.addf %631, %633 : vector<24x128xf32>
    %635 = vector.broadcast %6 : f32 to vector<24x128xf32>
    %636 = arith.mulf %635, %629 : vector<24x128xf32>
    %637 = arith.addf %634, %636 : vector<24x128xf32>
    %638 = vector.broadcast %1 : f32 to vector<24x128xf32>
    %639 = arith.mulf %638, %628 : vector<24x128xf32>
    %640 = vector.broadcast %4 : f32 to vector<24x128xf32>
    %641 = arith.mulf %640, %627 : vector<24x128xf32>
    %642 = arith.addf %639, %641 : vector<24x128xf32>
    %643 = vector.broadcast %7 : f32 to vector<24x128xf32>
    %644 = arith.mulf %643, %629 : vector<24x128xf32>
    %645 = arith.addf %642, %644 : vector<24x128xf32>
    %646 = vector.broadcast %2 : f32 to vector<24x128xf32>
    %647 = arith.mulf %646, %628 : vector<24x128xf32>
    %648 = vector.broadcast %5 : f32 to vector<24x128xf32>
    %649 = arith.mulf %648, %627 : vector<24x128xf32>
    %650 = arith.addf %647, %649 : vector<24x128xf32>
    %651 = vector.broadcast %8 : f32 to vector<24x128xf32>
    %652 = arith.mulf %651, %629 : vector<24x128xf32>
    %653 = arith.addf %650, %652 : vector<24x128xf32>
    %c1_i32_77 = arith.constant 1 : i32
    %654 = tpu.dynamic_rotate %637 by %c1_i32_77 dim 1 : vector<24x128xf32>, i32 -> vector<24x128xf32>
    %c127_i32_78 = arith.constant 127 : i32
    %655 = tpu.dynamic_rotate %653 by %c127_i32_78 dim 1 : vector<24x128xf32>, i32 -> vector<24x128xf32>
    %656 = arith.addf %654, %645 : vector<24x128xf32>
    %657 = arith.addf %656, %655 : vector<24x128xf32>
    %658 = arith.addf %657, %64 : vector<24x128xf32>
    %659 = arith.maximumf %658, %23 : vector<24x128xf32>
    %660 = arith.minimumf %659, %21 : vector<24x128xf32>
    %c1_i32_79 = arith.constant 1 : i32
    %661 = tpu.dynamic_rotate %660 by %c1_i32_79 dim 0 : vector<24x128xf32>, i32 -> vector<24x128xf32>
    %c23_i32_80 = arith.constant 23 : i32
    %662 = tpu.dynamic_rotate %660 by %c23_i32_80 dim 0 : vector<24x128xf32>, i32 -> vector<24x128xf32>
    %663 = vector.broadcast %0 : f32 to vector<24x128xf32>
    %664 = arith.mulf %663, %661 : vector<24x128xf32>
    %665 = vector.broadcast %3 : f32 to vector<24x128xf32>
    %666 = arith.mulf %665, %660 : vector<24x128xf32>
    %667 = arith.addf %664, %666 : vector<24x128xf32>
    %668 = vector.broadcast %6 : f32 to vector<24x128xf32>
    %669 = arith.mulf %668, %662 : vector<24x128xf32>
    %670 = arith.addf %667, %669 : vector<24x128xf32>
    %671 = vector.broadcast %1 : f32 to vector<24x128xf32>
    %672 = arith.mulf %671, %661 : vector<24x128xf32>
    %673 = vector.broadcast %4 : f32 to vector<24x128xf32>
    %674 = arith.mulf %673, %660 : vector<24x128xf32>
    %675 = arith.addf %672, %674 : vector<24x128xf32>
    %676 = vector.broadcast %7 : f32 to vector<24x128xf32>
    %677 = arith.mulf %676, %662 : vector<24x128xf32>
    %678 = arith.addf %675, %677 : vector<24x128xf32>
    %679 = vector.broadcast %2 : f32 to vector<24x128xf32>
    %680 = arith.mulf %679, %661 : vector<24x128xf32>
    %681 = vector.broadcast %5 : f32 to vector<24x128xf32>
    %682 = arith.mulf %681, %660 : vector<24x128xf32>
    %683 = arith.addf %680, %682 : vector<24x128xf32>
    %684 = vector.broadcast %8 : f32 to vector<24x128xf32>
    %685 = arith.mulf %684, %662 : vector<24x128xf32>
    %686 = arith.addf %683, %685 : vector<24x128xf32>
    %c1_i32_81 = arith.constant 1 : i32
    %687 = tpu.dynamic_rotate %670 by %c1_i32_81 dim 1 : vector<24x128xf32>, i32 -> vector<24x128xf32>
    %c127_i32_82 = arith.constant 127 : i32
    %688 = tpu.dynamic_rotate %686 by %c127_i32_82 dim 1 : vector<24x128xf32>, i32 -> vector<24x128xf32>
    %689 = arith.addf %687, %678 : vector<24x128xf32>
    %690 = arith.addf %689, %688 : vector<24x128xf32>
    %691 = arith.addf %690, %64 : vector<24x128xf32>
    %692 = arith.maximumf %691, %23 : vector<24x128xf32>
    %693 = arith.minimumf %692, %21 : vector<24x128xf32>
    %c1_i32_83 = arith.constant 1 : i32
    %694 = tpu.dynamic_rotate %693 by %c1_i32_83 dim 0 : vector<24x128xf32>, i32 -> vector<24x128xf32>
    %c23_i32_84 = arith.constant 23 : i32
    %695 = tpu.dynamic_rotate %693 by %c23_i32_84 dim 0 : vector<24x128xf32>, i32 -> vector<24x128xf32>
    %696 = vector.broadcast %0 : f32 to vector<24x128xf32>
    %697 = arith.mulf %696, %694 : vector<24x128xf32>
    %698 = vector.broadcast %3 : f32 to vector<24x128xf32>
    %699 = arith.mulf %698, %693 : vector<24x128xf32>
    %700 = arith.addf %697, %699 : vector<24x128xf32>
    %701 = vector.broadcast %6 : f32 to vector<24x128xf32>
    %702 = arith.mulf %701, %695 : vector<24x128xf32>
    %703 = arith.addf %700, %702 : vector<24x128xf32>
    %704 = vector.broadcast %1 : f32 to vector<24x128xf32>
    %705 = arith.mulf %704, %694 : vector<24x128xf32>
    %706 = vector.broadcast %4 : f32 to vector<24x128xf32>
    %707 = arith.mulf %706, %693 : vector<24x128xf32>
    %708 = arith.addf %705, %707 : vector<24x128xf32>
    %709 = vector.broadcast %7 : f32 to vector<24x128xf32>
    %710 = arith.mulf %709, %695 : vector<24x128xf32>
    %711 = arith.addf %708, %710 : vector<24x128xf32>
    %712 = vector.broadcast %2 : f32 to vector<24x128xf32>
    %713 = arith.mulf %712, %694 : vector<24x128xf32>
    %714 = vector.broadcast %5 : f32 to vector<24x128xf32>
    %715 = arith.mulf %714, %693 : vector<24x128xf32>
    %716 = arith.addf %713, %715 : vector<24x128xf32>
    %717 = vector.broadcast %8 : f32 to vector<24x128xf32>
    %718 = arith.mulf %717, %695 : vector<24x128xf32>
    %719 = arith.addf %716, %718 : vector<24x128xf32>
    %c1_i32_85 = arith.constant 1 : i32
    %720 = tpu.dynamic_rotate %703 by %c1_i32_85 dim 1 : vector<24x128xf32>, i32 -> vector<24x128xf32>
    %c127_i32_86 = arith.constant 127 : i32
    %721 = tpu.dynamic_rotate %719 by %c127_i32_86 dim 1 : vector<24x128xf32>, i32 -> vector<24x128xf32>
    %722 = arith.addf %720, %711 : vector<24x128xf32>
    %723 = arith.addf %722, %721 : vector<24x128xf32>
    %724 = arith.addf %723, %64 : vector<24x128xf32>
    %725 = arith.maximumf %724, %23 : vector<24x128xf32>
    %726 = arith.minimumf %725, %21 : vector<24x128xf32>
    %cst_87 = arith.constant 1.000000e+00 : f32
    %727 = vector.broadcast %cst_87 : f32 to vector<24x128xf32>
    %728 = arith.addf %726, %727 : vector<24x128xf32>
    %cst_88 = arith.constant 5.000000e-01 : f32
    %729 = vector.broadcast %cst_88 : f32 to vector<24x128xf32>
    %730 = arith.mulf %728, %729 : vector<24x128xf32>
    %c0_89 = arith.constant 0 : index
    %c0_90 = arith.constant 0 : index
    %c0_91 = arith.constant 0 : index
    %731 = vector.load %arg4[%c0_89, %c0_90, %c0_91] : memref<1x24x128xf32, #tpu.memory_space<vmem>>, vector<1x24x128xf32>
    %732 = vector.shape_cast %731 : vector<1x24x128xf32> to vector<24x128xf32>
    %733 = vector.shape_cast %730 : vector<24x128xf32> to vector<1x24x128xf32>
    tpu.vector_store %arg4[%c0_89, %c0_90, %c0_91], %733 {strides = array<i32>} : memref<1x24x128xf32, #tpu.memory_space<vmem>>, vector<1x24x128xf32>,
    return
  }
  func.func @transform_0(%arg0: i32) -> (i32, i32, i32) {
    %c0_i32 = arith.constant 0 : i32
    %c0_i32_0 = arith.constant 0 : i32
    %c0_i32_1 = arith.constant 0 : i32
    return %arg0, %c0_i32, %c0_i32_0 : i32, i32, i32
  }
  func.func @transform_1(%arg0: i32) -> (i32, i32) {
    %c0_i32 = arith.constant 0 : i32
    %c0_i32_0 = arith.constant 0 : i32
    %c0_i32_1 = arith.constant 0 : i32
    return %c0_i32, %c0_i32_0 : i32, i32
  }
  func.func @transform_2(%arg0: i32) -> i32 {
    %c0_i32 = arith.constant 0 : i32
    %c0_i32_0 = arith.constant 0 : i32
    return %c0_i32 : i32
  }
  func.func @transform_3(%arg0: i32) -> (i32, i32, i32) {
    %c0_i32 = arith.constant 0 : i32
    %c0_i32_0 = arith.constant 0 : i32
    %c0_i32_1 = arith.constant 0 : i32
    return %arg0, %c0_i32, %c0_i32_0 : i32, i32, i32
  }
}

</mosaic_0001>

<bundles_post_ra>
// kernel: cellnn_forward.1
= control target key start
LH: loop header
LB: loop body
LE: loop exit
PB: predicated region body
PF: predicated region fallthrough
CT: control target
= control target key end

     0   :  { %8 = vsyncpa [#allocation3], 0  ;;  %s3172_s0 = inlined_call_operand.vmem [shape: f32[1,24,128], index: 0, kind: input, shape index: {}, may-alias: {0,3}]   ;;  %s3173_s1 = inlined_call_operand.vmem [shape: f32[24,128], index: 1, kind: input, shape index: {}]   ;;  %s3174_s2 = inlined_call_operand.vmem [shape: f32[21], index: 2, kind: input, shape index: {}]   ;;  %s3175_s3 = inlined_call_operand.vmem [shape: f32[1,24,128], index: 3, kind: output, shape index: {}, may-alias: {0,3}]  }
   0x1   :  { %s19_s14 = sshll.u32 %s3174_s2, 4  ;;  %s20_s14 = int_to_ptr.vmem [resolvable:$true] %s19_s14 }
   0x2   :  { %s1907_s15 = scalar_lea.vmem %s20_s14, 16  ;;  %p1912_p1 = scmp.lt.s32.totalorder %s20_s14, %s20_s14 }
   0x3   :  { %p1908_p0 = scmp.ne.s32.totalorder %s20_s14, %s1907_s15  ;;  %p1913_p2 = scmp.lt.s32.totalorder %s1907_s15, %s1907_s15 }
   0x5   :  { %p1914_p3 = por %p1913_p2, %p1912_p1 }
   0x7   :  { %p1915_p4 = pnand %p1914_p3, %p1908_p0 }
   0x9   :  { %1918 = shalt.err (!%p1915_p4)
}
   0xa   :  { %s1921_s16 = smov [#allocation2]  }
   0xb   :  { %22 = dma.vmem_to_smem %s20_s14, 16, %s1921_s16, [#allocation3]  }
   0xc   :  { %1919 = dma.done.wait [#allocation3], 16  }
   0xd   :  { %1920 = vsyncadd [#allocation3], 4294967280 }
   0xe   :  { %26 = sfence }
   0xf   :  { %s1890_s17 = sld [smem:[#allocation2 + $0x13]]  ;;  %s1891_s18 = sld [smem:[#allocation2 + $0x14]]  ;;  %v74_v0 = vlaneseq  ;;  %v54_v1 = vld [vmem:[%s3172_s0] sm:$0xff]  ;;  %v55_v2 = vld [vmem:[%s3172_s0 + $0x8] sm:$0xff]  ;;  %v56_v3 = vld [vmem:[%s3172_s0 + $0x10] sm:$0xff] }
  0x10   :  { %s1880_s19 = sld [smem:[#allocation2 + $0x9]]  ;;  %s1883_s20 = sld [smem:[#allocation2 + $0xc]]  ;;  %v1961_v13 = vld [vmem:[%s3173_s1] sm:$0xff]  ;;  %v1966_v14 = vld [vmem:[%s3173_s1 + $0x8] sm:$0xff]  ;;  %v1971_v15 = vld [vmem:[%s3173_s1 + $0x10] sm:$0xff] }
  0x11   :  { %s1886_s21 = sld [smem:[#allocation2 + $0xf]]  ;;  %s1882_s27 = sld [smem:[#allocation2 + $0xb]]  ;;  %v1956_v5 = vshrl.u32 %v74_v0, 7 }
  0x12   :  { %s1885_s28 = sld [smem:[#allocation2 + $0xe]]  ;;  %s1888_s29 = sld [smem:[#allocation2 + $0x11]] }
  0x13   :  { %s1881_s30 = sld [smem:[#allocation2 + $0xa]]  ;;  %s1884_s4 = sld [smem:[#allocation2 + $0xd]]  ;;  %vm76_vm0 = vcmp.lt.s32.totalorder %v1956_v5, 1  ;;  %vm83_vm1 = vcmp.lt.s32.totalorder %v1956_v5, 7 }
  0x14   :  { %s1887_s5 = sld [smem:[#allocation2 + $0x10]]  ;;  %s1922_s11 = smov 1  }
  0x15   :  { %v57_v4 = vstv %s1890_s17  ;;  %v61_v9 = vstv %s1891_s18  ;;  %s1923_s12 = smov 127   ;;  %s1889_s13 = sld [smem:[#allocation2 + $0x12]] }
  0x16   :  { %v58_v6 = vsub.f32 %v54_v1, %v57_v4  ;;  %v59_v7 = vsub.f32 %v55_v2, %v57_v4  ;;  %v60_v8 = vsub.f32 %v56_v3, %v57_v4  ;;  %v87_v19 = vstv %s1880_s19  ;;  %s1874_s14 = sld [smem:[#allocation2 + $0x3]]  ;;  %s27_s15 = sld [smem:[#allocation2]] }
  0x17   :  { %v91_v20 = vstv %s1883_s20  ;;  %v98_v21 = vstv %s1886_s21  ;;  %v123_v22 = vstv %s1882_s27  ;;  %s1876_s16 = sld [smem:[#allocation2 + $0x5]]  ;;  %s1877_s17 = sld [smem:[#allocation2 + $0x6]] }
  0x18   :  { %v62_v10 = vmul.f32 %v61_v9, %v58_v6  ;;  %v63_v11 = vmul.f32 %v61_v9, %v59_v7  ;;  %v64_v12 = vmul.f32 %v61_v9, %v60_v8  ;;  %v127_v26 = vstv %s1885_s28  ;;  %s1873_s18 = sld [smem:[#allocation2 + $0x2]]  ;;  %s1879_s19 = sld [smem:[#allocation2 + $0x8]] }
  0x19   :  { %v134_v27 = vstv %s1888_s29  ;;  %v105_v28 = vstv %s1881_s30  ;;  %v109_v29 = vstv %s1884_s4  ;;  %s1875_s20 = sld [smem:[#allocation2 + $0x4]]  ;;  %s1872_s21 = sld [smem:[#allocation2 + $0x1]] }
  0x1a   :  { %v1892_v16 = vadd.f32 -1.0, %v62_v10  ;;  %v1893_v17 = vadd.f32 -1.0, %v63_v11  ;;  %v1894_v18 = vadd.f32 -1.0, %v64_v12  ;;  %v116_v30 = vstv %s1887_s5  ;;  %s1878_s2 = sld [smem:[#allocation2 + $0x7]] }
  0x1c   :  { %v68_v23 = vmul.f32 %v1892_v16, %v1961_v13  ;;  %v69_v24 = vmul.f32 %v1893_v17, %v1966_v14  ;;  %v70_v25 = vmul.f32 %v1894_v18, %v1971_v15 }
  0x1e   :  { %v72_v31 = vrot.slane %v69_v24, 7  ;;  %v73_v32 = vrot.slane %v70_v25, 7  ;;  %v80_v33 = vrot.slane %v68_v23, 1  ;;  %v82_v34 = vrot.slane %v70_v25, 1 }
  0x1f   :  { %v94_v35 = vmul.f32 %v91_v20, %v70_v25  ;;  %v71_v36 = vrot.slane %v68_v23, 7  ;;  %v81_v37 = vrot.slane %v69_v24, 1  ;;  %v92_v38 = vmul.f32 %v91_v20, %v68_v23 }
  0x20   :  { %v77_v39 = vsel %vm76_vm0, %v72_v31, %v73_v32  ;;  %v86_v40 = vsel %vm83_vm1, %v82_v34, %v80_v33  ;;  %v128_v41 = vmul.f32 %v127_v26, %v68_v23  ;;  %v93_v42 = vmul.f32 %v91_v20, %v69_v24 }
  0x21   :  { %v90_v43 = vmul.f32 %v87_v19, %v77_v39  ;;  %v101_v44 = vmul.f32 %v98_v21, %v86_v40  ;;  %v79_v45 = vsel %vm76_vm0, %v73_v32, %v71_v36  ;;  %v85_v46 = vsel %vm83_vm1, %v80_v33, %v81_v37 }
  0x22   :  { %v88_v47 = vmul.f32 %v87_v19, %v79_v45  ;;  %v99_v48 = vmul.f32 %v98_v21, %v85_v46  ;;  %v124_v49 = vmul.f32 %v123_v22, %v79_v45  ;;  %v135_v50 = vmul.f32 %v134_v27, %v85_v46 }
  0x23   :  { %v97_v51 = vadd.f32 %v94_v35, %v90_v43  ;;  %v78_v52 = vsel %vm76_vm0, %v71_v36, %v72_v31  ;;  %v84_v53 = vsel %vm83_vm1, %v81_v37, %v82_v34  ;;  %v126_v54 = vmul.f32 %v123_v22, %v77_v39 }
  0x24   :  { %v95_v55 = vadd.f32 %v92_v38, %v88_v47  ;;  %v131_v56 = vadd.f32 %v128_v41, %v124_v49  ;;  %v89_v57 = vmul.f32 %v87_v19, %v78_v52  ;;  %v100_v58 = vmul.f32 %v98_v21, %v84_v53 }
  0x25   :  { %v104_v59 = vadd.f32 %v101_v44, %v97_v51  ;;  %v130_v60 = vmul.f32 %v127_v26, %v70_v25  ;;  %v137_v61 = vmul.f32 %v134_v27, %v86_v40  ;;  %v125_v62 = vmul.f32 %v123_v22, %v78_v52 }
  0x26   :  { %v102_v63 = vadd.f32 %v99_v48, %v95_v55  ;;  %v138_v0 = vadd.f32 %v135_v50, %v131_v56  ;;  %v96_v1 = vadd.f32 %v93_v42, %v89_v57  ;;  %v129_v2 = vmul.f32 %v127_v26, %v69_v24 }
  0x27   :  { %145 = vrot.lane.b32.xlu1 %v104_v59, %s1922_s11  ;;  %v133_v3 = vadd.f32 %v130_v60, %v126_v54  ;;  %v136_v4 = vmul.f32 %v134_v27, %v84_v53  ;;  %v108_v6 = vmul.f32 %v105_v28, %v77_v39  ;;  %v112_v7 = vmul.f32 %v109_v29, %v70_v25 }
  0x28   :  { %141 = vrot.lane.b32.xlu0 %v102_v63, %s1922_s11  ;;  %v103_v8 = vadd.f32 %v100_v58, %v96_v1  ;;  %v132_v9 = vadd.f32 %v129_v2, %v125_v62  ;;  %v119_v10 = vmul.f32 %v116_v30, %v86_v40  ;;  %v106_v11 = vmul.f32 %v105_v28, %v79_v45 }
  0x29   :  { %v115_v12 = vadd.f32 %v112_v7, %v108_v6  ;;  %v110_v16 = vmul.f32 %v109_v29, %v68_v23  ;;  %v117_v17 = vmul.f32 %v116_v30, %v85_v46  ;;  %v107_v18 = vmul.f32 %v105_v28, %v78_v52 }
  0x2a   :  { %v111_v19 = vmul.f32 %v109_v29, %v69_v24  ;;  %v140_v20 = vadd.f32 %v137_v61, %v133_v3  ;;  %v118_v26 = vmul.f32 %v116_v30, %v84_v53  ;;  %v139_v25 = vadd.f32 %v136_v4, %v132_v9 }
  0x2b   :  { %147 = vrot.lane.b32.xlu1 %v138_v0, %s1923_s12  ;;  %v122_v21 = vadd.f32 %v119_v10, %v115_v12  ;;  %v113_v22 = vadd.f32 %v110_v16, %v106_v11  ;;  %v159_v29 = vstv %s1889_s13  ;;  %v1997_v30 = vsub.f32 0.0, %v1961_v13 }
  0x2c   :  { %143 = vrot.lane.b32.xlu0 %v103_v8, %s1922_s11  ;;  %v114_v27 = vadd.f32 %v111_v19, %v107_v18  ;;  %v2002_v42 = vsub.f32 0.0, %v1971_v15  ;;  %v2007_v45 = vsub.f32 0.0, %v1966_v14  ;;  %v2018_v51 = vstv %s1874_s14 }
  0x2d   :  { %v120_v31 = vadd.f32 %v117_v17, %v113_v22  ;;  %v2021_v53 = vstv %s27_s15  ;;  %v2023_v54 = vstv %s1877_s17  ;;  %v2025_v55 = vstv %s1873_s18 }
  0x2e   :  { %v121_v32 = vadd.f32 %v118_v26, %v114_v27  ;;  %v2028_v57 = vstv %s1876_s16  ;;  %v2030_v58 = vstv %s1879_s19  ;;  %v2032_v59 = vstv %s1875_s20 }
  0x2f   :  { %151 = vrot.lane.b32.xlu1 %v140_v20, %s1923_s12  ;;  %v2034_v63 = vstv %s1872_s21  ;;  %v2036_v3 = vstv %s1878_s2 }
  0x30   :  { %149 = vrot.lane.b32.xlu0 %v139_v25, %s1923_s12 }
  0x99   :  { %v146_v23 = vpop.permute.xlu1 %145 }
  0x9a   :  { %v142_v24 = vpop.permute.xlu0 %141  ;;  %v155_v36 = vadd.f32 %v146_v23, %v122_v21 }
  0x9b   :  { %v153_v28 = vadd.f32 %v142_v24, %v120_v31 }
  0x9d   :  { %v148_v33 = vpop.permute.xlu1 %147 }
  0x9e   :  { %v156_v34 = vadd.f32 %v153_v28, %v148_v33  ;;  %v144_v35 = vpop.permute.xlu0 %143 }
  0x9f   :  { %v154_v38 = vadd.f32 %v144_v35, %v121_v32 }
  0xa0   :  { %v1999_v37 = vadd.f32 %v159_v29, %v156_v34 }
  0xa1   :  { %v152_v39 = vpop.permute.xlu1 %151 }
  0xa2   :  { %v158_v40 = vadd.f32 %v155_v36, %v152_v39  ;;  %v150_v41 = vpop.permute.xlu0 %149  ;;  %v163_v43 = vmax.f32 %v1999_v37, %v1997_v30 }
  0xa3   :  { %v157_v44 = vadd.f32 %v154_v38, %v150_v41 }
  0xa4   :  { %v2009_v46 = vadd.f32 %v159_v29, %v158_v40  ;;  %v166_v49 = vmin.f32 %v163_v43, %v1961_v13 }
  0xa5   :  { %v2011_v47 = vadd.f32 %v159_v29, %v157_v44 }
  0xa6   :  { %v165_v48 = vmax.f32 %v2009_v46, %v2002_v42  ;;  %v169_v60 = vrot.slane %v166_v49, 7  ;;  %v175_v2 = vrot.slane %v166_v49, 1  ;;  %v186_v6 = vmul.f32 %v2018_v51, %v166_v49 }
  0xa7   :  { %v164_v50 = vmax.f32 %v2011_v47, %v2007_v45  ;;  %v222_v7 = vmul.f32 %v2028_v57, %v166_v49  ;;  %v204_v8 = vmul.f32 %v2032_v59, %v166_v49 }
  0xa8   :  { %v168_v52 = vmin.f32 %v165_v48, %v1971_v15 }
  0xa9   :  { %v167_v56 = vmin.f32 %v164_v50, %v1966_v14 }
  0xaa   :  { %v177_v61 = vrot.slane %v168_v52, 1  ;;  %v171_v62 = vrot.slane %v168_v52, 7  ;;  %v188_v19 = vmul.f32 %v2018_v51, %v168_v52  ;;  %v224_v26 = vmul.f32 %v2028_v57, %v168_v52 }
  0xab   :  { %v170_v0 = vrot.slane %v167_v56, 7  ;;  %v176_v1 = vrot.slane %v167_v56, 1  ;;  %v187_v17 = vmul.f32 %v2018_v51, %v167_v56  ;;  %v223_v28 = vmul.f32 %v2028_v57, %v167_v56 }
  0xac   :  { %v174_v4 = vsel %vm76_vm0, %v171_v62, %v169_v60  ;;  %v180_v31 = vsel %vm83_vm1, %v177_v61, %v175_v2  ;;  %v205_v29 = vmul.f32 %v2032_v59, %v167_v56  ;;  %v206_v41 = vmul.f32 %v2032_v59, %v168_v52 }
  0xad   :  { %v173_v9 = vsel %vm76_vm0, %v169_v60, %v170_v0  ;;  %v178_v10 = vsel %vm83_vm1, %v176_v1, %v177_v61  ;;  %v179_v11 = vsel %vm83_vm1, %v175_v2, %v176_v1  ;;  %v182_v12 = vmul.f32 %v2021_v53, %v174_v4 }
  0xae   :  { %v183_v16 = vmul.f32 %v2021_v53, %v173_v9  ;;  %v218_v18 = vmul.f32 %v2025_v55, %v174_v4  ;;  %v193_v21 = vmul.f32 %v2023_v54, %v179_v11  ;;  %v172_v22 = vsel %vm76_vm0, %v170_v0, %v171_v62 }
  0xaf   :  { %v189_v20 = vadd.f32 %v186_v6, %v182_v12  ;;  %v194_v27 = vmul.f32 %v2023_v54, %v178_v10  ;;  %v184_v32 = vmul.f32 %v2021_v53, %v172_v22  ;;  %v219_v24 = vmul.f32 %v2025_v55, %v173_v9 }
  0xb0   :  { %v190_v25 = vadd.f32 %v187_v17, %v183_v16  ;;  %v225_v34 = vadd.f32 %v222_v7, %v218_v18  ;;  %v220_v36 = vmul.f32 %v2025_v55, %v172_v22  ;;  %v195_v38 = vmul.f32 %v2023_v54, %v180_v31 }
  0xb1   :  { %v196_v23 = vadd.f32 %v193_v21, %v189_v20  ;;  %v191_v35 = vadd.f32 %v188_v19, %v184_v32  ;;  %v201_v39 = vmul.f32 %v2034_v63, %v173_v9  ;;  %v200_v40 = vmul.f32 %v2034_v63, %v174_v4 }
  0xb2   :  { %v197_v33 = vadd.f32 %v194_v27, %v190_v25  ;;  %v229_v43 = vmul.f32 %v2030_v58, %v179_v11  ;;  %v226_v44 = vadd.f32 %v223_v28, %v219_v24  ;;  %v212_v48 = vmul.f32 %v2036_v3, %v178_v10 }
  0xb3   :  { %235 = vrot.lane.b32.xlu0 %v196_v23, %s1922_s11  ;;  %v202_v49 = vmul.f32 %v2034_v63, %v172_v22  ;;  %v198_v50 = vadd.f32 %v195_v38, %v191_v35  ;;  %v208_v56 = vadd.f32 %v205_v29, %v201_v39  ;;  %v207_v60 = vadd.f32 %v204_v8, %v200_v40 }
  0xb4   :  { %237 = vrot.lane.b32.xlu1 %v197_v33, %s1922_s11  ;;  %v211_v61 = vmul.f32 %v2036_v3, %v179_v11  ;;  %v232_v62 = vadd.f32 %v229_v43, %v225_v34  ;;  %v227_v0 = vadd.f32 %v224_v26, %v220_v36  ;;  %v213_v2 = vmul.f32 %v2036_v3, %v180_v31 }
  0xb5   :  { %v209_v1 = vadd.f32 %v206_v41, %v202_v49  ;;  %v230_v52 = vmul.f32 %v2030_v58, %v178_v10  ;;  %v215_v4 = vadd.f32 %v212_v48, %v208_v56  ;;  %v231_v7 = vmul.f32 %v2030_v58, %v180_v31 }
  0xb6   :  { %v214_v6 = vadd.f32 %v211_v61, %v207_v60 }
  0xb7   :  { %239 = vrot.lane.b32.xlu0 %v198_v50, %s1922_s11  ;;  %v216_v9 = vadd.f32 %v213_v2, %v209_v1  ;;  %v233_v12 = vadd.f32 %v230_v52, %v226_v44  ;;  %v234_v8 = vadd.f32 %v231_v7, %v227_v0 }
  0xb8   :  { %241 = vrot.lane.b32.xlu1 %v232_v62, %s1923_s12 }
  0xbb   :  { %243 = vrot.lane.b32.xlu0 %v233_v12, %s1923_s12 }
  0xbc   :  { %245 = vrot.lane.b32.xlu1 %v234_v8, %s1923_s12 }
 0x125   :  { %v236_v11 = vpop.permute.xlu0 %235 }
 0x126   :  { %v238_v16 = vpop.permute.xlu1 %237  ;;  %v247_v17 = vadd.f32 %v236_v11, %v214_v6 }
 0x127   :  { %v248_v10 = vadd.f32 %v238_v16, %v215_v4 }
 0x129   :  { %v240_v18 = vpop.permute.xlu0 %239 }
 0x12a   :  { %v242_v19 = vpop.permute.xlu1 %241  ;;  %v249_v22 = vadd.f32 %v240_v18, %v216_v9 }
 0x12b   :  { %v250_v20 = vadd.f32 %v247_v17, %v242_v19 }
 0x12d   :  { %v253_v21 = vadd.f32 %v250_v20, %v1999_v37  ;;  %v244_v26 = vpop.permute.xlu0 %243 }
 0x12e   :  { %v246_v25 = vpop.permute.xlu1 %245  ;;  %v251_v27 = vadd.f32 %v248_v10, %v244_v26 }
 0x12f   :  { %v256_v31 = vmax.f32 %v253_v21, %v1997_v30  ;;  %v252_v32 = vadd.f32 %v249_v22, %v246_v25 }
 0x130   :  { %v254_v23 = vadd.f32 %v251_v27, %v2011_v47 }
 0x131   :  { %v259_v24 = vmin.f32 %v256_v31, %v1961_v13  ;;  %v255_v28 = vadd.f32 %v252_v32, %v2009_v46 }
 0x132   :  { %v257_v29 = vmax.f32 %v254_v23, %v2007_v45 }
 0x133   :  { %v258_v33 = vmax.f32 %v255_v28, %v2002_v42  ;;  %v262_v35 = vrot.slane %v259_v24, 7  ;;  %v268_v38 = vrot.slane %v259_v24, 1  ;;  %v277_v39 = vmul.f32 %v259_v24, %v2018_v51 }
 0x134   :  { %v260_v34 = vmin.f32 %v257_v29, %v1966_v14  ;;  %v307_v40 = vmul.f32 %v259_v24, %v2028_v57  ;;  %v292_v48 = vmul.f32 %v259_v24, %v2032_v59 }
 0x135   :  { %v261_v36 = vmin.f32 %v258_v33, %v1971_v15 }
 0x136   :  { %v269_v41 = vrot.slane %v260_v34, 1  ;;  %v263_v43 = vrot.slane %v260_v34, 7  ;;  %v278_v44 = vmul.f32 %v260_v34, %v2018_v51  ;;  %v308_v60 = vmul.f32 %v260_v34, %v2028_v57 }
 0x137   :  { %v264_v49 = vrot.slane %v261_v36, 7  ;;  %v270_v50 = vrot.slane %v261_v36, 1  ;;  %v279_v56 = vmul.f32 %v261_v36, %v2018_v51  ;;  %v309_v0 = vmul.f32 %v261_v36, %v2028_v57 }
 0x138   :  { %v272_v61 = vsel %vm83_vm1, %v268_v38, %v269_v41  ;;  %v266_v62 = vsel %vm76_vm0, %v262_v35, %v263_v43  ;;  %v293_v1 = vmul.f32 %v260_v34, %v2032_v59  ;;  %v294_v6 = vmul.f32 %v261_v36, %v2032_v59 }
 0x139   :  { %v267_v2 = vsel %vm76_vm0, %v264_v49, %v262_v35  ;;  %v271_v52 = vsel %vm83_vm1, %v269_v41, %v270_v50  ;;  %v275_v4 = vmul.f32 %v266_v62, %v2021_v53  ;;  %v283_v9 = vmul.f32 %v272_v61, %v2023_v54 }
 0x13a   :  { %v274_v7 = vmul.f32 %v267_v2, %v2021_v53  ;;  %v284_v12 = vmul.f32 %v271_v52, %v2023_v54  ;;  %v304_v8 = vmul.f32 %v267_v2, %v2025_v55  ;;  %v265_v16 = vsel %vm76_vm0, %v263_v43, %v264_v49 }
 0x13b   :  { %v281_v11 = vadd.f32 %v278_v44, %v275_v4  ;;  %v273_v17 = vsel %vm83_vm1, %v270_v50, %v268_v38  ;;  %v305_v18 = vmul.f32 %v266_v62, %v2025_v55  ;;  %v313_v10 = vmul.f32 %v272_v61, %v2030_v58 }
 0x13c   :  { %v280_v19 = vadd.f32 %v277_v39, %v274_v7  ;;  %v310_v20 = vadd.f32 %v307_v40, %v304_v8  ;;  %v276_v21 = vmul.f32 %v265_v16, %v2021_v53  ;;  %v285_v26 = vmul.f32 %v273_v17, %v2023_v54 }
 0x13d   :  { %v287_v22 = vadd.f32 %v284_v12, %v281_v11  ;;  %v306_v25 = vmul.f32 %v265_v16, %v2025_v55  ;;  %v311_v27 = vadd.f32 %v308_v60, %v305_v18  ;;  %v314_v24 = vmul.f32 %v271_v52, %v2030_v58 }
 0x13e   :  { %v286_v31 = vadd.f32 %v283_v9, %v280_v19  ;;  %v316_v32 = vadd.f32 %v313_v10, %v310_v20  ;;  %v282_v23 = vadd.f32 %v279_v56, %v276_v21  ;;  %v315_v29 = vmul.f32 %v273_v17, %v2030_v58 }
 0x13f   :  { %321 = vrot.lane.b32.xlu1 %v287_v22, %s1922_s11  ;;  %v312_v28 = vadd.f32 %v309_v0, %v306_v25  ;;  %v289_v33 = vmul.f32 %v267_v2, %v2034_v63  ;;  %v290_v34 = vmul.f32 %v266_v62, %v2034_v63  ;;  %v317_v36 = vadd.f32 %v314_v24, %v311_v27 }
 0x140   :  { %319 = vrot.lane.b32.xlu0 %v286_v31, %s1922_s11  ;;  %v288_v35 = vadd.f32 %v285_v26, %v282_v23  ;;  %v298_v38 = vmul.f32 %v272_v61, %v2036_v3  ;;  %v291_v39 = vmul.f32 %v265_v16, %v2034_v63  ;;  %v299_v44 = vmul.f32 %v271_v52, %v2036_v3 }
 0x141   :  { %v318_v40 = vadd.f32 %v315_v29, %v312_v28  ;;  %v295_v41 = vadd.f32 %v292_v48, %v289_v33  ;;  %v296_v43 = vadd.f32 %v293_v1, %v290_v34  ;;  %v300_v50 = vmul.f32 %v273_v17, %v2036_v3 }
 0x142   :  { %v297_v49 = vadd.f32 %v294_v6, %v291_v39 }
 0x143   :  { %325 = vrot.lane.b32.xlu1 %v316_v32, %s1923_s12  ;;  %v301_v56 = vadd.f32 %v298_v38, %v295_v41  ;;  %v302_v60 = vadd.f32 %v299_v44, %v296_v43 }
 0x144   :  { %323 = vrot.lane.b32.xlu0 %v288_v35, %s1922_s11  ;;  %v303_v62 = vadd.f32 %v300_v50, %v297_v49 }
 0x147   :  { %329 = vrot.lane.b32.xlu1 %v318_v40, %s1923_s12 }
 0x148   :  { %327 = vrot.lane.b32.xlu0 %v317_v36, %s1923_s12 }
 0x1b1   :  { %v322_v61 = vpop.permute.xlu1 %321 }
 0x1b2   :  { %v320_v0 = vpop.permute.xlu0 %319  ;;  %v332_v7 = vadd.f32 %v322_v61, %v302_v60 }
 0x1b3   :  { %v331_v48 = vadd.f32 %v320_v0, %v301_v56 }
 0x1b5   :  { %v326_v1 = vpop.permute.xlu1 %325 }
 0x1b6   :  { %v334_v2 = vadd.f32 %v331_v48, %v326_v1  ;;  %v324_v52 = vpop.permute.xlu0 %323 }
 0x1b7   :  { %v333_v6 = vadd.f32 %v324_v52, %v303_v62 }
 0x1b8   :  { %v337_v4 = vadd.f32 %v334_v2, %v1999_v37 }
 0x1b9   :  { %v330_v9 = vpop.permute.xlu1 %329 }
 0x1ba   :  { %v340_v12 = vmax.f32 %v337_v4, %v1997_v30  ;;  %v336_v8 = vadd.f32 %v333_v6, %v330_v9  ;;  %v328_v11 = vpop.permute.xlu0 %327 }
 0x1bb   :  { %v335_v16 = vadd.f32 %v332_v7, %v328_v11 }
 0x1bc   :  { %v343_v17 = vmin.f32 %v340_v12, %v1961_v13  ;;  %v339_v18 = vadd.f32 %v336_v8, %v2009_v46 }
 0x1bd   :  { %v338_v19 = vadd.f32 %v335_v16, %v2011_v47 }
 0x1be   :  { %v342_v20 = vmax.f32 %v339_v18, %v2002_v42  ;;  %v346_v22 = vrot.slane %v343_v17, 7  ;;  %v352_v25 = vrot.slane %v343_v17, 1  ;;  %v361_v27 = vmul.f32 %v343_v17, %v2018_v51 }
 0x1bf   :  { %v341_v10 = vmax.f32 %v338_v19, %v2007_v45  ;;  %v391_v31 = vmul.f32 %v343_v17, %v2028_v57  ;;  %v376_v28 = vmul.f32 %v343_v17, %v2032_v59 }
 0x1c0   :  { %v345_v21 = vmin.f32 %v342_v20, %v1971_v15 }
 0x1c1   :  { %v344_v26 = vmin.f32 %v341_v10, %v1966_v14 }
 0x1c2   :  { %v348_v32 = vrot.slane %v345_v21, 7  ;;  %v354_v23 = vrot.slane %v345_v21, 1  ;;  %v363_v24 = vmul.f32 %v345_v21, %v2018_v51  ;;  %v393_v35 = vmul.f32 %v345_v21, %v2028_v57 }
 0x1c3   :  { %v353_v29 = vrot.slane %v344_v26, 1  ;;  %v347_v33 = vrot.slane %v344_v26, 7  ;;  %v362_v34 = vmul.f32 %v344_v26, %v2018_v51  ;;  %v392_v39 = vmul.f32 %v344_v26, %v2028_v57 }
 0x1c4   :  { %v351_v36 = vsel %vm76_vm0, %v348_v32, %v346_v22  ;;  %v357_v38 = vsel %vm83_vm1, %v354_v23, %v352_v25  ;;  %v377_v40 = vmul.f32 %v344_v26, %v2032_v59  ;;  %v378_v62 = vmul.f32 %v345_v21, %v2032_v59 }
 0x1c5   :  { %v356_v41 = vsel %vm83_vm1, %v352_v25, %v353_v29  ;;  %v358_v43 = vmul.f32 %v351_v36, %v2021_v53  ;;  %v350_v44 = vsel %vm76_vm0, %v346_v22, %v347_v33  ;;  %v355_v49 = vsel %vm83_vm1, %v353_v29, %v354_v23 }
 0x1c6   :  { %v367_v50 = vmul.f32 %v356_v41, %v2023_v54  ;;  %v359_v56 = vmul.f32 %v350_v44, %v2021_v53  ;;  %v388_v60 = vmul.f32 %v351_v36, %v2025_v55  ;;  %v368_v0 = vmul.f32 %v355_v49, %v2023_v54 }
 0x1c7   :  { %v364_v61 = vadd.f32 %v361_v27, %v358_v43  ;;  %v397_v48 = vmul.f32 %v356_v41, %v2030_v58  ;;  %v349_v1 = vsel %vm76_vm0, %v347_v33, %v348_v32  ;;  %v369_v9 = vmul.f32 %v357_v38, %v2023_v54 }
 0x1c8   :  { %v365_v2 = vadd.f32 %v362_v34, %v359_v56  ;;  %v394_v52 = vadd.f32 %v391_v31, %v388_v60  ;;  %v360_v4 = vmul.f32 %v349_v1, %v2021_v53  ;;  %v390_v6 = vmul.f32 %v349_v1, %v2025_v55 }
 0x1c9   :  { %v370_v7 = vadd.f32 %v367_v50, %v364_v61  ;;  %v399_v12 = vmul.f32 %v357_v38, %v2030_v58  ;;  %v389_v8 = vmul.f32 %v350_v44, %v2025_v55  ;;  %v398_v20 = vmul.f32 %v355_v49, %v2030_v58 }
 0x1ca   :  { %v371_v11 = vadd.f32 %v368_v0, %v365_v2  ;;  %v400_v16 = vadd.f32 %v397_v48, %v394_v52  ;;  %v366_v17 = vadd.f32 %v363_v24, %v360_v4  ;;  %v396_v18 = vadd.f32 %v393_v35, %v390_v6 }
 0x1cb   :  { %403 = vrot.lane.b32.xlu0 %v370_v7, %s1922_s11  ;;  %v395_v19 = vadd.f32 %v392_v39, %v389_v8  ;;  %v373_v10 = vmul.f32 %v351_v36, %v2034_v63  ;;  %v374_v21 = vmul.f32 %v350_v44, %v2034_v63  ;;  %v382_v25 = vmul.f32 %v356_v41, %v2036_v3 }
 0x1cc   :  { %405 = vrot.lane.b32.xlu1 %v371_v11, %s1922_s11  ;;  %v372_v22 = vadd.f32 %v369_v9, %v366_v17  ;;  %v402_v26 = vadd.f32 %v399_v12, %v396_v18  ;;  %v375_v27 = vmul.f32 %v349_v1, %v2034_v63  ;;  %v383_v24 = vmul.f32 %v355_v49, %v2036_v3 }
 0x1cd   :  { %v401_v31 = vadd.f32 %v398_v20, %v395_v19  ;;  %v379_v32 = vadd.f32 %v376_v28, %v373_v10  ;;  %v380_v23 = vadd.f32 %v377_v40, %v374_v21  ;;  %v384_v33 = vmul.f32 %v357_v38, %v2036_v3 }
 0x1ce   :  { %v381_v29 = vadd.f32 %v378_v62, %v375_v27 }
 0x1cf   :  { %407 = vrot.lane.b32.xlu0 %v372_v22, %s1922_s11  ;;  %v385_v34 = vadd.f32 %v382_v25, %v379_v32  ;;  %v386_v35 = vadd.f32 %v383_v24, %v380_v23 }
 0x1d0   :  { %409 = vrot.lane.b32.xlu1 %v400_v16, %s1923_s12  ;;  %v387_v36 = vadd.f32 %v384_v33, %v381_v29 }
 0x1d3   :  { %411 = vrot.lane.b32.xlu0 %v401_v31, %s1923_s12 }
 0x1d4   :  { %413 = vrot.lane.b32.xlu1 %v402_v26, %s1923_s12 }
 0x23d   :  { %v404_v39 = vpop.permute.xlu0 %403 }
 0x23e   :  { %v406_v41 = vpop.permute.xlu1 %405  ;;  %v415_v28 = vadd.f32 %v404_v39, %v385_v34 }
 0x23f   :  { %v416_v49 = vadd.f32 %v406_v41, %v386_v35 }
 0x241   :  { %v408_v40 = vpop.permute.xlu0 %407 }
 0x242   :  { %v410_v43 = vpop.permute.xlu1 %409  ;;  %v417_v50 = vadd.f32 %v408_v40, %v387_v36 }
 0x243   :  { %v418_v44 = vadd.f32 %v415_v28, %v410_v43 }
 0x245   :  { %v421_v38 = vadd.f32 %v418_v44, %v1999_v37  ;;  %v412_v56 = vpop.permute.xlu0 %411 }
 0x246   :  { %v414_v60 = vpop.permute.xlu1 %413  ;;  %v419_v62 = vadd.f32 %v416_v49, %v412_v56 }
 0x247   :  { %v424_v61 = vmax.f32 %v421_v38, %v1997_v30  ;;  %v420_v0 = vadd.f32 %v417_v50, %v414_v60 }
 0x248   :  { %v422_v48 = vadd.f32 %v419_v62, %v2011_v47 }
 0x249   :  { %v427_v1 = vmin.f32 %v424_v61, %v1961_v13  ;;  %v423_v2 = vadd.f32 %v420_v0, %v2009_v46 }
 0x24a   :  { %v425_v52 = vmax.f32 %v422_v48, %v2007_v45 }
 0x24b   :  { %v426_v4 = vmax.f32 %v423_v2, %v2002_v42  ;;  %v430_v7 = vrot.slane %v427_v1, 7  ;;  %v436_v12 = vrot.slane %v427_v1, 1  ;;  %v445_v8 = vmul.f32 %v427_v1, %v2018_v51 }
 0x24c   :  { %v428_v6 = vmin.f32 %v425_v52, %v1966_v14  ;;  %v475_v11 = vmul.f32 %v427_v1, %v2028_v57  ;;  %v460_v19 = vmul.f32 %v427_v1, %v2032_v59 }
 0x24d   :  { %v429_v9 = vmin.f32 %v426_v4, %v1971_v15 }
 0x24e   :  { %v437_v16 = vrot.slane %v428_v6, 1  ;;  %v431_v17 = vrot.slane %v428_v6, 7  ;;  %v446_v18 = vmul.f32 %v428_v6, %v2018_v51  ;;  %v476_v22 = vmul.f32 %v428_v6, %v2028_v57 }
 0x24f   :  { %v432_v20 = vrot.slane %v429_v9, 7  ;;  %v438_v10 = vrot.slane %v429_v9, 1  ;;  %v447_v21 = vmul.f32 %v429_v9, %v2018_v51  ;;  %v477_v27 = vmul.f32 %v429_v9, %v2028_v57 }
 0x250   :  { %v440_v26 = vsel %vm83_vm1, %v436_v12, %v437_v16  ;;  %v434_v25 = vsel %vm76_vm0, %v430_v7, %v431_v17  ;;  %v461_v31 = vmul.f32 %v428_v6, %v2032_v59  ;;  %v462_v29 = vmul.f32 %v429_v9, %v2032_v59 }
 0x251   :  { %v435_v32 = vsel %vm76_vm0, %v432_v20, %v430_v7  ;;  %v439_v23 = vsel %vm83_vm1, %v437_v16, %v438_v10  ;;  %v443_v24 = vmul.f32 %v434_v25, %v2021_v53  ;;  %v451_v34 = vmul.f32 %v440_v26, %v2023_v54 }
 0x252   :  { %v442_v33 = vmul.f32 %v435_v32, %v2021_v53  ;;  %v452_v35 = vmul.f32 %v439_v23, %v2023_v54  ;;  %v472_v36 = vmul.f32 %v435_v32, %v2025_v55  ;;  %v433_v41 = vsel %vm76_vm0, %v431_v17, %v432_v20 }
 0x253   :  { %v449_v39 = vadd.f32 %v446_v18, %v443_v24  ;;  %v441_v28 = vsel %vm83_vm1, %v438_v10, %v436_v12  ;;  %v473_v40 = vmul.f32 %v434_v25, %v2025_v55  ;;  %v481_v49 = vmul.f32 %v440_v26, %v2030_v58 }
 0x254   :  { %v448_v43 = vadd.f32 %v445_v8, %v442_v33  ;;  %v478_v44 = vadd.f32 %v475_v11, %v472_v36  ;;  %v444_v38 = vmul.f32 %v433_v41, %v2021_v53  ;;  %v453_v56 = vmul.f32 %v441_v28, %v2023_v54 }
 0x255   :  { %v455_v50 = vadd.f32 %v452_v35, %v449_v39  ;;  %v474_v60 = vmul.f32 %v433_v41, %v2025_v55  ;;  %v479_v62 = vadd.f32 %v476_v22, %v473_v40  ;;  %v482_v1 = vmul.f32 %v439_v23, %v2030_v58 }
 0x256   :  { %v454_v61 = vadd.f32 %v451_v34, %v448_v43  ;;  %v484_v0 = vadd.f32 %v481_v49, %v478_v44  ;;  %v450_v48 = vadd.f32 %v447_v21, %v444_v38  ;;  %v483_v52 = vmul.f32 %v441_v28, %v2030_v58 }
 0x257   :  { %489 = vrot.lane.b32.xlu1 %v455_v50, %s1922_s11  ;;  %v480_v2 = vadd.f32 %v477_v27, %v474_v60  ;;  %v457_v4 = vmul.f32 %v435_v32, %v2034_v63  ;;  %v458_v6 = vmul.f32 %v434_v25, %v2034_v63  ;;  %v485_v9 = vadd.f32 %v482_v1, %v479_v62 }
 0x258   :  { %487 = vrot.lane.b32.xlu0 %v454_v61, %s1922_s11  ;;  %v456_v7 = vadd.f32 %v453_v56, %v450_v48  ;;  %v466_v12 = vmul.f32 %v440_v26, %v2036_v3  ;;  %v459_v8 = vmul.f32 %v433_v41, %v2034_v63  ;;  %v467_v18 = vmul.f32 %v439_v23, %v2036_v3 }
 0x259   :  { %v486_v11 = vadd.f32 %v483_v52, %v480_v2  ;;  %v463_v16 = vadd.f32 %v460_v19, %v457_v4  ;;  %v464_v17 = vadd.f32 %v461_v31, %v458_v6  ;;  %v468_v10 = vmul.f32 %v441_v28, %v2036_v3 }
 0x25a   :  { %v465_v20 = vadd.f32 %v462_v29, %v459_v8 }
 0x25b   :  { %493 = vrot.lane.b32.xlu1 %v484_v0, %s1923_s12  ;;  %v469_v21 = vadd.f32 %v466_v12, %v463_v16  ;;  %v470_v22 = vadd.f32 %v467_v18, %v464_v17 }
 0x25c   :  { %491 = vrot.lane.b32.xlu0 %v456_v7, %s1922_s11  ;;  %v471_v25 = vadd.f32 %v468_v10, %v465_v20 }
 0x25f   :  { %497 = vrot.lane.b32.xlu1 %v486_v11, %s1923_s12 }
 0x260   :  { %495 = vrot.lane.b32.xlu0 %v485_v9, %s1923_s12 }
 0x2c9   :  { %v490_v26 = vpop.permute.xlu1 %489 }
 0x2ca   :  { %v488_v27 = vpop.permute.xlu0 %487  ;;  %v500_v33 = vadd.f32 %v490_v26, %v470_v22 }
 0x2cb   :  { %v499_v19 = vadd.f32 %v488_v27, %v469_v21 }
 0x2cd   :  { %v494_v31 = vpop.permute.xlu1 %493 }
 0x2ce   :  { %v502_v32 = vadd.f32 %v499_v19, %v494_v31  ;;  %v492_v23 = vpop.permute.xlu0 %491 }
 0x2cf   :  { %v501_v29 = vadd.f32 %v492_v23, %v471_v25 }
 0x2d0   :  { %v505_v24 = vadd.f32 %v502_v32, %v1999_v37 }
 0x2d1   :  { %v498_v34 = vpop.permute.xlu1 %497 }
 0x2d2   :  { %v508_v35 = vmax.f32 %v505_v24, %v1997_v30  ;;  %v504_v36 = vadd.f32 %v501_v29, %v498_v34  ;;  %v496_v39 = vpop.permute.xlu0 %495 }
 0x2d3   :  { %v503_v41 = vadd.f32 %v500_v33, %v496_v39 }
 0x2d4   :  { %v511_v28 = vmin.f32 %v508_v35, %v1961_v13  ;;  %v507_v40 = vadd.f32 %v504_v36, %v2009_v46 }
 0x2d5   :  { %v506_v43 = vadd.f32 %v503_v41, %v2011_v47 }
 0x2d6   :  { %v510_v44 = vmax.f32 %v507_v40, %v2002_v42  ;;  %v514_v50 = vrot.slane %v511_v28, 7  ;;  %v520_v60 = vrot.slane %v511_v28, 1  ;;  %v529_v62 = vmul.f32 %v511_v28, %v2018_v51 }
 0x2d7   :  { %v509_v49 = vmax.f32 %v506_v43, %v2007_v45  ;;  %v559_v61 = vmul.f32 %v511_v28, %v2028_v57  ;;  %v544_v1 = vmul.f32 %v511_v28, %v2032_v59 }
 0x2d8   :  { %v513_v38 = vmin.f32 %v510_v44, %v1971_v15 }
 0x2d9   :  { %v512_v56 = vmin.f32 %v509_v49, %v1966_v14 }
 0x2da   :  { %v516_v0 = vrot.slane %v513_v38, 7  ;;  %v522_v13 = vrot.slane %v513_v38, 1  ;;  %v531_v48 = vmul.f32 %v513_v38, %v2018_v51  ;;  %v561_v15 = vmul.f32 %v513_v38, %v2028_v57 }
 0x2db   :  { %v521_v2 = vrot.slane %v512_v56, 1  ;;  %v515_v52 = vrot.slane %v512_v56, 7  ;;  %v530_v4 = vmul.f32 %v512_v56, %v2018_v51  ;;  %v560_v7 = vmul.f32 %v512_v56, %v2028_v57 }
 0x2dc   :  { %v519_v14 = vsel %vm76_vm0, %v516_v0, %v514_v50  ;;  %v525_v6 = vsel %vm83_vm1, %v522_v13, %v520_v60  ;;  %v545_v9 = vmul.f32 %v512_v56, %v2032_v59  ;;  %v546_v10 = vmul.f32 %v513_v38, %v2032_v59 }
 0x2dd   :  { %v524_v12 = vsel %vm83_vm1, %v520_v60, %v521_v2  ;;  %v526_v8 = vmul.f32 %v519_v14, %v2021_v53  ;;  %v518_v11 = vsel %vm76_vm0, %v514_v50, %v515_v52  ;;  %v523_v16 = vsel %vm83_vm1, %v521_v2, %v522_v13 }
 0x2de   :  { %v535_v17 = vmul.f32 %v524_v12, %v2023_v54  ;;  %v527_v18 = vmul.f32 %v518_v11, %v2021_v53  ;;  %v556_v20 = vmul.f32 %v519_v14, %v2025_v55  ;;  %v536_v22 = vmul.f32 %v523_v16, %v2023_v54 }
 0x2df   :  { %v532_v21 = vadd.f32 %v529_v62, %v526_v8  ;;  %v565_v25 = vmul.f32 %v524_v12, %v2030_v58  ;;  %v517_v26 = vsel %vm76_vm0, %v515_v52, %v516_v0  ;;  %v537_v24 = vmul.f32 %v525_v6, %v2023_v54 }
 0x2e0   :  { %v533_v27 = vadd.f32 %v530_v4, %v527_v18  ;;  %v562_v19 = vadd.f32 %v559_v61, %v556_v20  ;;  %v528_v31 = vmul.f32 %v517_v26, %v2021_v53  ;;  %v558_v32 = vmul.f32 %v517_v26, %v2025_v55 }
 0x2e1   :  { %v538_v23 = vadd.f32 %v535_v17, %v532_v21  ;;  %v567_v29 = vmul.f32 %v525_v6, %v2030_v58  ;;  %v557_v33 = vmul.f32 %v518_v11, %v2025_v55  ;;  %v566_v28 = vmul.f32 %v523_v16, %v2030_v58  ;;  %v2305_v21 = vld [vmem:[%s3173_s1] sm:$0xff] }
 0x2e2   :  { %v539_v34 = vadd.f32 %v536_v22, %v533_v27  ;;  %v568_v35 = vadd.f32 %v565_v25, %v562_v19  ;;  %v534_v36 = vadd.f32 %v531_v48, %v528_v31  ;;  %v564_v39 = vadd.f32 %v561_v15, %v558_v32  ;;  %v2314_v19 = vld [vmem:[%s3173_s1 + $0x8] sm:$0xff] }
 0x2e3   :  { %571 = vrot.lane.b32.xlu0 %v538_v23, %s1922_s11  ;;  %v563_v41 = vadd.f32 %v560_v7, %v557_v33  ;;  %v541_v40 = vmul.f32 %v519_v14, %v2034_v63  ;;  %v542_v43 = vmul.f32 %v518_v11, %v2034_v63  ;;  %v550_v38 = vmul.f32 %v524_v12, %v2036_v3  ;;  %v2320_v23 = vld [vmem:[%s3173_s1 + $0x10] sm:$0xff] }
 0x2e4   :  { %573 = vrot.lane.b32.xlu1 %v539_v34, %s1922_s11  ;;  %v540_v44 = vadd.f32 %v537_v24, %v534_v36  ;;  %v570_v49 = vadd.f32 %v567_v29, %v564_v39  ;;  %v543_v50 = vmul.f32 %v517_v26, %v2034_v63  ;;  %v551_v61 = vmul.f32 %v523_v16, %v2036_v3 }
 0x2e5   :  { %v569_v56 = vadd.f32 %v566_v28, %v563_v41  ;;  %v547_v60 = vadd.f32 %v544_v1, %v541_v40  ;;  %v548_v62 = vadd.f32 %v545_v9, %v542_v43  ;;  %v552_v13 = vmul.f32 %v525_v6, %v2036_v3 }
 0x2e6   :  { %v549_v0 = vadd.f32 %v546_v10, %v543_v50 }
 0x2e7   :  { %575 = vrot.lane.b32.xlu0 %v540_v44, %s1922_s11  ;;  %v553_v48 = vadd.f32 %v550_v38, %v547_v60  ;;  %v554_v2 = vadd.f32 %v551_v61, %v548_v62 }
 0x2e8   :  { %577 = vrot.lane.b32.xlu1 %v568_v35, %s1923_s12  ;;  %v555_v52 = vadd.f32 %v552_v13, %v549_v0 }
 0x2eb   :  { %579 = vrot.lane.b32.xlu0 %v569_v56, %s1923_s12 }
 0x2ec   :  { %581 = vrot.lane.b32.xlu1 %v570_v49, %s1923_s12 }
 0x355   :  { %v572_v4 = vpop.permute.xlu0 %571 }
 0x356   :  { %v574_v15 = vpop.permute.xlu1 %573  ;;  %v583_v1 = vadd.f32 %v572_v4, %v553_v48 }
 0x357   :  { %v584_v12 = vadd.f32 %v574_v15, %v554_v2 }
 0x359   :  { %v576_v14 = vpop.permute.xlu0 %575 }
 0x35a   :  { %v578_v7 = vpop.permute.xlu1 %577  ;;  %v585_v8 = vadd.f32 %v576_v14, %v555_v52 }
 0x35b   :  { %v586_v9 = vadd.f32 %v583_v1, %v578_v7 }
 0x35d   :  { %v589_v6 = vadd.f32 %v586_v9, %v1999_v37  ;;  %v580_v11 = vpop.permute.xlu0 %579 }
 0x35e   :  { %v582_v16 = vpop.permute.xlu1 %581  ;;  %v587_v17 = vadd.f32 %v584_v12, %v580_v11 }
 0x35f   :  { %v592_v18 = vmax.f32 %v589_v6, %v1997_v30  ;;  %v588_v20 = vadd.f32 %v585_v8, %v582_v16 }
 0x360   :  { %v590_v10 = vadd.f32 %v587_v17, %v2011_v47 }
 0x361   :  { %v595_v22 = vmin.f32 %v592_v18, %v2305_v21  ;;  %v591_v25 = vadd.f32 %v588_v20, %v2009_v46 }
 0x362   :  { %v593_v26 = vmax.f32 %v590_v10, %v2007_v45 }
 0x363   :  { %v594_v27 = vmax.f32 %v591_v25, %v2002_v42  ;;  %v598_v32 = vrot.slane %v595_v22, 7  ;;  %v604_v29 = vrot.slane %v595_v22, 1  ;;  %v613_v33 = vmul.f32 %v595_v22, %v2018_v51 }
 0x364   :  { %v596_v31 = vmin.f32 %v593_v26, %v2314_v19  ;;  %v643_v34 = vmul.f32 %v595_v22, %v2028_v57  ;;  %v628_v41 = vmul.f32 %v595_v22, %v2032_v59 }
 0x365   :  { %v597_v24 = vmin.f32 %v594_v27, %v2320_v23 }
 0x366   :  { %v605_v35 = vrot.slane %v596_v31, 1  ;;  %v599_v36 = vrot.slane %v596_v31, 7  ;;  %v614_v39 = vmul.f32 %v596_v31, %v2018_v51  ;;  %v644_v44 = vmul.f32 %v596_v31, %v2028_v57 }
 0x367   :  { %v600_v28 = vrot.slane %v597_v24, 7  ;;  %v606_v40 = vrot.slane %v597_v24, 1  ;;  %v615_v43 = vmul.f32 %v597_v24, %v2018_v51  ;;  %v645_v50 = vmul.f32 %v597_v24, %v2028_v57 }
 0x368   :  { %v608_v49 = vsel %vm83_vm1, %v604_v29, %v605_v35  ;;  %v602_v38 = vsel %vm76_vm0, %v598_v32, %v599_v36  ;;  %v629_v56 = vmul.f32 %v596_v31, %v2032_v59  ;;  %v630_v0 = vmul.f32 %v597_v24, %v2032_v59 }
 0x369   :  { %v603_v60 = vsel %vm76_vm0, %v600_v28, %v598_v32  ;;  %v607_v62 = vsel %vm83_vm1, %v605_v35, %v606_v40  ;;  %v611_v61 = vmul.f32 %v602_v38, %v2021_v53  ;;  %v619_v48 = vmul.f32 %v608_v49, %v2023_v54 }
 0x36a   :  { %v610_v13 = vmul.f32 %v603_v60, %v2021_v53  ;;  %v620_v2 = vmul.f32 %v607_v62, %v2023_v54  ;;  %v640_v52 = vmul.f32 %v603_v60, %v2025_v55  ;;  %v601_v15 = vsel %vm76_vm0, %v599_v36, %v600_v28 }
 0x36b   :  { %v617_v4 = vadd.f32 %v614_v39, %v611_v61  ;;  %v609_v1 = vsel %vm83_vm1, %v606_v40, %v604_v29  ;;  %v641_v14 = vmul.f32 %v602_v38, %v2025_v55  ;;  %v649_v12 = vmul.f32 %v608_v49, %v2030_v58 }
 0x36c   :  { %v616_v7 = vadd.f32 %v613_v33, %v610_v13  ;;  %v646_v9 = vadd.f32 %v643_v34, %v640_v52  ;;  %v612_v6 = vmul.f32 %v601_v15, %v2021_v53  ;;  %v621_v11 = vmul.f32 %v609_v1, %v2023_v54 }
 0x36d   :  { %v623_v8 = vadd.f32 %v620_v2, %v617_v4  ;;  %v642_v16 = vmul.f32 %v601_v15, %v2025_v55  ;;  %v647_v17 = vadd.f32 %v644_v44, %v641_v14  ;;  %v650_v22 = vmul.f32 %v607_v62, %v2030_v58 }
 0x36e   :  { %v622_v18 = vadd.f32 %v619_v48, %v616_v7  ;;  %v652_v20 = vadd.f32 %v649_v12, %v646_v9  ;;  %v618_v10 = vadd.f32 %v615_v43, %v612_v6  ;;  %v651_v26 = vmul.f32 %v609_v1, %v2030_v58 }
 0x36f   :  { %657 = vrot.lane.b32.xlu1 %v623_v8, %s1922_s11  ;;  %v648_v25 = vadd.f32 %v645_v50, %v642_v16  ;;  %v625_v27 = vmul.f32 %v603_v60, %v2034_v63  ;;  %v626_v31 = vmul.f32 %v602_v38, %v2034_v63  ;;  %v653_v24 = vadd.f32 %v650_v22, %v647_v17 }
 0x370   :  { %655 = vrot.lane.b32.xlu0 %v622_v18, %s1922_s11  ;;  %v624_v32 = vadd.f32 %v621_v11, %v618_v10  ;;  %v634_v29 = vmul.f32 %v608_v49, %v2036_v3  ;;  %v627_v33 = vmul.f32 %v601_v15, %v2034_v63  ;;  %v635_v39 = vmul.f32 %v607_v62, %v2036_v3 }
 0x371   :  { %v654_v34 = vadd.f32 %v651_v26, %v648_v25  ;;  %v631_v35 = vadd.f32 %v628_v41, %v625_v27  ;;  %v632_v36 = vadd.f32 %v629_v56, %v626_v31  ;;  %v636_v40 = vmul.f32 %v609_v1, %v2036_v3 }
 0x372   :  { %v633_v28 = vadd.f32 %v630_v0, %v627_v33 }
 0x373   :  { %661 = vrot.lane.b32.xlu1 %v652_v20, %s1923_s12  ;;  %v637_v43 = vadd.f32 %v634_v29, %v631_v35  ;;  %v638_v44 = vadd.f32 %v635_v39, %v632_v36 }
 0x374   :  { %659 = vrot.lane.b32.xlu0 %v624_v32, %s1922_s11  ;;  %v639_v38 = vadd.f32 %v636_v40, %v633_v28 }
 0x377   :  { %665 = vrot.lane.b32.xlu1 %v654_v34, %s1923_s12 }
 0x378   :  { %663 = vrot.lane.b32.xlu0 %v653_v24, %s1923_s12 }
 0x3e1   :  { %v658_v49 = vpop.permute.xlu1 %657 }
 0x3e2   :  { %v656_v50 = vpop.permute.xlu0 %655  ;;  %v668_v13 = vadd.f32 %v658_v49, %v638_v44 }
 0x3e3   :  { %v667_v41 = vadd.f32 %v656_v50, %v637_v43 }
 0x3e5   :  { %v662_v56 = vpop.permute.xlu1 %661 }
 0x3e6   :  { %v670_v60 = vadd.f32 %v667_v41, %v662_v56  ;;  %v660_v62 = vpop.permute.xlu0 %659 }
 0x3e7   :  { %v669_v0 = vadd.f32 %v660_v62, %v639_v38 }
 0x3e8   :  { %v673_v61 = vadd.f32 %v670_v60, %v1999_v37 }
 0x3e9   :  { %v666_v48 = vpop.permute.xlu1 %665 }
 0x3ea   :  { %v676_v2 = vmax.f32 %v673_v61, %v1997_v30  ;;  %v672_v52 = vadd.f32 %v669_v0, %v666_v48  ;;  %v664_v4 = vpop.permute.xlu0 %663 }
 0x3eb   :  { %v671_v15 = vadd.f32 %v668_v13, %v664_v4 }
 0x3ec   :  { %v679_v1 = vmin.f32 %v676_v2, %v2305_v21  ;;  %v675_v14 = vadd.f32 %v672_v52, %v2009_v46 }
 0x3ed   :  { %v674_v7 = vadd.f32 %v671_v15, %v2011_v47 }
 0x3ee   :  { %v678_v9 = vmax.f32 %v675_v14, %v2002_v42  ;;  %v682_v8 = vrot.slane %v679_v1, 7  ;;  %v688_v16 = vrot.slane %v679_v1, 1  ;;  %v697_v17 = vmul.f32 %v679_v1, %v2018_v51 }
 0x3ef   :  { %v677_v12 = vmax.f32 %v674_v7, %v2007_v45  ;;  %v727_v18 = vmul.f32 %v679_v1, %v2028_v57  ;;  %v712_v25 = vmul.f32 %v679_v1, %v2032_v59 }
 0x3f0   :  { %v681_v6 = vmin.f32 %v678_v9, %v2320_v23 }
 0x3f1   :  { %v680_v11 = vmin.f32 %v677_v12, %v2314_v19 }
 0x3f2   :  { %v684_v20 = vrot.slane %v681_v6, 7  ;;  %v690_v10 = vrot.slane %v681_v6, 1  ;;  %v699_v22 = vmul.f32 %v681_v6, %v2018_v51  ;;  %v729_v32 = vmul.f32 %v681_v6, %v2028_v57 }
 0x3f3   :  { %v689_v26 = vrot.slane %v680_v11, 1  ;;  %v683_v27 = vrot.slane %v680_v11, 7  ;;  %v698_v31 = vmul.f32 %v680_v11, %v2018_v51  ;;  %v728_v33 = vmul.f32 %v680_v11, %v2028_v57 }
 0x3f4   :  { %v687_v24 = vsel %vm76_vm0, %v684_v20, %v682_v8  ;;  %v693_v29 = vsel %vm83_vm1, %v690_v10, %v688_v16  ;;  %v713_v34 = vmul.f32 %v680_v11, %v2032_v59  ;;  %v714_v38 = vmul.f32 %v681_v6, %v2032_v59 }
 0x3f5   :  { %v692_v35 = vsel %vm83_vm1, %v688_v16, %v689_v26  ;;  %v694_v36 = vmul.f32 %v687_v24, %v2021_v53  ;;  %v686_v39 = vsel %vm76_vm0, %v682_v8, %v683_v27  ;;  %v691_v28 = vsel %vm83_vm1, %v689_v26, %v690_v10 }
 0x3f6   :  { %v703_v40 = vmul.f32 %v692_v35, %v2023_v54  ;;  %v695_v43 = vmul.f32 %v686_v39, %v2021_v53  ;;  %v724_v44 = vmul.f32 %v687_v24, %v2025_v55  ;;  %v704_v50 = vmul.f32 %v691_v28, %v2023_v54 }
 0x3f7   :  { %v700_v49 = vadd.f32 %v697_v17, %v694_v36  ;;  %v733_v41 = vmul.f32 %v692_v35, %v2030_v58  ;;  %v685_v56 = vsel %vm76_vm0, %v683_v27, %v684_v20  ;;  %v705_v48 = vmul.f32 %v693_v29, %v2023_v54 }
 0x3f8   :  { %v701_v60 = vadd.f32 %v698_v31, %v695_v43  ;;  %v730_v62 = vadd.f32 %v727_v18, %v724_v44  ;;  %v696_v61 = vmul.f32 %v685_v56, %v2021_v53  ;;  %v726_v0 = vmul.f32 %v685_v56, %v2025_v55 }
 0x3f9   :  { %v706_v13 = vadd.f32 %v703_v40, %v700_v49  ;;  %v735_v2 = vmul.f32 %v693_v29, %v2030_v58  ;;  %v725_v52 = vmul.f32 %v686_v39, %v2025_v55  ;;  %v734_v9 = vmul.f32 %v691_v28, %v2030_v58 }
 0x3fa   :  { %v707_v4 = vadd.f32 %v704_v50, %v701_v60  ;;  %v736_v15 = vadd.f32 %v733_v41, %v730_v62  ;;  %v702_v1 = vadd.f32 %v699_v22, %v696_v61  ;;  %v732_v14 = vadd.f32 %v729_v32, %v726_v0 }
 0x3fb   :  { %739 = vrot.lane.b32.xlu0 %v706_v13, %s1922_s11  ;;  %v731_v7 = vadd.f32 %v728_v33, %v725_v52  ;;  %v709_v12 = vmul.f32 %v687_v24, %v2034_v63  ;;  %v710_v6 = vmul.f32 %v686_v39, %v2034_v63  ;;  %v718_v16 = vmul.f32 %v692_v35, %v2036_v3 }
 0x3fc   :  { %741 = vrot.lane.b32.xlu1 %v707_v4, %s1922_s11  ;;  %v708_v8 = vadd.f32 %v705_v48, %v702_v1  ;;  %v738_v11 = vadd.f32 %v735_v2, %v732_v14  ;;  %v711_v17 = vmul.f32 %v685_v56, %v2034_v63  ;;  %v719_v22 = vmul.f32 %v691_v28, %v2036_v3 }
 0x3fd   :  { %v737_v18 = vadd.f32 %v734_v9, %v731_v7  ;;  %v715_v20 = vadd.f32 %v712_v25, %v709_v12  ;;  %v716_v10 = vadd.f32 %v713_v34, %v710_v6  ;;  %v720_v27 = vmul.f32 %v693_v29, %v2036_v3 }
 0x3fe   :  { %v717_v26 = vadd.f32 %v714_v38, %v711_v17 }
 0x3ff   :  { %743 = vrot.lane.b32.xlu0 %v708_v8, %s1922_s11  ;;  %v721_v31 = vadd.f32 %v718_v16, %v715_v20  ;;  %v722_v32 = vadd.f32 %v719_v22, %v716_v10 }
 0x400   :  { %745 = vrot.lane.b32.xlu1 %v736_v15, %s1923_s12  ;;  %v723_v24 = vadd.f32 %v720_v27, %v717_v26 }
 0x403   :  { %747 = vrot.lane.b32.xlu0 %v737_v18, %s1923_s12 }
 0x404   :  { %749 = vrot.lane.b32.xlu1 %v738_v11, %s1923_s12 }
 0x46d   :  { %v740_v33 = vpop.permute.xlu0 %739 }
 0x46e   :  { %v742_v35 = vpop.permute.xlu1 %741  ;;  %v751_v25 = vadd.f32 %v740_v33, %v721_v31 }
 0x46f   :  { %v752_v28 = vadd.f32 %v742_v35, %v722_v32 }
 0x471   :  { %v744_v34 = vpop.permute.xlu0 %743 }
 0x472   :  { %v746_v36 = vpop.permute.xlu1 %745  ;;  %v753_v40 = vadd.f32 %v744_v34, %v723_v24 }
 0x473   :  { %v754_v39 = vadd.f32 %v751_v25, %v746_v36 }
 0x475   :  { %v757_v29 = vadd.f32 %v754_v39, %v1999_v37  ;;  %v748_v43 = vpop.permute.xlu0 %747 }
 0x476   :  { %v750_v44 = vpop.permute.xlu1 %749  ;;  %v755_v38 = vadd.f32 %v752_v28, %v748_v43 }
 0x477   :  { %v760_v49 = vmax.f32 %v757_v29, %v1997_v30  ;;  %v756_v50 = vadd.f32 %v753_v40, %v750_v44 }
 0x478   :  { %v758_v41 = vadd.f32 %v755_v38, %v2011_v47 }
 0x479   :  { %v763_v56 = vmin.f32 %v760_v49, %v2305_v21  ;;  %v759_v60 = vadd.f32 %v756_v50, %v2009_v46 }
 0x47a   :  { %v761_v62 = vmax.f32 %v758_v41, %v2007_v45 }
 0x47b   :  { %v762_v61 = vmax.f32 %v759_v60, %v2002_v42  ;;  %v766_v13 = vrot.slane %v763_v56, 7  ;;  %v772_v2 = vrot.slane %v763_v56, 1  ;;  %v781_v52 = vmul.f32 %v763_v56, %v2018_v51 }
 0x47c   :  { %v764_v0 = vmin.f32 %v761_v62, %v2314_v19  ;;  %v811_v4 = vmul.f32 %v763_v56, %v2028_v57  ;;  %v796_v7 = vmul.f32 %v763_v56, %v2032_v59 }
 0x47d   :  { %v765_v48 = vmin.f32 %v762_v61, %v2320_v23 }
 0x47e   :  { %v773_v15 = vrot.slane %v764_v0, 1  ;;  %v767_v1 = vrot.slane %v764_v0, 7  ;;  %v782_v14 = vmul.f32 %v764_v0, %v2018_v51  ;;  %v812_v8 = vmul.f32 %v764_v0, %v2028_v57 }
 0x47f   :  { %v768_v9 = vrot.slane %v765_v48, 7  ;;  %v774_v12 = vrot.slane %v765_v48, 1  ;;  %v783_v6 = vmul.f32 %v765_v48, %v2018_v51  ;;  %v813_v17 = vmul.f32 %v765_v48, %v2028_v57 }
 0x480   :  { %v776_v11 = vsel %vm83_vm1, %v772_v2, %v773_v15  ;;  %v770_v16 = vsel %vm76_vm0, %v766_v13, %v767_v1  ;;  %v797_v18 = vmul.f32 %v764_v0, %v2032_v59  ;;  %v798_v26 = vmul.f32 %v765_v48, %v2032_v59 }
 0x481   :  { %v771_v20 = vsel %vm76_vm0, %v768_v9, %v766_v13  ;;  %v775_v10 = vsel %vm83_vm1, %v773_v15, %v774_v12  ;;  %v779_v22 = vmul.f32 %v770_v16, %v2021_v53  ;;  %v787_v31 = vmul.f32 %v776_v11, %v2023_v54 }
 0x482   :  { %v778_v27 = vmul.f32 %v771_v20, %v2021_v53  ;;  %v788_v32 = vmul.f32 %v775_v10, %v2023_v54  ;;  %v808_v24 = vmul.f32 %v771_v20, %v2025_v55  ;;  %v769_v35 = vsel %vm76_vm0, %v767_v1, %v768_v9 }
 0x483   :  { %v785_v33 = vadd.f32 %v782_v14, %v779_v22  ;;  %v777_v25 = vsel %vm83_vm1, %v774_v12, %v772_v2  ;;  %v809_v34 = vmul.f32 %v770_v16, %v2025_v55  ;;  %v817_v28 = vmul.f32 %v776_v11, %v2030_v58 }
 0x484   :  { %v784_v36 = vadd.f32 %v781_v52, %v778_v27  ;;  %v814_v39 = vadd.f32 %v811_v4, %v808_v24  ;;  %v780_v29 = vmul.f32 %v769_v35, %v2021_v53  ;;  %v789_v43 = vmul.f32 %v777_v25, %v2023_v54 }
 0x485   :  { %v791_v40 = vadd.f32 %v788_v32, %v785_v33  ;;  %v810_v44 = vmul.f32 %v769_v35, %v2025_v55  ;;  %v815_v38 = vadd.f32 %v812_v8, %v809_v34  ;;  %v818_v56 = vmul.f32 %v775_v10, %v2030_v58 }
 0x486   :  { %v790_v49 = vadd.f32 %v787_v31, %v784_v36  ;;  %v820_v50 = vadd.f32 %v817_v28, %v814_v39  ;;  %v786_v41 = vadd.f32 %v783_v6, %v780_v29  ;;  %v819_v62 = vmul.f32 %v777_v25, %v2030_v58 }
 0x487   :  { %825 = vrot.lane.b32.xlu1 %v791_v40, %s1922_s11  ;;  %v816_v60 = vadd.f32 %v813_v17, %v810_v44  ;;  %v793_v61 = vmul.f32 %v771_v20, %v2034_v63  ;;  %v794_v0 = vmul.f32 %v770_v16, %v2034_v63  ;;  %v821_v48 = vadd.f32 %v818_v56, %v815_v38 }
 0x488   :  { %823 = vrot.lane.b32.xlu0 %v790_v49, %s1922_s11  ;;  %v792_v13 = vadd.f32 %v789_v43, %v786_v41  ;;  %v802_v2 = vmul.f32 %v776_v11, %v2036_v3  ;;  %v795_v52 = vmul.f32 %v769_v35, %v2034_v63  ;;  %v803_v14 = vmul.f32 %v775_v10, %v2036_v3 }
 0x489   :  { %v822_v4 = vadd.f32 %v819_v62, %v816_v60  ;;  %v799_v15 = vadd.f32 %v796_v7, %v793_v61  ;;  %v800_v1 = vadd.f32 %v797_v18, %v794_v0  ;;  %v804_v12 = vmul.f32 %v777_v25, %v2036_v3 }
 0x48a   :  { %v801_v9 = vadd.f32 %v798_v26, %v795_v52 }
 0x48b   :  { %829 = vrot.lane.b32.xlu1 %v820_v50, %s1923_s12  ;;  %v805_v6 = vadd.f32 %v802_v2, %v799_v15  ;;  %v806_v8 = vadd.f32 %v803_v14, %v800_v1 }
 0x48c   :  { %827 = vrot.lane.b32.xlu0 %v792_v13, %s1922_s11  ;;  %v807_v16 = vadd.f32 %v804_v12, %v801_v9 }
 0x48f   :  { %833 = vrot.lane.b32.xlu1 %v822_v4, %s1923_s12 }
 0x490   :  { %831 = vrot.lane.b32.xlu0 %v821_v48, %s1923_s12 }
 0x4f9   :  { %v826_v11 = vpop.permute.xlu1 %825 }
 0x4fa   :  { %v824_v17 = vpop.permute.xlu0 %823  ;;  %v836_v27 = vadd.f32 %v826_v11, %v806_v8 }
 0x4fb   :  { %v835_v7 = vadd.f32 %v824_v17, %v805_v6 }
 0x4fd   :  { %v830_v18 = vpop.permute.xlu1 %829 }
 0x4fe   :  { %v838_v20 = vadd.f32 %v835_v7, %v830_v18  ;;  %v828_v10 = vpop.permute.xlu0 %827 }
 0x4ff   :  { %v837_v26 = vadd.f32 %v828_v10, %v807_v16 }
 0x500   :  { %v841_v22 = vadd.f32 %v838_v20, %v1999_v37 }
 0x501   :  { %v834_v31 = vpop.permute.xlu1 %833 }
 0x502   :  { %v844_v32 = vmax.f32 %v841_v22, %v1997_v30  ;;  %v840_v24 = vadd.f32 %v837_v26, %v834_v31  ;;  %v832_v33 = vpop.permute.xlu0 %831 }
 0x503   :  { %v839_v35 = vadd.f32 %v836_v27, %v832_v33 }
 0x504   :  { %v847_v25 = vmin.f32 %v844_v32, %v2305_v21  ;;  %v843_v34 = vadd.f32 %v840_v24, %v2009_v46 }
 0x505   :  { %v842_v36 = vadd.f32 %v839_v35, %v2011_v47 }
 0x506   :  { %v846_v39 = vmax.f32 %v843_v34, %v2002_v42  ;;  %v850_v40 = vrot.slane %v847_v25, 7  ;;  %v856_v44 = vrot.slane %v847_v25, 1  ;;  %v865_v38 = vmul.f32 %v847_v25, %v2018_v51 }
 0x507   :  { %v845_v28 = vmax.f32 %v842_v36, %v2007_v45  ;;  %v895_v49 = vmul.f32 %v847_v25, %v2028_v57  ;;  %v880_v60 = vmul.f32 %v847_v25, %v2032_v59 }
 0x508   :  { %v849_v29 = vmin.f32 %v846_v39, %v2320_v23 }
 0x509   :  { %v848_v43 = vmin.f32 %v845_v28, %v2314_v19 }
 0x50a   :  { %v852_v50 = vrot.slane %v849_v29, 7  ;;  %v858_v41 = vrot.slane %v849_v29, 1  ;;  %v867_v56 = vmul.f32 %v849_v29, %v2018_v51  ;;  %v897_v13 = vmul.f32 %v849_v29, %v2028_v57 }
 0x50b   :  { %v857_v62 = vrot.slane %v848_v43, 1  ;;  %v851_v61 = vrot.slane %v848_v43, 7  ;;  %v866_v0 = vmul.f32 %v848_v43, %v2018_v51  ;;  %v896_v52 = vmul.f32 %v848_v43, %v2028_v57 }
 0x50c   :  { %v855_v48 = vsel %vm76_vm0, %v852_v50, %v850_v40  ;;  %v861_v2 = vsel %vm83_vm1, %v858_v41, %v856_v44  ;;  %v881_v4 = vmul.f32 %v848_v43, %v2032_v59  ;;  %v882_v16 = vmul.f32 %v849_v29, %v2032_v59 }
 0x50d   :  { %v860_v15 = vsel %vm83_vm1, %v856_v44, %v857_v62  ;;  %v862_v1 = vmul.f32 %v855_v48, %v2021_v53  ;;  %v854_v14 = vsel %vm76_vm0, %v850_v40, %v851_v61  ;;  %v859_v9 = vsel %vm83_vm1, %v857_v62, %v858_v41 }
 0x50e   :  { %v871_v12 = vmul.f32 %v860_v15, %v2023_v54  ;;  %v863_v6 = vmul.f32 %v854_v14, %v2021_v53  ;;  %v892_v8 = vmul.f32 %v855_v48, %v2025_v55  ;;  %v872_v17 = vmul.f32 %v859_v9, %v2023_v54 }
 0x50f   :  { %v868_v11 = vadd.f32 %v865_v38, %v862_v1  ;;  %v901_v7 = vmul.f32 %v860_v15, %v2030_v58  ;;  %v853_v18 = vsel %vm76_vm0, %v851_v61, %v852_v50  ;;  %v873_v31 = vmul.f32 %v861_v2, %v2023_v54 }
 0x510   :  { %v869_v20 = vadd.f32 %v866_v0, %v863_v6  ;;  %v898_v10 = vadd.f32 %v895_v49, %v892_v8  ;;  %v864_v22 = vmul.f32 %v853_v18, %v2021_v53  ;;  %v894_v26 = vmul.f32 %v853_v18, %v2025_v55 }
 0x511   :  { %v874_v27 = vadd.f32 %v871_v12, %v868_v11  ;;  %v903_v32 = vmul.f32 %v861_v2, %v2030_v58  ;;  %v893_v24 = vmul.f32 %v854_v14, %v2025_v55  ;;  %v902_v39 = vmul.f32 %v859_v9, %v2030_v58 }
 0x512   :  { %v875_v33 = vadd.f32 %v872_v17, %v869_v20  ;;  %v904_v35 = vadd.f32 %v901_v7, %v898_v10  ;;  %v870_v25 = vadd.f32 %v867_v56, %v864_v22  ;;  %v900_v34 = vadd.f32 %v897_v13, %v894_v26 }
 0x513   :  { %907 = vrot.lane.b32.xlu0 %v874_v27, %s1922_s11  ;;  %v899_v36 = vadd.f32 %v896_v52, %v893_v24  ;;  %v877_v28 = vmul.f32 %v855_v48, %v2034_v63  ;;  %v878_v29 = vmul.f32 %v854_v14, %v2034_v63  ;;  %v886_v44 = vmul.f32 %v860_v15, %v2036_v3 }
 0x514   :  { %909 = vrot.lane.b32.xlu1 %v875_v33, %s1922_s11  ;;  %v876_v40 = vadd.f32 %v873_v31, %v870_v25  ;;  %v906_v43 = vadd.f32 %v903_v32, %v900_v34  ;;  %v879_v38 = vmul.f32 %v853_v18, %v2034_v63  ;;  %v887_v56 = vmul.f32 %v859_v9, %v2036_v3 }
 0x515   :  { %v905_v49 = vadd.f32 %v902_v39, %v899_v36  ;;  %v883_v50 = vadd.f32 %v880_v60, %v877_v28  ;;  %v884_v41 = vadd.f32 %v881_v4, %v878_v29  ;;  %v888_v61 = vmul.f32 %v861_v2, %v2036_v3 }
 0x516   :  { %v885_v62 = vadd.f32 %v882_v16, %v879_v38 }
 0x517   :  { %911 = vrot.lane.b32.xlu0 %v876_v40, %s1922_s11  ;;  %v889_v0 = vadd.f32 %v886_v44, %v883_v50  ;;  %v890_v13 = vadd.f32 %v887_v56, %v884_v41 }
 0x518   :  { %913 = vrot.lane.b32.xlu1 %v904_v35, %s1923_s12  ;;  %v891_v48 = vadd.f32 %v888_v61, %v885_v62 }
 0x51b   :  { %915 = vrot.lane.b32.xlu0 %v905_v49, %s1923_s12 }
 0x51c   :  { %917 = vrot.lane.b32.xlu1 %v906_v43, %s1923_s12 }
 0x585   :  { %v908_v52 = vpop.permute.xlu0 %907 }
 0x586   :  { %v910_v15 = vpop.permute.xlu1 %909  ;;  %v919_v60 = vadd.f32 %v908_v52, %v889_v0 }
 0x587   :  { %v920_v9 = vadd.f32 %v910_v15, %v890_v13 }
 0x589   :  { %v912_v4 = vpop.permute.xlu0 %911 }
 0x58a   :  { %v914_v1 = vpop.permute.xlu1 %913  ;;  %v921_v12 = vadd.f32 %v912_v4, %v891_v48 }
 0x58b   :  { %v922_v14 = vadd.f32 %v919_v60, %v914_v1 }
 0x58d   :  { %v925_v2 = vadd.f32 %v922_v14, %v1999_v37  ;;  %v916_v6 = vpop.permute.xlu0 %915 }
 0x58e   :  { %v918_v8 = vpop.permute.xlu1 %917  ;;  %v923_v16 = vadd.f32 %v920_v9, %v916_v6 }
 0x58f   :  { %v928_v11 = vmax.f32 %v925_v2, %v1997_v30  ;;  %v924_v17 = vadd.f32 %v921_v12, %v918_v8 }
 0x590   :  { %v926_v7 = vadd.f32 %v923_v16, %v2011_v47 }
 0x591   :  { %v931_v18 = vmin.f32 %v928_v11, %v2305_v21  ;;  %v927_v20 = vadd.f32 %v924_v17, %v2009_v46 }
 0x592   :  { %v929_v10 = vmax.f32 %v926_v7, %v2007_v45 }
 0x593   :  { %v930_v22 = vmax.f32 %v927_v20, %v2002_v42  ;;  %v934_v27 = vrot.slane %v931_v18, 7  ;;  %v940_v32 = vrot.slane %v931_v18, 1  ;;  %v949_v24 = vmul.f32 %v931_v18, %v2018_v51 }
 0x594   :  { %v932_v26 = vmin.f32 %v929_v10, %v2314_v19  ;;  %v979_v33 = vmul.f32 %v931_v18, %v2028_v57  ;;  %v964_v36 = vmul.f32 %v931_v18, %v2032_v59 }
 0x595   :  { %v933_v31 = vmin.f32 %v930_v22, %v2320_v23 }
 0x596   :  { %v941_v35 = vrot.slane %v932_v26, 1  ;;  %v935_v25 = vrot.slane %v932_v26, 7  ;;  %v950_v34 = vmul.f32 %v932_v26, %v2018_v51  ;;  %v980_v40 = vmul.f32 %v932_v26, %v2028_v57 }
 0x597   :  { %v936_v39 = vrot.slane %v933_v31, 7  ;;  %v942_v28 = vrot.slane %v933_v31, 1  ;;  %v951_v29 = vmul.f32 %v933_v31, %v2018_v51  ;;  %v981_v38 = vmul.f32 %v933_v31, %v2028_v57 }
 0x598   :  { %v944_v43 = vsel %vm83_vm1, %v940_v32, %v941_v35  ;;  %v938_v44 = vsel %vm76_vm0, %v934_v27, %v935_v25  ;;  %v965_v49 = vmul.f32 %v932_v26, %v2032_v59  ;;  %v966_v62 = vmul.f32 %v933_v31, %v2032_v59 }
 0x599   :  { %v939_v50 = vsel %vm76_vm0, %v936_v39, %v934_v27  ;;  %v943_v41 = vsel %vm83_vm1, %v941_v35, %v942_v28  ;;  %v947_v56 = vmul.f32 %v938_v44, %v2021_v53  ;;  %v955_v0 = vmul.f32 %v944_v43, %v2023_v54 }
 0x59a   :  { %v946_v61 = vmul.f32 %v939_v50, %v2021_v53  ;;  %v956_v13 = vmul.f32 %v943_v41, %v2023_v54  ;;  %v976_v48 = vmul.f32 %v939_v50, %v2025_v55  ;;  %v937_v15 = vsel %vm76_vm0, %v935_v25, %v936_v39 }
 0x59b   :  { %v953_v52 = vadd.f32 %v950_v34, %v947_v56  ;;  %v945_v60 = vsel %vm83_vm1, %v942_v28, %v940_v32  ;;  %v977_v4 = vmul.f32 %v938_v44, %v2025_v55  ;;  %v985_v9 = vmul.f32 %v944_v43, %v2030_v58 }
 0x59c   :  { %v952_v1 = vadd.f32 %v949_v24, %v946_v61  ;;  %v982_v14 = vadd.f32 %v979_v33, %v976_v48  ;;  %v948_v2 = vmul.f32 %v937_v15, %v2021_v53  ;;  %v957_v6 = vmul.f32 %v945_v60, %v2023_v54 }
 0x59d   :  { %v959_v12 = vadd.f32 %v956_v13, %v953_v52  ;;  %v978_v8 = vmul.f32 %v937_v15, %v2025_v55  ;;  %v983_v16 = vadd.f32 %v980_v40, %v977_v4  ;;  %v986_v18 = vmul.f32 %v943_v41, %v2030_v58 }
 0x59e   :  { %v958_v11 = vadd.f32 %v955_v0, %v952_v1  ;;  %v988_v17 = vadd.f32 %v985_v9, %v982_v14  ;;  %v954_v7 = vadd.f32 %v951_v29, %v948_v2  ;;  %v987_v10 = vmul.f32 %v945_v60, %v2030_v58 }
 0x59f   :  { %993 = vrot.lane.b32.xlu1 %v959_v12, %s1922_s11  ;;  %v984_v20 = vadd.f32 %v981_v38, %v978_v8  ;;  %v961_v22 = vmul.f32 %v939_v50, %v2034_v63  ;;  %v962_v26 = vmul.f32 %v938_v44, %v2034_v63  ;;  %v989_v31 = vadd.f32 %v986_v18, %v983_v16 }
 0x5a0   :  { %991 = vrot.lane.b32.xlu0 %v958_v11, %s1922_s11  ;;  %v960_v27 = vadd.f32 %v957_v6, %v954_v7  ;;  %v970_v32 = vmul.f32 %v944_v43, %v2036_v3  ;;  %v963_v24 = vmul.f32 %v937_v15, %v2034_v63  ;;  %v971_v34 = vmul.f32 %v943_v41, %v2036_v3 }
 0x5a1   :  { %v990_v33 = vadd.f32 %v987_v10, %v984_v20  ;;  %v967_v35 = vadd.f32 %v964_v36, %v961_v22  ;;  %v968_v25 = vadd.f32 %v965_v49, %v962_v26  ;;  %v972_v28 = vmul.f32 %v945_v60, %v2036_v3 }
 0x5a2   :  { %v969_v39 = vadd.f32 %v966_v62, %v963_v24 }
 0x5a3   :  { %997 = vrot.lane.b32.xlu1 %v988_v17, %s1923_s12  ;;  %v973_v29 = vadd.f32 %v970_v32, %v967_v35  ;;  %v974_v40 = vadd.f32 %v971_v34, %v968_v25 }
 0x5a4   :  { %995 = vrot.lane.b32.xlu0 %v960_v27, %s1922_s11  ;;  %v975_v44 = vadd.f32 %v972_v28, %v969_v39 }
 0x5a7   :  { %1001 = vrot.lane.b32.xlu1 %v990_v33, %s1923_s12 }
 0x5a8   :  { %999 = vrot.lane.b32.xlu0 %v989_v31, %s1923_s12 }
 0x611   :  { %v994_v43 = vpop.permute.xlu1 %993 }
 0x612   :  { %v992_v38 = vpop.permute.xlu0 %991  ;;  %v1004_v61 = vadd.f32 %v994_v43, %v974_v40 }
 0x613   :  { %v1003_v36 = vadd.f32 %v992_v38, %v973_v29 }
 0x615   :  { %v998_v49 = vpop.permute.xlu1 %997 }
 0x616   :  { %v1006_v50 = vadd.f32 %v1003_v36, %v998_v49  ;;  %v996_v41 = vpop.permute.xlu0 %995 }
 0x617   :  { %v1005_v62 = vadd.f32 %v996_v41, %v975_v44 }
 0x618   :  { %v1009_v56 = vadd.f32 %v1006_v50, %v1999_v37 }
 0x619   :  { %v1002_v0 = vpop.permute.xlu1 %1001 }
 0x61a   :  { %v1012_v13 = vmax.f32 %v1009_v56, %v1997_v30  ;;  %v1008_v48 = vadd.f32 %v1005_v62, %v1002_v0  ;;  %v1000_v52 = vpop.permute.xlu0 %999 }
 0x61b   :  { %v1007_v15 = vadd.f32 %v1004_v61, %v1000_v52 }
 0x61c   :  { %v1015_v60 = vmin.f32 %v1012_v13, %v2305_v21  ;;  %v1011_v4 = vadd.f32 %v1008_v48, %v2009_v46 }
 0x61d   :  { %v1010_v1 = vadd.f32 %v1007_v15, %v2011_v47 }
 0x61e   :  { %v1014_v14 = vmax.f32 %v1011_v4, %v2002_v42  ;;  %v1018_v12 = vrot.slane %v1015_v60, 7  ;;  %v1024_v8 = vrot.slane %v1015_v60, 1  ;;  %v1033_v16 = vmul.f32 %v1015_v60, %v2018_v51 }
 0x61f   :  { %v1013_v9 = vmax.f32 %v1010_v1, %v2007_v45  ;;  %v1063_v11 = vmul.f32 %v1015_v60, %v2028_v57  ;;  %v1048_v20 = vmul.f32 %v1015_v60, %v2032_v59 }
 0x620   :  { %v1017_v2 = vmin.f32 %v1014_v14, %v2320_v23 }
 0x621   :  { %v1016_v6 = vmin.f32 %v1013_v9, %v2314_v19 }
 0x622   :  { %v1020_v17 = vrot.slane %v1017_v2, 7  ;;  %v1026_v7 = vrot.slane %v1017_v2, 1  ;;  %v1035_v18 = vmul.f32 %v1017_v2, %v2018_v51  ;;  %v1065_v27 = vmul.f32 %v1017_v2, %v2028_v57 }
 0x623   :  { %v1025_v10 = vrot.slane %v1016_v6, 1  ;;  %v1019_v22 = vrot.slane %v1016_v6, 7  ;;  %v1034_v26 = vmul.f32 %v1016_v6, %v2018_v51  ;;  %v1064_v24 = vmul.f32 %v1016_v6, %v2028_v57 }
 0x624   :  { %v1023_v31 = vsel %vm76_vm0, %v1020_v17, %v1018_v12  ;;  %v1029_v32 = vsel %vm83_vm1, %v1026_v7, %v1024_v8  ;;  %v1049_v33 = vmul.f32 %v1016_v6, %v2032_v59  ;;  %v1050_v44 = vmul.f32 %v1017_v2, %v2032_v59 }
 0x625   :  { %v1028_v35 = vsel %vm83_vm1, %v1024_v8, %v1025_v10  ;;  %v1030_v25 = vmul.f32 %v1023_v31, %v2021_v53  ;;  %v1022_v34 = vsel %vm76_vm0, %v1018_v12, %v1019_v22  ;;  %v1027_v39 = vsel %vm83_vm1, %v1025_v10, %v1026_v7 }
 0x626   :  { %v1039_v28 = vmul.f32 %v1028_v35, %v2023_v54  ;;  %v1031_v29 = vmul.f32 %v1022_v34, %v2021_v53  ;;  %v1060_v40 = vmul.f32 %v1023_v31, %v2025_v55  ;;  %v1040_v38 = vmul.f32 %v1027_v39, %v2023_v54 }
 0x627   :  { %v1036_v43 = vadd.f32 %v1033_v16, %v1030_v25  ;;  %v1069_v36 = vmul.f32 %v1028_v35, %v2030_v58  ;;  %v1021_v49 = vsel %vm76_vm0, %v1019_v22, %v1020_v17  ;;  %v1041_v0 = vmul.f32 %v1029_v32, %v2023_v54 }
 0x628   :  { %v1037_v50 = vadd.f32 %v1034_v26, %v1031_v29  ;;  %v1066_v41 = vadd.f32 %v1063_v11, %v1060_v40  ;;  %v1032_v56 = vmul.f32 %v1021_v49, %v2021_v53  ;;  %v1062_v62 = vmul.f32 %v1021_v49, %v2025_v55 }
 0x629   :  { %v1042_v61 = vadd.f32 %v1039_v28, %v1036_v43  ;;  %v1071_v13 = vmul.f32 %v1029_v32, %v2030_v58  ;;  %v1061_v48 = vmul.f32 %v1022_v34, %v2025_v55  ;;  %v1070_v14 = vmul.f32 %v1027_v39, %v2030_v58 }
 0x62a   :  { %v1043_v52 = vadd.f32 %v1040_v38, %v1037_v50  ;;  %v1072_v15 = vadd.f32 %v1069_v36, %v1066_v41  ;;  %v1038_v60 = vadd.f32 %v1035_v18, %v1032_v56  ;;  %v1068_v4 = vadd.f32 %v1065_v27, %v1062_v62 }
 0x62b   :  { %1075 = vrot.lane.b32.xlu0 %v1042_v61, %s1922_s11  ;;  %v1067_v1 = vadd.f32 %v1064_v24, %v1061_v48  ;;  %v1045_v9 = vmul.f32 %v1023_v31, %v2034_v63  ;;  %v1046_v2 = vmul.f32 %v1022_v34, %v2034_v63  ;;  %v1054_v8 = vmul.f32 %v1028_v35, %v2036_v3 }
 0x62c   :  { %1077 = vrot.lane.b32.xlu1 %v1043_v52, %s1922_s11  ;;  %v1044_v12 = vadd.f32 %v1041_v0, %v1038_v60  ;;  %v1074_v6 = vadd.f32 %v1071_v13, %v1068_v4  ;;  %v1047_v16 = vmul.f32 %v1021_v49, %v2034_v63  ;;  %v1055_v18 = vmul.f32 %v1027_v39, %v2036_v3 }
 0x62d   :  { %v1073_v11 = vadd.f32 %v1070_v14, %v1067_v1  ;;  %v1051_v17 = vadd.f32 %v1048_v20, %v1045_v9  ;;  %v1052_v7 = vadd.f32 %v1049_v33, %v1046_v2  ;;  %v1056_v22 = vmul.f32 %v1029_v32, %v2036_v3 }
 0x62e   :  { %v1053_v10 = vadd.f32 %v1050_v44, %v1047_v16 }
 0x62f   :  { %1079 = vrot.lane.b32.xlu0 %v1044_v12, %s1922_s11  ;;  %v1057_v26 = vadd.f32 %v1054_v8, %v1051_v17  ;;  %v1058_v27 = vadd.f32 %v1055_v18, %v1052_v7 }
 0x630   :  { %1081 = vrot.lane.b32.xlu1 %v1072_v15, %s1923_s12  ;;  %v1059_v31 = vadd.f32 %v1056_v22, %v1053_v10 }
 0x633   :  { %1083 = vrot.lane.b32.xlu0 %v1073_v11, %s1923_s12 }
 0x634   :  { %1085 = vrot.lane.b32.xlu1 %v1074_v6, %s1923_s12 }
 0x69d   :  { %v1076_v24 = vpop.permute.xlu0 %1075 }
 0x69e   :  { %v1078_v35 = vpop.permute.xlu1 %1077  ;;  %v1087_v20 = vadd.f32 %v1076_v24, %v1057_v26 }
 0x69f   :  { %v1088_v39 = vadd.f32 %v1078_v35, %v1058_v27 }
 0x6a1   :  { %v1080_v33 = vpop.permute.xlu0 %1079 }
 0x6a2   :  { %v1082_v25 = vpop.permute.xlu1 %1081  ;;  %v1089_v28 = vadd.f32 %v1080_v33, %v1059_v31 }
 0x6a3   :  { %v1090_v34 = vadd.f32 %v1087_v20, %v1082_v25 }
 0x6a5   :  { %v1093_v32 = vadd.f32 %v1090_v34, %v1999_v37  ;;  %v1084_v29 = vpop.permute.xlu0 %1083 }
 0x6a6   :  { %v1086_v40 = vpop.permute.xlu1 %1085  ;;  %v1091_v44 = vadd.f32 %v1088_v39, %v1084_v29 }
 0x6a7   :  { %v1096_v43 = vmax.f32 %v1093_v32, %v1997_v30  ;;  %v1092_v38 = vadd.f32 %v1089_v28, %v1086_v40 }
 0x6a8   :  { %v1094_v36 = vadd.f32 %v1091_v44, %v2011_v47 }
 0x6a9   :  { %v1099_v49 = vmin.f32 %v1096_v43, %v2305_v21  ;;  %v1095_v50 = vadd.f32 %v1092_v38, %v2009_v46 }
 0x6aa   :  { %v1097_v41 = vmax.f32 %v1094_v36, %v2007_v45 }
 0x6ab   :  { %v1098_v56 = vmax.f32 %v1095_v50, %v2002_v42  ;;  %v1102_v61 = vrot.slane %v1099_v49, 7  ;;  %v1108_v13 = vrot.slane %v1099_v49, 1  ;;  %v1117_v48 = vmul.f32 %v1099_v49, %v2018_v51 }
 0x6ac   :  { %v1100_v62 = vmin.f32 %v1097_v41, %v2314_v19  ;;  %v1147_v52 = vmul.f32 %v1099_v49, %v2028_v57  ;;  %v1132_v4 = vmul.f32 %v1099_v49, %v2032_v59 }
 0x6ad   :  { %v1101_v0 = vmin.f32 %v1098_v56, %v2320_v23 }
 0x6ae   :  { %v1109_v15 = vrot.slane %v1100_v62, 1  ;;  %v1103_v60 = vrot.slane %v1100_v62, 7  ;;  %v1118_v21 = vmul.f32 %v1100_v62, %v2018_v51  ;;  %v1148_v19 = vmul.f32 %v1100_v62, %v2028_v57 }
 0x6af   :  { %v1104_v1 = vrot.slane %v1101_v0, 7  ;;  %v1110_v14 = vrot.slane %v1101_v0, 1  ;;  %v1119_v9 = vmul.f32 %v1101_v0, %v2018_v51  ;;  %v1149_v12 = vmul.f32 %v1101_v0, %v2028_v57 }
 0x6b0   :  { %v1112_v23 = vsel %vm83_vm1, %v1108_v13, %v1109_v15  ;;  %v1106_v2 = vsel %vm76_vm0, %v1102_v61, %v1103_v60  ;;  %v1133_v6 = vmul.f32 %v1100_v62, %v2032_v59  ;;  %v1134_v17 = vmul.f32 %v1101_v0, %v2032_v59 }
 0x6b1   :  { %v1107_v8 = vsel %vm76_vm0, %v1104_v1, %v1102_v61  ;;  %v1111_v16 = vsel %vm83_vm1, %v1109_v15, %v1110_v14  ;;  %v1115_v11 = vmul.f32 %v1106_v2, %v2021_v53  ;;  %v1123_v18 = vmul.f32 %v1112_v23, %v2023_v54 }
 0x6b2   :  { %v1114_v7 = vmul.f32 %v1107_v8, %v2021_v53  ;;  %v1124_v10 = vmul.f32 %v1111_v16, %v2023_v54  ;;  %v1144_v22 = vmul.f32 %v1107_v8, %v2025_v55  ;;  %v1105_v27 = vsel %vm76_vm0, %v1103_v60, %v1104_v1 }
 0x6b3   :  { %v1121_v26 = vadd.f32 %v1118_v21, %v1115_v11  ;;  %v1113_v31 = vsel %vm83_vm1, %v1110_v14, %v1108_v13  ;;  %v1145_v24 = vmul.f32 %v1106_v2, %v2025_v55  ;;  %v1153_v33 = vmul.f32 %v1112_v23, %v2030_v58 }
 0x6b4   :  { %v1120_v35 = vadd.f32 %v1117_v48, %v1114_v7  ;;  %v1150_v20 = vadd.f32 %v1147_v52, %v1144_v22  ;;  %v1116_v25 = vmul.f32 %v1105_v27, %v2021_v53  ;;  %v1125_v39 = vmul.f32 %v1113_v31, %v2023_v54  ;;  %v2697_v22 = vld [vmem:[%s3173_s1] sm:$0xff] }
 0x6b5   :  { %v1127_v34 = vadd.f32 %v1124_v10, %v1121_v26  ;;  %v1146_v32 = vmul.f32 %v1105_v27, %v2025_v55  ;;  %v1151_v28 = vadd.f32 %v1148_v19, %v1145_v24  ;;  %v1154_v43 = vmul.f32 %v1111_v16, %v2030_v58 }
 0x6b6   :  { %v1126_v29 = vadd.f32 %v1123_v18, %v1120_v35  ;;  %v1156_v40 = vadd.f32 %v1153_v33, %v1150_v20  ;;  %v1122_v44 = vadd.f32 %v1119_v9, %v1116_v25  ;;  %v1155_v36 = vmul.f32 %v1113_v31, %v2030_v58  ;;  %v2707_v20 = vld [vmem:[%s3173_s1 + $0x10] sm:$0xff] }
 0x6b7   :  { %1161 = vrot.lane.b32.xlu1 %v1127_v34, %s1922_s11  ;;  %v1152_v38 = vadd.f32 %v1149_v12, %v1146_v32  ;;  %v1129_v49 = vmul.f32 %v1107_v8, %v2034_v63  ;;  %v1130_v50 = vmul.f32 %v1106_v2, %v2034_v63  ;;  %v1157_v56 = vadd.f32 %v1154_v43, %v1151_v28  ;;  %v2713_v34 = vld [vmem:[%s3173_s1 + $0x8] sm:$0xff] }
 0x6b8   :  { %1159 = vrot.lane.b32.xlu0 %v1126_v29, %s1922_s11  ;;  %v1128_v41 = vadd.f32 %v1125_v39, %v1122_v44  ;;  %v1138_v62 = vmul.f32 %v1112_v23, %v2036_v3  ;;  %v1131_v61 = vmul.f32 %v1105_v27, %v2034_v63  ;;  %v1139_v52 = vmul.f32 %v1111_v16, %v2036_v3 }
 0x6b9   :  { %v1158_v0 = vadd.f32 %v1155_v36, %v1152_v38  ;;  %v1135_v13 = vadd.f32 %v1132_v4, %v1129_v49  ;;  %v1136_v48 = vadd.f32 %v1133_v6, %v1130_v50  ;;  %v1140_v60 = vmul.f32 %v1113_v31, %v2036_v3 }
 0x6ba   :  { %v1137_v15 = vadd.f32 %v1134_v17, %v1131_v61 }
 0x6bb   :  { %1165 = vrot.lane.b32.xlu1 %v1156_v40, %s1923_s12  ;;  %v1141_v21 = vadd.f32 %v1138_v62, %v1135_v13  ;;  %v1142_v1 = vadd.f32 %v1139_v52, %v1136_v48 }
 0x6bc   :  { %1163 = vrot.lane.b32.xlu0 %v1128_v41, %s1922_s11  ;;  %v1143_v14 = vadd.f32 %v1140_v60, %v1137_v15 }
 0x6bf   :  { %1169 = vrot.lane.b32.xlu1 %v1158_v0, %s1923_s12 }
 0x6c0   :  { %1167 = vrot.lane.b32.xlu0 %v1157_v56, %s1923_s12 }
 0x729   :  { %v1162_v9 = vpop.permute.xlu1 %1161 }
 0x72a   :  { %v1160_v19 = vpop.permute.xlu0 %1159  ;;  %v1172_v16 = vadd.f32 %v1162_v9, %v1142_v1 }
 0x72b   :  { %v1171_v4 = vadd.f32 %v1160_v19, %v1141_v21 }
 0x72d   :  { %v1166_v23 = vpop.permute.xlu1 %1165 }
 0x72e   :  { %v1174_v2 = vadd.f32 %v1171_v4, %v1166_v23  ;;  %v1164_v12 = vpop.permute.xlu0 %1163 }
 0x72f   :  { %v1173_v8 = vadd.f32 %v1164_v12, %v1143_v14 }
 0x730   :  { %v1177_v6 = vadd.f32 %v1174_v2, %v1999_v37 }
 0x731   :  { %v1170_v11 = vpop.permute.xlu1 %1169 }
 0x732   :  { %v1180_v17 = vmax.f32 %v1177_v6, %v1997_v30  ;;  %v1176_v7 = vadd.f32 %v1173_v8, %v1170_v11  ;;  %v1168_v18 = vpop.permute.xlu0 %1167 }
 0x733   :  { %v1175_v10 = vadd.f32 %v1172_v16, %v1168_v18 }
 0x734   :  { %v1183_v26 = vmin.f32 %v1180_v17, %v2697_v22  ;;  %v1179_v27 = vadd.f32 %v1176_v7, %v2009_v46 }
 0x735   :  { %v1178_v31 = vadd.f32 %v1175_v10, %v2011_v47 }
 0x736   :  { %v1182_v24 = vmax.f32 %v1179_v27, %v2002_v42  ;;  %v1186_v25 = vrot.slane %v1183_v26, 7  ;;  %v1192_v32 = vrot.slane %v1183_v26, 1  ;;  %v1201_v28 = vmul.f32 %v1183_v26, %v2018_v51 }
 0x737   :  { %v1181_v35 = vmax.f32 %v1178_v31, %v2007_v45  ;;  %v1231_v29 = vmul.f32 %v1183_v26, %v2028_v57  ;;  %v1216_v38 = vmul.f32 %v1183_v26, %v2032_v59 }
 0x738   :  { %v1185_v33 = vmin.f32 %v1182_v24, %v2707_v20 }
 0x739   :  { %v1184_v39 = vmin.f32 %v1181_v35, %v2713_v34 }
 0x73a   :  { %v1188_v40 = vrot.slane %v1185_v33, 7  ;;  %v1194_v44 = vrot.slane %v1185_v33, 1  ;;  %v1203_v43 = vmul.f32 %v1185_v33, %v2018_v51  ;;  %v1233_v41 = vmul.f32 %v1185_v33, %v2028_v57 }
 0x73b   :  { %v1193_v36 = vrot.slane %v1184_v39, 1  ;;  %v1187_v49 = vrot.slane %v1184_v39, 7  ;;  %v1202_v50 = vmul.f32 %v1184_v39, %v2018_v51  ;;  %v1232_v61 = vmul.f32 %v1184_v39, %v2028_v57 }
 0x73c   :  { %v1191_v56 = vsel %vm76_vm0, %v1188_v40, %v1186_v25  ;;  %v1197_v62 = vsel %vm83_vm1, %v1194_v44, %v1192_v32  ;;  %v1217_v0 = vmul.f32 %v1184_v39, %v2032_v59  ;;  %v1218_v14 = vmul.f32 %v1185_v33, %v2032_v59 }
 0x73d   :  { %v1196_v13 = vsel %vm83_vm1, %v1192_v32, %v1193_v36  ;;  %v1198_v48 = vmul.f32 %v1191_v56, %v2021_v53  ;;  %v1190_v52 = vsel %vm76_vm0, %v1186_v25, %v1187_v49  ;;  %v1195_v15 = vsel %vm83_vm1, %v1193_v36, %v1194_v44 }
 0x73e   :  { %v1207_v60 = vmul.f32 %v1196_v13, %v2023_v54  ;;  %v1199_v21 = vmul.f32 %v1190_v52, %v2021_v53  ;;  %v1228_v1 = vmul.f32 %v1191_v56, %v2025_v55  ;;  %v1208_v19 = vmul.f32 %v1195_v15, %v2023_v54 }
 0x73f   :  { %v1204_v9 = vadd.f32 %v1201_v28, %v1198_v48  ;;  %v1237_v4 = vmul.f32 %v1196_v13, %v2030_v58  ;;  %v1189_v23 = vsel %vm76_vm0, %v1187_v49, %v1188_v40  ;;  %v1209_v11 = vmul.f32 %v1197_v62, %v2023_v54 }
 0x740   :  { %v1205_v2 = vadd.f32 %v1202_v50, %v1199_v21  ;;  %v1234_v12 = vadd.f32 %v1231_v29, %v1228_v1  ;;  %v1200_v6 = vmul.f32 %v1189_v23, %v2021_v53  ;;  %v1230_v8 = vmul.f32 %v1189_v23, %v2025_v55 }
 0x741   :  { %v1210_v16 = vadd.f32 %v1207_v60, %v1204_v9  ;;  %v1239_v17 = vmul.f32 %v1197_v62, %v2030_v58  ;;  %v1229_v7 = vmul.f32 %v1190_v52, %v2025_v55  ;;  %v1238_v24 = vmul.f32 %v1195_v15, %v2030_v58 }
 0x742   :  { %v1211_v18 = vadd.f32 %v1208_v19, %v1205_v2  ;;  %v1240_v10 = vadd.f32 %v1237_v4, %v1234_v12  ;;  %v1206_v26 = vadd.f32 %v1203_v43, %v1200_v6  ;;  %v1236_v27 = vadd.f32 %v1233_v41, %v1230_v8 }
 0x743   :  { %1243 = vrot.lane.b32.xlu0 %v1210_v16, %s1922_s11  ;;  %v1235_v31 = vadd.f32 %v1232_v61, %v1229_v7  ;;  %v1213_v35 = vmul.f32 %v1191_v56, %v2034_v63  ;;  %v1214_v33 = vmul.f32 %v1190_v52, %v2034_v63  ;;  %v1222_v32 = vmul.f32 %v1196_v13, %v2036_v3 }
 0x744   :  { %1245 = vrot.lane.b32.xlu1 %v1211_v18, %s1922_s11  ;;  %v1212_v25 = vadd.f32 %v1209_v11, %v1206_v26  ;;  %v1242_v39 = vadd.f32 %v1239_v17, %v1236_v27  ;;  %v1215_v28 = vmul.f32 %v1189_v23, %v2034_v63  ;;  %v1223_v43 = vmul.f32 %v1195_v15, %v2036_v3 }
 0x745   :  { %v1241_v29 = vadd.f32 %v1238_v24, %v1235_v31  ;;  %v1219_v40 = vadd.f32 %v1216_v38, %v1213_v35  ;;  %v1220_v44 = vadd.f32 %v1217_v0, %v1214_v33  ;;  %v1224_v49 = vmul.f32 %v1197_v62, %v2036_v3 }
 0x746   :  { %v1221_v36 = vadd.f32 %v1218_v14, %v1215_v28 }
 0x747   :  { %1247 = vrot.lane.b32.xlu0 %v1212_v25, %s1922_s11  ;;  %v1225_v50 = vadd.f32 %v1222_v32, %v1219_v40  ;;  %v1226_v41 = vadd.f32 %v1223_v43, %v1220_v44 }
 0x748   :  { %1249 = vrot.lane.b32.xlu1 %v1240_v10, %s1923_s12  ;;  %v1227_v56 = vadd.f32 %v1224_v49, %v1221_v36 }
 0x74b   :  { %1251 = vrot.lane.b32.xlu0 %v1241_v29, %s1923_s12 }
 0x74c   :  { %1253 = vrot.lane.b32.xlu1 %v1242_v39, %s1923_s12 }
 0x7b5   :  { %v1244_v61 = vpop.permute.xlu0 %1243 }
 0x7b6   :  { %v1246_v13 = vpop.permute.xlu1 %1245  ;;  %v1255_v38 = vadd.f32 %v1244_v61, %v1225_v50 }
 0x7b7   :  { %v1256_v15 = vadd.f32 %v1246_v13, %v1226_v41 }
 0x7b9   :  { %v1248_v0 = vpop.permute.xlu0 %1247 }
 0x7ba   :  { %v1250_v48 = vpop.permute.xlu1 %1249  ;;  %v1257_v60 = vadd.f32 %v1248_v0, %v1227_v56 }
 0x7bb   :  { %v1258_v52 = vadd.f32 %v1255_v38, %v1250_v48 }
 0x7bd   :  { %v1261_v62 = vadd.f32 %v1258_v52, %v1999_v37  ;;  %v1252_v21 = vpop.permute.xlu0 %1251 }
 0x7be   :  { %v1254_v1 = vpop.permute.xlu1 %1253  ;;  %v1259_v14 = vadd.f32 %v1256_v15, %v1252_v21 }
 0x7bf   :  { %v1264_v9 = vmax.f32 %v1261_v62, %v1997_v30  ;;  %v1260_v19 = vadd.f32 %v1257_v60, %v1254_v1 }
 0x7c0   :  { %v1262_v4 = vadd.f32 %v1259_v14, %v2011_v47 }
 0x7c1   :  { %v1267_v23 = vmin.f32 %v1264_v9, %v2697_v22  ;;  %v1263_v2 = vadd.f32 %v1260_v19, %v2009_v46 }
 0x7c2   :  { %v1265_v12 = vmax.f32 %v1262_v4, %v2007_v45 }
 0x7c3   :  { %v1266_v6 = vmax.f32 %v1263_v2, %v2002_v42  ;;  %v1270_v16 = vrot.slane %v1267_v23, 7  ;;  %v1276_v17 = vrot.slane %v1267_v23, 1  ;;  %v1285_v7 = vmul.f32 %v1267_v23, %v2018_v51 }
 0x7c4   :  { %v1268_v8 = vmin.f32 %v1265_v12, %v2713_v34  ;;  %v1315_v18 = vmul.f32 %v1267_v23, %v2028_v57  ;;  %v1300_v31 = vmul.f32 %v1267_v23, %v2032_v59 }
 0x7c5   :  { %v1269_v11 = vmin.f32 %v1266_v6, %v2707_v20 }
 0x7c6   :  { %v1277_v10 = vrot.slane %v1268_v8, 1  ;;  %v1271_v26 = vrot.slane %v1268_v8, 7  ;;  %v1286_v27 = vmul.f32 %v1268_v8, %v2018_v51  ;;  %v1316_v25 = vmul.f32 %v1268_v8, %v2028_v57 }
 0x7c7   :  { %v1272_v24 = vrot.slane %v1269_v11, 7  ;;  %v1278_v35 = vrot.slane %v1269_v11, 1  ;;  %v1287_v33 = vmul.f32 %v1269_v11, %v2018_v51  ;;  %v1317_v28 = vmul.f32 %v1269_v11, %v2028_v57 }
 0x7c8   :  { %v1280_v39 = vsel %vm83_vm1, %v1276_v17, %v1277_v10  ;;  %v1274_v32 = vsel %vm76_vm0, %v1270_v16, %v1271_v26  ;;  %v1301_v29 = vmul.f32 %v1268_v8, %v2032_v59  ;;  %v1302_v36 = vmul.f32 %v1269_v11, %v2032_v59 }
 0x7c9   :  { %v1275_v40 = vsel %vm76_vm0, %v1272_v24, %v1270_v16  ;;  %v1279_v44 = vsel %vm83_vm1, %v1277_v10, %v1278_v35  ;;  %v1283_v43 = vmul.f32 %v1274_v32, %v2021_v53  ;;  %v1291_v50 = vmul.f32 %v1280_v39, %v2023_v54 }
 0x7ca   :  { %v1282_v49 = vmul.f32 %v1275_v40, %v2021_v53  ;;  %v1292_v41 = vmul.f32 %v1279_v44, %v2023_v54  ;;  %v1312_v56 = vmul.f32 %v1275_v40, %v2025_v55  ;;  %v1273_v13 = vsel %vm76_vm0, %v1271_v26, %v1272_v24 }
 0x7cb   :  { %v1289_v61 = vadd.f32 %v1286_v27, %v1283_v43  ;;  %v1281_v38 = vsel %vm83_vm1, %v1278_v35, %v1276_v17  ;;  %v1313_v0 = vmul.f32 %v1274_v32, %v2025_v55  ;;  %v1321_v15 = vmul.f32 %v1280_v39, %v2030_v58 }
 0x7cc   :  { %v1288_v48 = vadd.f32 %v1285_v7, %v1282_v49  ;;  %v1318_v52 = vadd.f32 %v1315_v18, %v1312_v56  ;;  %v1284_v62 = vmul.f32 %v1273_v13, %v2021_v53  ;;  %v1293_v21 = vmul.f32 %v1281_v38, %v2023_v54 }
 0x7cd   :  { %v1295_v60 = vadd.f32 %v1292_v41, %v1289_v61  ;;  %v1314_v1 = vmul.f32 %v1273_v13, %v2025_v55  ;;  %v1319_v14 = vadd.f32 %v1316_v25, %v1313_v0  ;;  %v1322_v23 = vmul.f32 %v1279_v44, %v2030_v58 }
 0x7ce   :  { %v1294_v9 = vadd.f32 %v1291_v50, %v1288_v48  ;;  %v1324_v19 = vadd.f32 %v1321_v15, %v1318_v52  ;;  %v1290_v4 = vadd.f32 %v1287_v33, %v1284_v62  ;;  %v1323_v12 = vmul.f32 %v1281_v38, %v2030_v58 }
 0x7cf   :  { %1329 = vrot.lane.b32.xlu1 %v1295_v60, %s1922_s11  ;;  %v1320_v2 = vadd.f32 %v1317_v28, %v1314_v1  ;;  %v1297_v6 = vmul.f32 %v1275_v40, %v2034_v63  ;;  %v1298_v8 = vmul.f32 %v1274_v32, %v2034_v63  ;;  %v1325_v11 = vadd.f32 %v1322_v23, %v1319_v14 }
 0x7d0   :  { %1327 = vrot.lane.b32.xlu0 %v1294_v9, %s1922_s11  ;;  %v1296_v16 = vadd.f32 %v1293_v21, %v1290_v4  ;;  %v1306_v17 = vmul.f32 %v1280_v39, %v2036_v3  ;;  %v1299_v7 = vmul.f32 %v1273_v13, %v2034_v63  ;;  %v1307_v27 = vmul.f32 %v1279_v44, %v2036_v3 }
 0x7d1   :  { %v1326_v18 = vadd.f32 %v1323_v12, %v1320_v2  ;;  %v1303_v10 = vadd.f32 %v1300_v31, %v1297_v6  ;;  %v1304_v26 = vadd.f32 %v1301_v29, %v1298_v8  ;;  %v1308_v35 = vmul.f32 %v1281_v38, %v2036_v3 }
 0x7d2   :  { %v1305_v24 = vadd.f32 %v1302_v36, %v1299_v7 }
 0x7d3   :  { %1333 = vrot.lane.b32.xlu1 %v1324_v19, %s1923_s12  ;;  %v1309_v33 = vadd.f32 %v1306_v17, %v1303_v10  ;;  %v1310_v25 = vadd.f32 %v1307_v27, %v1304_v26 }
 0x7d4   :  { %1331 = vrot.lane.b32.xlu0 %v1296_v16, %s1922_s11  ;;  %v1311_v32 = vadd.f32 %v1308_v35, %v1305_v24 }
 0x7d7   :  { %1337 = vrot.lane.b32.xlu1 %v1326_v18, %s1923_s12 }
 0x7d8   :  { %1335 = vrot.lane.b32.xlu0 %v1325_v11, %s1923_s12 }
 0x841   :  { %v1330_v39 = vpop.permute.xlu1 %1329 }
 0x842   :  { %v1328_v28 = vpop.permute.xlu0 %1327  ;;  %v1340_v49 = vadd.f32 %v1330_v39, %v1310_v25 }
 0x843   :  { %v1339_v31 = vadd.f32 %v1328_v28, %v1309_v33 }
 0x845   :  { %v1334_v29 = vpop.permute.xlu1 %1333 }
 0x846   :  { %v1342_v40 = vadd.f32 %v1339_v31, %v1334_v29  ;;  %v1332_v44 = vpop.permute.xlu0 %1331 }
 0x847   :  { %v1341_v36 = vadd.f32 %v1332_v44, %v1311_v32 }
 0x848   :  { %v1345_v43 = vadd.f32 %v1342_v40, %v1999_v37 }
 0x849   :  { %v1338_v50 = vpop.permute.xlu1 %1337 }
 0x84a   :  { %v1348_v41 = vmax.f32 %v1345_v43, %v1997_v30  ;;  %v1344_v56 = vadd.f32 %v1341_v36, %v1338_v50  ;;  %v1336_v61 = vpop.permute.xlu0 %1335 }
 0x84b   :  { %v1343_v13 = vadd.f32 %v1340_v49, %v1336_v61 }
 0x84c   :  { %v1351_v38 = vmin.f32 %v1348_v41, %v2697_v22  ;;  %v1347_v0 = vadd.f32 %v1344_v56, %v2009_v46 }
 0x84d   :  { %v1346_v48 = vadd.f32 %v1343_v13, %v2011_v47 }
 0x84e   :  { %v1350_v52 = vmax.f32 %v1347_v0, %v2002_v42  ;;  %v1354_v60 = vrot.slane %v1351_v38, 7  ;;  %v1360_v1 = vrot.slane %v1351_v38, 1  ;;  %v1369_v14 = vmul.f32 %v1351_v38, %v2018_v51 }
 0x84f   :  { %v1349_v15 = vmax.f32 %v1346_v48, %v2007_v45  ;;  %v1399_v9 = vmul.f32 %v1351_v38, %v2028_v57  ;;  %v1384_v2 = vmul.f32 %v1351_v38, %v2032_v59 }
 0x850   :  { %v1353_v62 = vmin.f32 %v1350_v52, %v2707_v20 }
 0x851   :  { %v1352_v21 = vmin.f32 %v1349_v15, %v2713_v34 }
 0x852   :  { %v1356_v19 = vrot.slane %v1353_v62, 7  ;;  %v1362_v4 = vrot.slane %v1353_v62, 1  ;;  %v1371_v23 = vmul.f32 %v1353_v62, %v2018_v51  ;;  %v1401_v16 = vmul.f32 %v1353_v62, %v2028_v57 }
 0x853   :  { %v1361_v12 = vrot.slane %v1352_v21, 1  ;;  %v1355_v6 = vrot.slane %v1352_v21, 7  ;;  %v1370_v8 = vmul.f32 %v1352_v21, %v2018_v51  ;;  %v1400_v7 = vmul.f32 %v1352_v21, %v2028_v57 }
 0x854   :  { %v1359_v11 = vsel %vm76_vm0, %v1356_v19, %v1354_v60  ;;  %v1365_v17 = vsel %vm83_vm1, %v1362_v4, %v1360_v1  ;;  %v1385_v18 = vmul.f32 %v1352_v21, %v2032_v59  ;;  %v1386_v32 = vmul.f32 %v1353_v62, %v2032_v59 }
 0x855   :  { %v1364_v10 = vsel %vm83_vm1, %v1360_v1, %v1361_v12  ;;  %v1366_v26 = vmul.f32 %v1359_v11, %v2021_v53  ;;  %v1358_v27 = vsel %vm76_vm0, %v1354_v60, %v1355_v6  ;;  %v1363_v24 = vsel %vm83_vm1, %v1361_v12, %v1362_v4 }
 0x856   :  { %v1375_v35 = vmul.f32 %v1364_v10, %v2023_v54  ;;  %v1367_v33 = vmul.f32 %v1358_v27, %v2021_v53  ;;  %v1396_v25 = vmul.f32 %v1359_v11, %v2025_v55  ;;  %v1376_v28 = vmul.f32 %v1363_v24, %v2023_v54 }
 0x857   :  { %v1372_v39 = vadd.f32 %v1369_v14, %v1366_v26  ;;  %v1405_v31 = vmul.f32 %v1364_v10, %v2030_v58  ;;  %v1357_v29 = vsel %vm76_vm0, %v1355_v6, %v1356_v19  ;;  %v1377_v50 = vmul.f32 %v1365_v17, %v2023_v54 }
 0x858   :  { %v1373_v40 = vadd.f32 %v1370_v8, %v1367_v33  ;;  %v1402_v44 = vadd.f32 %v1399_v9, %v1396_v25  ;;  %v1368_v43 = vmul.f32 %v1357_v29, %v2021_v53  ;;  %v1398_v36 = vmul.f32 %v1357_v29, %v2025_v55 }
 0x859   :  { %v1378_v49 = vadd.f32 %v1375_v35, %v1372_v39  ;;  %v1407_v41 = vmul.f32 %v1365_v17, %v2030_v58  ;;  %v1397_v56 = vmul.f32 %v1358_v27, %v2025_v55  ;;  %v1406_v52 = vmul.f32 %v1363_v24, %v2030_v58 }
 0x85a   :  { %v1379_v61 = vadd.f32 %v1376_v28, %v1373_v40  ;;  %v1408_v13 = vadd.f32 %v1405_v31, %v1402_v44  ;;  %v1374_v38 = vadd.f32 %v1371_v23, %v1368_v43  ;;  %v1404_v0 = vadd.f32 %v1401_v16, %v1398_v36 }
 0x85b   :  { %1411 = vrot.lane.b32.xlu0 %v1378_v49, %s1922_s11  ;;  %v1403_v48 = vadd.f32 %v1400_v7, %v1397_v56  ;;  %v1381_v15 = vmul.f32 %v1359_v11, %v2034_v63  ;;  %v1382_v62 = vmul.f32 %v1358_v27, %v2034_v63  ;;  %v1390_v1 = vmul.f32 %v1364_v10, %v2036_v3 }
 0x85c   :  { %1413 = vrot.lane.b32.xlu1 %v1379_v61, %s1922_s11  ;;  %v1380_v60 = vadd.f32 %v1377_v50, %v1374_v38  ;;  %v1410_v21 = vadd.f32 %v1407_v41, %v1404_v0  ;;  %v1383_v14 = vmul.f32 %v1357_v29, %v2034_v63  ;;  %v1391_v23 = vmul.f32 %v1363_v24, %v2036_v3 }
 0x85d   :  { %v1409_v9 = vadd.f32 %v1406_v52, %v1403_v48  ;;  %v1387_v19 = vadd.f32 %v1384_v2, %v1381_v15  ;;  %v1388_v4 = vadd.f32 %v1385_v18, %v1382_v62  ;;  %v1392_v6 = vmul.f32 %v1365_v17, %v2036_v3 }
 0x85e   :  { %v1389_v12 = vadd.f32 %v1386_v32, %v1383_v14 }
 0x85f   :  { %1415 = vrot.lane.b32.xlu0 %v1380_v60, %s1922_s11  ;;  %v1393_v8 = vadd.f32 %v1390_v1, %v1387_v19  ;;  %v1394_v16 = vadd.f32 %v1391_v23, %v1388_v4 }
 0x860   :  { %1417 = vrot.lane.b32.xlu1 %v1408_v13, %s1923_s12  ;;  %v1395_v11 = vadd.f32 %v1392_v6, %v1389_v12 }
 0x863   :  { %1419 = vrot.lane.b32.xlu0 %v1409_v9, %s1923_s12 }
 0x864   :  { %1421 = vrot.lane.b32.xlu1 %v1410_v21, %s1923_s12 }
 0x8cd   :  { %v1412_v7 = vpop.permute.xlu0 %1411 }
 0x8ce   :  { %v1414_v10 = vpop.permute.xlu1 %1413  ;;  %v1423_v2 = vadd.f32 %v1412_v7, %v1393_v8 }
 0x8cf   :  { %v1424_v24 = vadd.f32 %v1414_v10, %v1394_v16 }
 0x8d1   :  { %v1416_v18 = vpop.permute.xlu0 %1415 }
 0x8d2   :  { %v1418_v26 = vpop.permute.xlu1 %1417  ;;  %v1425_v35 = vadd.f32 %v1416_v18, %v1395_v11 }
 0x8d3   :  { %v1426_v27 = vadd.f32 %v1423_v2, %v1418_v26 }
 0x8d5   :  { %v1429_v17 = vadd.f32 %v1426_v27, %v1999_v37  ;;  %v1420_v33 = vpop.permute.xlu0 %1419 }
 0x8d6   :  { %v1422_v25 = vpop.permute.xlu1 %1421  ;;  %v1427_v32 = vadd.f32 %v1424_v24, %v1420_v33 }
 0x8d7   :  { %v1432_v39 = vmax.f32 %v1429_v17, %v1997_v30  ;;  %v1428_v28 = vadd.f32 %v1425_v35, %v1422_v25 }
 0x8d8   :  { %v1430_v31 = vadd.f32 %v1427_v32, %v2011_v47 }
 0x8d9   :  { %v1435_v29 = vmin.f32 %v1432_v39, %v2697_v22  ;;  %v1431_v40 = vadd.f32 %v1428_v28, %v2009_v46 }
 0x8da   :  { %v1433_v44 = vmax.f32 %v1430_v31, %v2007_v45 }
 0x8db   :  { %v1434_v43 = vmax.f32 %v1431_v40, %v2002_v42  ;;  %v1438_v49 = vrot.slane %v1435_v29, 7  ;;  %v1444_v41 = vrot.slane %v1435_v29, 1  ;;  %v1453_v56 = vmul.f32 %v1435_v29, %v2018_v51 }
 0x8dc   :  { %v1436_v36 = vmin.f32 %v1433_v44, %v2713_v34  ;;  %v1483_v61 = vmul.f32 %v1435_v29, %v2028_v57  ;;  %v1468_v48 = vmul.f32 %v1435_v29, %v2032_v59 }
 0x8dd   :  { %v1437_v50 = vmin.f32 %v1434_v43, %v2707_v20 }
 0x8de   :  { %v1445_v13 = vrot.slane %v1436_v36, 1  ;;  %v1439_v38 = vrot.slane %v1436_v36, 7  ;;  %v1454_v0 = vmul.f32 %v1436_v36, %v2018_v51  ;;  %v1484_v60 = vmul.f32 %v1436_v36, %v2028_v57 }
 0x8df   :  { %v1440_v52 = vrot.slane %v1437_v50, 7  ;;  %v1446_v15 = vrot.slane %v1437_v50, 1  ;;  %v1455_v62 = vmul.f32 %v1437_v50, %v2018_v51  ;;  %v1485_v14 = vmul.f32 %v1437_v50, %v2028_v57 }
 0x8e0   :  { %v1448_v21 = vsel %vm83_vm1, %v1444_v41, %v1445_v13  ;;  %v1442_v1 = vsel %vm76_vm0, %v1438_v49, %v1439_v38  ;;  %v1469_v9 = vmul.f32 %v1436_v36, %v2032_v59  ;;  %v1470_v12 = vmul.f32 %v1437_v50, %v2032_v59 }
 0x8e1   :  { %v1443_v19 = vsel %vm76_vm0, %v1440_v52, %v1438_v49  ;;  %v1447_v4 = vsel %vm83_vm1, %v1445_v13, %v1446_v15  ;;  %v1451_v23 = vmul.f32 %v1442_v1, %v2021_v53  ;;  %v1459_v8 = vmul.f32 %v1448_v21, %v2023_v54 }
 0x8e2   :  { %v1450_v6 = vmul.f32 %v1443_v19, %v2021_v53  ;;  %v1460_v16 = vmul.f32 %v1447_v4, %v2023_v54  ;;  %v1480_v11 = vmul.f32 %v1443_v19, %v2025_v55  ;;  %v1441_v10 = vsel %vm76_vm0, %v1439_v38, %v1440_v52 }
 0x8e3   :  { %v1457_v7 = vadd.f32 %v1454_v0, %v1451_v23  ;;  %v1449_v2 = vsel %vm83_vm1, %v1446_v15, %v1444_v41  ;;  %v1481_v18 = vmul.f32 %v1442_v1, %v2025_v55  ;;  %v1489_v24 = vmul.f32 %v1448_v21, %v2030_v58 }
 0x8e4   :  { %v1456_v26 = vadd.f32 %v1453_v56, %v1450_v6  ;;  %v1486_v27 = vadd.f32 %v1483_v61, %v1480_v11  ;;  %v1452_v17 = vmul.f32 %v1441_v10, %v2021_v53  ;;  %v1461_v33 = vmul.f32 %v1449_v2, %v2023_v54 }
 0x8e5   :  { %v1463_v35 = vadd.f32 %v1460_v16, %v1457_v7  ;;  %v1482_v25 = vmul.f32 %v1441_v10, %v2025_v55  ;;  %v1487_v32 = vadd.f32 %v1484_v60, %v1481_v18  ;;  %v1490_v29 = vmul.f32 %v1447_v4, %v2030_v58 }
 0x8e6   :  { %v1462_v39 = vadd.f32 %v1459_v8, %v1456_v26  ;;  %v1492_v28 = vadd.f32 %v1489_v24, %v1486_v27  ;;  %v1458_v31 = vadd.f32 %v1455_v62, %v1452_v17  ;;  %v1491_v44 = vmul.f32 %v1449_v2, %v2030_v58 }
 0x8e7   :  { %1497 = vrot.lane.b32.xlu1 %v1463_v35, %s1922_s11  ;;  %v1488_v40 = vadd.f32 %v1485_v14, %v1482_v25  ;;  %v1465_v43 = vmul.f32 %v1443_v19, %v2034_v63  ;;  %v1466_v36 = vmul.f32 %v1442_v1, %v2034_v63  ;;  %v1493_v50 = vadd.f32 %v1490_v29, %v1487_v32 }
 0x8e8   :  { %1495 = vrot.lane.b32.xlu0 %v1462_v39, %s1922_s11  ;;  %v1464_v49 = vadd.f32 %v1461_v33, %v1458_v31  ;;  %v1474_v41 = vmul.f32 %v1448_v21, %v2036_v3  ;;  %v1467_v56 = vmul.f32 %v1441_v10, %v2034_v63  ;;  %v1475_v0 = vmul.f32 %v1447_v4, %v2036_v3 }
 0x8e9   :  { %v1494_v61 = vadd.f32 %v1491_v44, %v1488_v40  ;;  %v1471_v13 = vadd.f32 %v1468_v48, %v1465_v43  ;;  %v1472_v38 = vadd.f32 %v1469_v9, %v1466_v36  ;;  %v1476_v15 = vmul.f32 %v1449_v2, %v2036_v3 }
 0x8ea   :  { %v1473_v52 = vadd.f32 %v1470_v12, %v1467_v56 }
 0x8eb   :  { %1501 = vrot.lane.b32.xlu1 %v1492_v28, %s1923_s12  ;;  %v1477_v62 = vadd.f32 %v1474_v41, %v1471_v13  ;;  %v1478_v60 = vadd.f32 %v1475_v0, %v1472_v38 }
 0x8ec   :  { %1499 = vrot.lane.b32.xlu0 %v1464_v49, %s1922_s11  ;;  %v1479_v1 = vadd.f32 %v1476_v15, %v1473_v52 }
 0x8ef   :  { %1505 = vrot.lane.b32.xlu1 %v1494_v61, %s1923_s12 }
 0x8f0   :  { %1503 = vrot.lane.b32.xlu0 %v1493_v50, %s1923_s12 }
 0x959   :  { %v1498_v21 = vpop.permute.xlu1 %1497 }
 0x95a   :  { %v1496_v14 = vpop.permute.xlu0 %1495  ;;  %v1508_v6 = vadd.f32 %v1498_v21, %v1478_v60 }
 0x95b   :  { %v1507_v48 = vadd.f32 %v1496_v14, %v1477_v62 }
 0x95d   :  { %v1502_v9 = vpop.permute.xlu1 %1501 }
 0x95e   :  { %v1510_v19 = vadd.f32 %v1507_v48, %v1502_v9  ;;  %v1500_v4 = vpop.permute.xlu0 %1499 }
 0x95f   :  { %v1509_v12 = vadd.f32 %v1500_v4, %v1479_v1 }
 0x960   :  { %v1513_v23 = vadd.f32 %v1510_v19, %v1999_v37 }
 0x961   :  { %v1506_v8 = vpop.permute.xlu1 %1505 }
 0x962   :  { %v1516_v16 = vmax.f32 %v1513_v23, %v1997_v30  ;;  %v1512_v11 = vadd.f32 %v1509_v12, %v1506_v8  ;;  %v1504_v7 = vpop.permute.xlu0 %1503 }
 0x963   :  { %v1511_v10 = vadd.f32 %v1508_v6, %v1504_v7 }
 0x964   :  { %v1519_v2 = vmin.f32 %v1516_v16, %v2697_v22  ;;  %v1515_v18 = vadd.f32 %v1512_v11, %v2009_v46 }
 0x965   :  { %v1514_v26 = vadd.f32 %v1511_v10, %v2011_v47 }
 0x966   :  { %v1518_v27 = vmax.f32 %v1515_v18, %v2002_v42  ;;  %v1522_v35 = vrot.slane %v1519_v2, 7  ;;  %v1528_v25 = vrot.slane %v1519_v2, 1  ;;  %v1537_v32 = vmul.f32 %v1519_v2, %v2018_v51 }
 0x967   :  { %v1517_v24 = vmax.f32 %v1514_v26, %v2007_v45  ;;  %v1567_v39 = vmul.f32 %v1519_v2, %v2028_v57  ;;  %v1552_v40 = vmul.f32 %v1519_v2, %v2032_v59 }
 0x968   :  { %v1521_v17 = vmin.f32 %v1518_v27, %v2707_v20 }
 0x969   :  { %v1520_v33 = vmin.f32 %v1517_v24, %v2713_v34 }
 0x96a   :  { %v1524_v28 = vrot.slane %v1521_v17, 7  ;;  %v1530_v31 = vrot.slane %v1521_v17, 1  ;;  %v1539_v29 = vmul.f32 %v1521_v17, %v2018_v51  ;;  %v1569_v49 = vmul.f32 %v1521_v17, %v2028_v57 }
 0x96b   :  { %v1529_v44 = vrot.slane %v1520_v33, 1  ;;  %v1523_v43 = vrot.slane %v1520_v33, 7  ;;  %v1538_v36 = vmul.f32 %v1520_v33, %v2018_v51  ;;  %v1568_v56 = vmul.f32 %v1520_v33, %v2028_v57 }
 0x96c   :  { %v1527_v50 = vsel %vm76_vm0, %v1524_v28, %v1522_v35  ;;  %v1533_v41 = vsel %vm83_vm1, %v1530_v31, %v1528_v25  ;;  %v1553_v61 = vmul.f32 %v1520_v33, %v2032_v59  ;;  %v1554_v1 = vmul.f32 %v1521_v17, %v2032_v59 }
 0x96d   :  { %v1532_v13 = vsel %vm83_vm1, %v1528_v25, %v1529_v44  ;;  %v1534_v38 = vmul.f32 %v1527_v50, %v2021_v53  ;;  %v1526_v0 = vsel %vm76_vm0, %v1522_v35, %v1523_v43  ;;  %v1531_v52 = vsel %vm83_vm1, %v1529_v44, %v1530_v31 }
 0x96e   :  { %v1543_v15 = vmul.f32 %v1532_v13, %v2023_v54  ;;  %v1535_v62 = vmul.f32 %v1526_v0, %v2021_v53  ;;  %v1564_v60 = vmul.f32 %v1527_v50, %v2025_v55  ;;  %v1544_v14 = vmul.f32 %v1531_v52, %v2023_v54 }
 0x96f   :  { %v1540_v21 = vadd.f32 %v1537_v32, %v1534_v38  ;;  %v1573_v48 = vmul.f32 %v1532_v13, %v2030_v58  ;;  %v1525_v9 = vsel %vm76_vm0, %v1523_v43, %v1524_v28  ;;  %v1545_v8 = vmul.f32 %v1533_v41, %v2023_v54 }
 0x970   :  { %v1541_v19 = vadd.f32 %v1538_v36, %v1535_v62  ;;  %v1570_v4 = vadd.f32 %v1567_v39, %v1564_v60  ;;  %v1536_v23 = vmul.f32 %v1525_v9, %v2021_v53  ;;  %v1566_v12 = vmul.f32 %v1525_v9, %v2025_v55 }
 0x971   :  { %v1546_v6 = vadd.f32 %v1543_v15, %v1540_v21  ;;  %v1575_v16 = vmul.f32 %v1533_v41, %v2030_v58  ;;  %v1565_v11 = vmul.f32 %v1526_v0, %v2025_v55  ;;  %v1574_v27 = vmul.f32 %v1531_v52, %v2030_v58 }
 0x972   :  { %v1547_v7 = vadd.f32 %v1544_v14, %v1541_v19  ;;  %v1576_v10 = vadd.f32 %v1573_v48, %v1570_v4  ;;  %v1542_v2 = vadd.f32 %v1539_v29, %v1536_v23  ;;  %v1572_v18 = vadd.f32 %v1569_v49, %v1566_v12 }
 0x973   :  { %1579 = vrot.lane.b32.xlu0 %v1546_v6, %s1922_s11  ;;  %v1571_v26 = vadd.f32 %v1568_v56, %v1565_v11  ;;  %v1549_v24 = vmul.f32 %v1527_v50, %v2034_v63  ;;  %v1550_v17 = vmul.f32 %v1526_v0, %v2034_v63  ;;  %v1558_v25 = vmul.f32 %v1532_v13, %v2036_v3 }
 0x974   :  { %1581 = vrot.lane.b32.xlu1 %v1547_v7, %s1922_s11  ;;  %v1548_v35 = vadd.f32 %v1545_v8, %v1542_v2  ;;  %v1578_v33 = vadd.f32 %v1575_v16, %v1572_v18  ;;  %v1551_v32 = vmul.f32 %v1525_v9, %v2034_v63  ;;  %v1559_v29 = vmul.f32 %v1531_v52, %v2036_v3 }
 0x975   :  { %v1577_v39 = vadd.f32 %v1574_v27, %v1571_v26  ;;  %v1555_v28 = vadd.f32 %v1552_v40, %v1549_v24  ;;  %v1556_v31 = vadd.f32 %v1553_v61, %v1550_v17  ;;  %v1560_v43 = vmul.f32 %v1533_v41, %v2036_v3 }
 0x976   :  { %v1557_v44 = vadd.f32 %v1554_v1, %v1551_v32 }
 0x977   :  { %1583 = vrot.lane.b32.xlu0 %v1548_v35, %s1922_s11  ;;  %v1561_v36 = vadd.f32 %v1558_v25, %v1555_v28  ;;  %v1562_v49 = vadd.f32 %v1559_v29, %v1556_v31 }
 0x978   :  { %1585 = vrot.lane.b32.xlu1 %v1576_v10, %s1923_s12  ;;  %v1563_v50 = vadd.f32 %v1560_v43, %v1557_v44 }
 0x97b   :  { %1587 = vrot.lane.b32.xlu0 %v1577_v39, %s1923_s12 }
 0x97c   :  { %1589 = vrot.lane.b32.xlu1 %v1578_v33, %s1923_s12 }
 0x9e5   :  { %v1580_v56 = vpop.permute.xlu0 %1579 }
 0x9e6   :  { %v1582_v13 = vpop.permute.xlu1 %1581  ;;  %v1591_v40 = vadd.f32 %v1580_v56, %v1561_v36 }
 0x9e7   :  { %v1592_v52 = vadd.f32 %v1582_v13, %v1562_v49 }
 0x9e9   :  { %v1584_v61 = vpop.permute.xlu0 %1583 }
 0x9ea   :  { %v1586_v38 = vpop.permute.xlu1 %1585  ;;  %v1593_v15 = vadd.f32 %v1584_v61, %v1563_v50 }
 0x9eb   :  { %v1594_v0 = vadd.f32 %v1591_v40, %v1586_v38 }
 0x9ed   :  { %v1597_v41 = vadd.f32 %v1594_v0, %v1999_v37  ;;  %v1588_v62 = vpop.permute.xlu0 %1587 }
 0x9ee   :  { %v1590_v60 = vpop.permute.xlu1 %1589  ;;  %v1595_v1 = vadd.f32 %v1592_v52, %v1588_v62 }
 0x9ef   :  { %v1600_v21 = vmax.f32 %v1597_v41, %v1997_v30  ;;  %v1596_v14 = vadd.f32 %v1593_v15, %v1590_v60 }
 0x9f0   :  { %v1598_v48 = vadd.f32 %v1595_v1, %v2011_v47 }
 0x9f1   :  { %v1603_v9 = vmin.f32 %v1600_v21, %v2697_v22  ;;  %v1599_v19 = vadd.f32 %v1596_v14, %v2009_v46 }
 0x9f2   :  { %v1601_v4 = vmax.f32 %v1598_v48, %v2007_v45 }
 0x9f3   :  { %v1602_v23 = vmax.f32 %v1599_v19, %v2002_v42  ;;  %v1606_v6 = vrot.slane %v1603_v9, 7  ;;  %v1612_v16 = vrot.slane %v1603_v9, 1  ;;  %v1621_v11 = vmul.f32 %v1603_v9, %v2018_v51 }
 0x9f4   :  { %v1604_v12 = vmin.f32 %v1601_v4, %v2713_v34  ;;  %v1651_v7 = vmul.f32 %v1603_v9, %v2028_v57  ;;  %v1636_v26 = vmul.f32 %v1603_v9, %v2032_v59 }
 0x9f5   :  { %v1605_v8 = vmin.f32 %v1602_v23, %v2707_v20 }
 0x9f6   :  { %v1613_v10 = vrot.slane %v1604_v12, 1  ;;  %v1607_v2 = vrot.slane %v1604_v12, 7  ;;  %v1622_v18 = vmul.f32 %v1604_v12, %v2018_v51  ;;  %v1652_v35 = vmul.f32 %v1604_v12, %v2028_v57 }
 0x9f7   :  { %v1608_v27 = vrot.slane %v1605_v8, 7  ;;  %v1614_v24 = vrot.slane %v1605_v8, 1  ;;  %v1623_v17 = vmul.f32 %v1605_v8, %v2018_v51  ;;  %v1653_v32 = vmul.f32 %v1605_v8, %v2028_v57 }
 0x9f8   :  { %v1616_v33 = vsel %vm83_vm1, %v1612_v16, %v1613_v10  ;;  %v1610_v25 = vsel %vm76_vm0, %v1606_v6, %v1607_v2  ;;  %v1637_v39 = vmul.f32 %v1604_v12, %v2032_v59  ;;  %v1638_v44 = vmul.f32 %v1605_v8, %v2032_v59 }
 0x9f9   :  { %v1611_v28 = vsel %vm76_vm0, %v1608_v27, %v1606_v6  ;;  %v1615_v31 = vsel %vm83_vm1, %v1613_v10, %v1614_v24  ;;  %v1619_v29 = vmul.f32 %v1610_v25, %v2021_v53  ;;  %v1627_v36 = vmul.f32 %v1616_v33, %v2023_v54 }
 0x9fa   :  { %v1618_v43 = vmul.f32 %v1611_v28, %v2021_v53  ;;  %v1628_v49 = vmul.f32 %v1615_v31, %v2023_v54  ;;  %v1648_v50 = vmul.f32 %v1611_v28, %v2025_v55  ;;  %v1609_v13 = vsel %vm76_vm0, %v1607_v2, %v1608_v27 }
 0x9fb   :  { %v1625_v56 = vadd.f32 %v1622_v18, %v1619_v29  ;;  %v1617_v40 = vsel %vm83_vm1, %v1614_v24, %v1612_v16  ;;  %v1649_v61 = vmul.f32 %v1610_v25, %v2025_v55  ;;  %v1657_v52 = vmul.f32 %v1616_v33, %v2030_v58 }
 0x9fc   :  { %v1624_v38 = vadd.f32 %v1621_v11, %v1618_v43  ;;  %v1654_v0 = vadd.f32 %v1651_v7, %v1648_v50  ;;  %v1620_v41 = vmul.f32 %v1609_v13, %v2021_v53  ;;  %v1629_v62 = vmul.f32 %v1617_v40, %v2023_v54 }
 0x9fd   :  { %v1631_v15 = vadd.f32 %v1628_v49, %v1625_v56  ;;  %v1650_v60 = vmul.f32 %v1609_v13, %v2025_v55  ;;  %v1655_v1 = vadd.f32 %v1652_v35, %v1649_v61  ;;  %v1658_v9 = vmul.f32 %v1615_v31, %v2030_v58 }
 0x9fe   :  { %v1630_v21 = vadd.f32 %v1627_v36, %v1624_v38  ;;  %v1660_v14 = vadd.f32 %v1657_v52, %v1654_v0  ;;  %v1626_v48 = vadd.f32 %v1623_v17, %v1620_v41  ;;  %v1659_v4 = vmul.f32 %v1617_v40, %v2030_v58 }
 0x9ff   :  { %1665 = vrot.lane.b32.xlu1 %v1631_v15, %s1922_s11  ;;  %v1656_v19 = vadd.f32 %v1653_v32, %v1650_v60  ;;  %v1633_v23 = vmul.f32 %v1611_v28, %v2034_v63  ;;  %v1634_v12 = vmul.f32 %v1610_v25, %v2034_v63  ;;  %v1661_v8 = vadd.f32 %v1658_v9, %v1655_v1 }
 0xa00   :  { %1663 = vrot.lane.b32.xlu0 %v1630_v21, %s1922_s11  ;;  %v1632_v6 = vadd.f32 %v1629_v62, %v1626_v48  ;;  %v1642_v16 = vmul.f32 %v1616_v33, %v2036_v3  ;;  %v1635_v11 = vmul.f32 %v1609_v13, %v2034_v63  ;;  %v1643_v18 = vmul.f32 %v1615_v31, %v2036_v3 }
 0xa01   :  { %v1662_v7 = vadd.f32 %v1659_v4, %v1656_v19  ;;  %v1639_v10 = vadd.f32 %v1636_v26, %v1633_v23  ;;  %v1640_v2 = vadd.f32 %v1637_v39, %v1634_v12  ;;  %v1644_v24 = vmul.f32 %v1617_v40, %v2036_v3 }
 0xa02   :  { %v1641_v27 = vadd.f32 %v1638_v44, %v1635_v11 }
 0xa03   :  { %1669 = vrot.lane.b32.xlu1 %v1660_v14, %s1923_s12  ;;  %v1645_v17 = vadd.f32 %v1642_v16, %v1639_v10  ;;  %v1646_v35 = vadd.f32 %v1643_v18, %v1640_v2 }
 0xa04   :  { %1667 = vrot.lane.b32.xlu0 %v1632_v6, %s1922_s11  ;;  %v1647_v25 = vadd.f32 %v1644_v24, %v1641_v27 }
 0xa07   :  { %1673 = vrot.lane.b32.xlu1 %v1662_v7, %s1923_s12 }
 0xa08   :  { %1671 = vrot.lane.b32.xlu0 %v1661_v8, %s1923_s12 }
 0xa71   :  { %v1666_v33 = vpop.permute.xlu1 %1665 }
 0xa72   :  { %v1664_v32 = vpop.permute.xlu0 %1663  ;;  %v1676_v43 = vadd.f32 %v1666_v33, %v1646_v35 }
 0xa73   :  { %v1675_v26 = vadd.f32 %v1664_v32, %v1645_v17 }
 0xa75   :  { %v1670_v39 = vpop.permute.xlu1 %1669 }
 0xa76   :  { %v1678_v28 = vadd.f32 %v1675_v26, %v1670_v39  ;;  %v1668_v31 = vpop.permute.xlu0 %1667 }
 0xa77   :  { %v1677_v44 = vadd.f32 %v1668_v31, %v1647_v25 }
 0xa78   :  { %v1681_v29 = vadd.f32 %v1678_v28, %v1999_v37 }
 0xa79   :  { %v1674_v36 = vpop.permute.xlu1 %1673 }
 0xa7a   :  { %v1684_v49 = vmax.f32 %v1681_v29, %v1997_v30  ;;  %v1680_v50 = vadd.f32 %v1677_v44, %v1674_v36  ;;  %v1672_v56 = vpop.permute.xlu0 %1671 }
 0xa7b   :  { %v1679_v13 = vadd.f32 %v1676_v43, %v1672_v56 }
 0xa7c   :  { %v1687_v40 = vmin.f32 %v1684_v49, %v2697_v22  ;;  %v1683_v61 = vadd.f32 %v1680_v50, %v2009_v46 }
 0xa7d   :  { %v1682_v38 = vadd.f32 %v1679_v13, %v2011_v47 }
 0xa7e   :  { %v1686_v0 = vmax.f32 %v1683_v61, %v2002_v42  ;;  %v1690_v15 = vrot.slane %v1687_v40, 7  ;;  %v1696_v60 = vrot.slane %v1687_v40, 1  ;;  %v1705_v1 = vmul.f32 %v1687_v40, %v2018_v51 }
 0xa7f   :  { %v1685_v52 = vmax.f32 %v1682_v38, %v2007_v45  ;;  %v1735_v21 = vmul.f32 %v1687_v40, %v2028_v57  ;;  %v1720_v9 = vmul.f32 %v1687_v40, %v2032_v59 }
 0xa80   :  { %v1689_v41 = vmin.f32 %v1686_v0, %v2707_v20 }
 0xa81   :  { %v1688_v62 = vmin.f32 %v1685_v52, %v2713_v34 }
 0xa82   :  { %v1692_v14 = vrot.slane %v1689_v41, 7  ;;  %v1698_v22 = vrot.slane %v1689_v41, 1  ;;  %v1707_v48 = vmul.f32 %v1689_v41, %v2018_v51  ;;  %v1737_v20 = vmul.f32 %v1689_v41, %v2028_v57 }
 0xa83   :  { %v1697_v19 = vrot.slane %v1688_v62, 1  ;;  %v1691_v4 = vrot.slane %v1688_v62, 7  ;;  %v1706_v23 = vmul.f32 %v1688_v62, %v2018_v51  ;;  %v1736_v6 = vmul.f32 %v1688_v62, %v2028_v57 }
 0xa84   :  { %v1695_v34 = vsel %vm76_vm0, %v1692_v14, %v1690_v15  ;;  %v1701_v12 = vsel %vm83_vm1, %v1698_v22, %v1696_v60  ;;  %v1721_v8 = vmul.f32 %v1688_v62, %v2032_v59  ;;  %v1722_v24 = vmul.f32 %v1689_v41, %v2032_v59 }
 0xa85   :  { %v1700_v16 = vsel %vm83_vm1, %v1696_v60, %v1697_v19  ;;  %v1702_v11 = vmul.f32 %v1695_v34, %v2021_v53  ;;  %v1694_v7 = vsel %vm76_vm0, %v1690_v15, %v1691_v4  ;;  %v1699_v10 = vsel %vm83_vm1, %v1697_v19, %v1698_v22 }
 0xa86   :  { %v1711_v2 = vmul.f32 %v1700_v16, %v2023_v54  ;;  %v1703_v18 = vmul.f32 %v1694_v7, %v2021_v53  ;;  %v1732_v27 = vmul.f32 %v1695_v34, %v2025_v55  ;;  %v1712_v35 = vmul.f32 %v1699_v10, %v2023_v54 }
 0xa87   :  { %v1708_v17 = vadd.f32 %v1705_v1, %v1702_v11  ;;  %v1741_v25 = vmul.f32 %v1700_v16, %v2030_v58  ;;  %v1693_v33 = vsel %vm76_vm0, %v1691_v4, %v1692_v14  ;;  %v1713_v29 = vmul.f32 %v1701_v12, %v2023_v54 }
 0xa88   :  { %v1709_v32 = vadd.f32 %v1706_v23, %v1703_v18  ;;  %v1738_v26 = vadd.f32 %v1735_v21, %v1732_v27  ;;  %v1704_v39 = vmul.f32 %v1693_v33, %v2021_v53  ;;  %v1734_v28 = vmul.f32 %v1693_v33, %v2025_v55 }
 0xa89   :  { %v1714_v31 = vadd.f32 %v1711_v2, %v1708_v17  ;;  %v1743_v44 = vmul.f32 %v1701_v12, %v2030_v58  ;;  %v1733_v43 = vmul.f32 %v1694_v7, %v2025_v55  ;;  %v1742_v40 = vmul.f32 %v1699_v10, %v2030_v58  ;;  %v3091_v17 = vld [vmem:[%s3173_s1] sm:$0xff] }
 0xa8a   :  { %v1715_v36 = vadd.f32 %v1712_v35, %v1709_v32  ;;  %v1744_v49 = vadd.f32 %v1741_v25, %v1738_v26  ;;  %v1710_v50 = vadd.f32 %v1707_v48, %v1704_v39  ;;  %v1740_v56 = vadd.f32 %v1737_v20, %v1734_v28  ;;  %v3100_v26 = vld [vmem:[%s3173_s1 + $0x8] sm:$0xff] }
 0xa8b   :  { %1747 = vrot.lane.b32.xlu0 %v1714_v31, %s1922_s11  ;;  %v1739_v13 = vadd.f32 %v1736_v6, %v1733_v43  ;;  %v1717_v61 = vmul.f32 %v1695_v34, %v2034_v63  ;;  %v1718_v38 = vmul.f32 %v1694_v7, %v2034_v63  ;;  %v1726_v41 = vmul.f32 %v1700_v16, %v2036_v3  ;;  %v3106_v31 = vld [vmem:[%s3173_s1 + $0x10] sm:$0xff] }
 0xa8c   :  { %1749 = vrot.lane.b32.xlu1 %v1715_v36, %s1922_s11  ;;  %v1716_v0 = vadd.f32 %v1713_v29, %v1710_v50  ;;  %v1746_v52 = vadd.f32 %v1743_v44, %v1740_v56  ;;  %v1719_v15 = vmul.f32 %v1693_v33, %v2034_v63  ;;  %v1727_v21 = vmul.f32 %v1699_v10, %v2036_v3 }
 0xa8d   :  { %v1745_v62 = vadd.f32 %v1742_v40, %v1739_v13  ;;  %v1723_v60 = vadd.f32 %v1720_v9, %v1717_v61  ;;  %v1724_v1 = vadd.f32 %v1721_v8, %v1718_v38  ;;  %v1728_v22 = vmul.f32 %v1701_v12, %v2036_v3 }
 0xa8e   :  { %v1725_v14 = vadd.f32 %v1722_v24, %v1719_v15 }
 0xa8f   :  { %1751 = vrot.lane.b32.xlu0 %v1716_v0, %s1922_s11  ;;  %v1729_v48 = vadd.f32 %v1726_v41, %v1723_v60  ;;  %v1730_v19 = vadd.f32 %v1727_v21, %v1724_v1 }
 0xa90   :  { %1753 = vrot.lane.b32.xlu1 %v1744_v49, %s1923_s12  ;;  %v1731_v4 = vadd.f32 %v1728_v22, %v1725_v14 }
 0xa93   :  { %1755 = vrot.lane.b32.xlu0 %v1745_v62, %s1923_s12 }
 0xa94   :  { %1757 = vrot.lane.b32.xlu1 %v1746_v52, %s1923_s12 }
 0xafd   :  { %v1748_v23 = vpop.permute.xlu0 %1747 }
 0xafe   :  { %v1750_v20 = vpop.permute.xlu1 %1749  ;;  %v1759_v9 = vadd.f32 %v1748_v23, %v1729_v48 }
 0xaff   :  { %v1760_v16 = vadd.f32 %v1750_v20, %v1730_v19 }
 0xb01   :  { %v1752_v34 = vpop.permute.xlu0 %1751 }
 0xb02   :  { %v1754_v6 = vpop.permute.xlu1 %1753  ;;  %v1761_v11 = vadd.f32 %v1752_v34, %v1731_v4 }
 0xb03   :  { %v1762_v8 = vadd.f32 %v1759_v9, %v1754_v6 }
 0xb05   :  { %v1765_v12 = vadd.f32 %v1762_v8, %v1999_v37  ;;  %v1756_v7 = vpop.permute.xlu0 %1755 }
 0xb06   :  { %v1758_v10 = vpop.permute.xlu1 %1757  ;;  %v1763_v2 = vadd.f32 %v1760_v16, %v1756_v7 }
 0xb07   :  { %v1768_v18 = vmax.f32 %v1765_v12, %v1997_v30  ;;  %v1764_v27 = vadd.f32 %v1761_v11, %v1758_v10 }
 0xb08   :  { %v1766_v24 = vadd.f32 %v1763_v2, %v2011_v47 }
 0xb09   :  { %v1771_v35 = vmin.f32 %v1768_v18, %v3091_v17  ;;  %v1767_v25 = vadd.f32 %v1764_v27, %v2009_v46 }
 0xb0a   :  { %v1769_v33 = vmax.f32 %v1766_v24, %v2007_v45 }
 0xb0b   :  { %v1770_v32 = vmax.f32 %v1767_v25, %v2002_v42  ;;  %v1774_v28 = vrot.slane %v1771_v35, 7  ;;  %v1780_v44 = vrot.slane %v1771_v35, 1  ;;  %v1789_v43 = vmul.f32 %v1771_v35, %v2018_v51 }
 0xb0c   :  { %v1772_v39 = vmin.f32 %v1769_v33, %v3100_v26  ;;  %v1819_v36 = vmul.f32 %v1771_v35, %v2028_v57  ;;  %v1804_v13 = vmul.f32 %v1771_v35, %v2032_v59 }
 0xb0d   :  { %v1773_v29 = vmin.f32 %v1770_v32, %v3106_v31 }
 0xb0e   :  { %v1781_v49 = vrot.slane %v1772_v39, 1  ;;  %v1775_v50 = vrot.slane %v1772_v39, 7  ;;  %v1790_v56 = vmul.f32 %v1772_v39, %v2018_v51  ;;  %v1820_v0 = vmul.f32 %v1772_v39, %v2028_v57 }
 0xb0f   :  { %v1776_v40 = vrot.slane %v1773_v29, 7  ;;  %v1782_v61 = vrot.slane %v1773_v29, 1  ;;  %v1791_v38 = vmul.f32 %v1773_v29, %v2018_v51  ;;  %v1821_v15 = vmul.f32 %v1773_v29, %v2028_v57 }
 0xb10   :  { %v1784_v52 = vsel %vm83_vm1, %v1780_v44, %v1781_v49  ;;  %v1778_v41 = vsel %vm76_vm0, %v1774_v28, %v1775_v50  ;;  %v1805_v62 = vmul.f32 %v1772_v39, %v2032_v59  ;;  %v1806_v21 = vmul.f32 %v1773_v29, %v2032_v59 }
 0xb11   :  { %v1779_v60 = vsel %vm76_vm0, %v1776_v40, %v1774_v28  ;;  %v1783_v1 = vsel %vm83_vm1, %v1781_v49, %v1782_v61  ;;  %v1787_v51 = vmul.f32 %v1778_v41, %v2021_v53  ;;  %v1795_v22 = vmul.f32 %v1784_v52, %v2023_v54 }
 0xb12   :  { %v1786_v14 = vmul.f32 %v1779_v60, %v2021_v53  ;;  %v1796_v48 = vmul.f32 %v1783_v1, %v2023_v54  ;;  %v1816_v57 = vmul.f32 %v1779_v60, %v2025_v55  ;;  %v1777_v4 = vsel %vm76_vm0, %v1775_v50, %v1776_v40 }
 0xb13   :  { %v1793_v19 = vadd.f32 %v1790_v56, %v1787_v51  ;;  %v1785_v23 = vsel %vm83_vm1, %v1782_v61, %v1780_v44  ;;  %v1817_v20 = vmul.f32 %v1778_v41, %v2025_v55  ;;  %v1825_v59 = vmul.f32 %v1784_v52, %v2030_v58 }
 0xb14   :  { %v1792_v9 = vadd.f32 %v1789_v43, %v1786_v14  ;;  %v1822_v34 = vadd.f32 %v1819_v36, %v1816_v57  ;;  %v1788_v6 = vmul.f32 %v1777_v4, %v2021_v53  ;;  %v1797_v16 = vmul.f32 %v1785_v23, %v2023_v54 }
 0xb15   :  { %v1799_v8 = vadd.f32 %v1796_v48, %v1793_v19  ;;  %v1818_v12 = vmul.f32 %v1777_v4, %v2025_v55  ;;  %v1823_v11 = vadd.f32 %v1820_v0, %v1817_v20  ;;  %v1826_v5 = vmul.f32 %v1783_v1, %v2030_v58 }
 0xb16   :  { %v1798_v7 = vadd.f32 %v1795_v22, %v1792_v9  ;;  %v1828_v10 = vadd.f32 %v1825_v59, %v1822_v34  ;;  %v1794_v2 = vadd.f32 %v1791_v38, %v1788_v6  ;;  %v1827_v27 = vmul.f32 %v1785_v23, %v2030_v58 }
 0xb17   :  { %1833 = vrot.lane.b32.xlu1 %v1799_v8, %s1922_s11  ;;  %v1824_v18 = vadd.f32 %v1821_v15, %v1818_v12  ;;  %v1801_v24 = vmul.f32 %v1779_v60, %v2034_v63  ;;  %v1802_v53 = vmul.f32 %v1778_v41, %v2034_v63  ;;  %v1829_v35 = vadd.f32 %v1826_v5, %v1823_v11 }
 0xb18   :  { %1831 = vrot.lane.b32.xlu0 %v1798_v7, %s1922_s11  ;;  %v1800_v54 = vadd.f32 %v1797_v16, %v1794_v2  ;;  %v1810_v55 = vmul.f32 %v1784_v52, %v2036_v3  ;;  %v1803_v25 = vmul.f32 %v1777_v4, %v2034_v63  ;;  %v1811_v28 = vmul.f32 %v1783_v1, %v2036_v3 }
 0xb19   :  { %v1830_v33 = vadd.f32 %v1827_v27, %v1824_v18  ;;  %v1807_v32 = vadd.f32 %v1804_v13, %v1801_v24  ;;  %v1808_v39 = vadd.f32 %v1805_v62, %v1802_v53  ;;  %v1812_v58 = vmul.f32 %v1785_v23, %v2036_v3 }
 0xb1a   :  { %v1809_v29 = vadd.f32 %v1806_v21, %v1803_v25 }
 0xb1b   :  { %1837 = vrot.lane.b32.xlu1 %v1828_v10, %s1923_s12  ;;  %v1813_v44 = vadd.f32 %v1810_v55, %v1807_v32  ;;  %v1814_v43 = vadd.f32 %v1811_v28, %v1808_v39 }
 0xb1c   :  { %1835 = vrot.lane.b32.xlu0 %v1800_v54, %s1922_s11  ;;  %v1815_v36 = vadd.f32 %v1812_v58, %v1809_v29 }
 0xb1f   :  { %1841 = vrot.lane.b32.xlu1 %v1830_v33, %s1923_s12 }
 0xb20   :  { %1839 = vrot.lane.b32.xlu0 %v1829_v35, %s1923_s12 }
 0xb89   :  { %v1834_v63 = vpop.permute.xlu1 %1833 }
 0xb8a   :  { %v1832_v49 = vpop.permute.xlu0 %1831  ;;  %v1844_v38 = vadd.f32 %v1834_v63, %v1814_v43 }
 0xb8b   :  { %v1843_v50 = vadd.f32 %v1832_v49, %v1813_v44 }
 0xb8d   :  { %v1838_v56 = vpop.permute.xlu1 %1837 }
 0xb8e   :  { %v1846_v13 = vadd.f32 %v1843_v50, %v1838_v56  ;;  %v1836_v40 = vpop.permute.xlu0 %1835 }
 0xb8f   :  { %v1845_v3 = vadd.f32 %v1836_v40, %v1815_v36 }
 0xb90   :  { %v1849_v61 = vadd.f32 %v1846_v13, %v1999_v37 }
 0xb91   :  { %v1842_v0 = vpop.permute.xlu1 %1841 }
 0xb92   :  { %v1852_v52 = vmax.f32 %v1849_v61, %v1997_v30  ;;  %v1848_v41 = vadd.f32 %v1845_v3, %v1842_v0  ;;  %v1840_v15 = vpop.permute.xlu0 %1839 }
 0xb93   :  { %v1847_v62 = vadd.f32 %v1844_v38, %v1840_v15 }
 0xb94   :  { %v1855_v60 = vmin.f32 %v1852_v52, %v3091_v17  ;;  %v1851_v1 = vadd.f32 %v1848_v41, %v2009_v46 }
 0xb95   :  { %v1850_v51 = vadd.f32 %v1847_v62, %v2011_v47 }
 0xb96   :  { %v1858_v21 = vadd.f32 1.0, %v1855_v60  ;;  %v1854_v14 = vmax.f32 %v1851_v1, %v2002_v42 }
 0xb97   :  { %v1853_v22 = vmax.f32 %v1850_v51, %v2007_v45 }
 0xb98   :  { %v1861_v37 = vmul.f32 0.5, %v1858_v21  ;;  %v1857_v48 = vmin.f32 %v1854_v14, %v3106_v31 }
 0xb99   :  { %v1856_v57 = vmin.f32 %v1853_v22, %v3100_v26 }
 0xb9a   :  { %1864 = vst [vmem:[%s3175_s3] sm:$0xff] %v1861_v37  ;;  %v1860_v30 = vadd.f32 1.0, %v1857_v48 }
 0xb9b   :  { %v1859_v17 = vadd.f32 1.0, %v1856_v57 }
 0xb9c   :  { %v1863_v19 = vmul.f32 0.5, %v1860_v30 }
 0xb9d   :  { %v1862_v46 = vmul.f32 0.5, %v1859_v17 }
 0xb9e   :  { %1866 = vst [vmem:[%s3175_s3 + $0x10] sm:$0xff] %v1863_v19 }
 0xb9f   :  { %1865 = vst [vmem:[%s3175_s3 + $0x8] sm:$0xff] %v1862_v46 }
 0xba0   :  { %1871 = vsyncpa [#allocation3], 1 }

</bundles_post_ra>
